<compile_context>
chip_gen: v7x
topology: tpu7x:2x2x1
jax: 0.10.0
libtpu: 0.0.40
codegen_flags: <defaults>
</compile_context>

<pallas_src>
import functools

import jax
import jax.numpy as jnp
import numpy as np
from jax.experimental import pallas as pl
from jax.experimental.pallas import tpu as pltpu

_EPS = 1e-5
_LANES = 128     # every activation slab is (rows, 128)
_S_LANES = 16    # max source-row count (Hin) supported by the packed S slab
_CIN_PAD = 8     # network input channels padded 3 -> 8  (lane-dense input)
_COUT_PAD = 8    # network output channels padded 3 -> 8 (lane-dense output)


# ---------------------------------------------------------------------------
# Host-side packing: fold padding / stride / upsample geometry + conv weights
# into per-layer operator matrices so the kernel is pure matmul + elementwise.
# ---------------------------------------------------------------------------
def _src_index(padded_idx, n, pad, pad_type):
    """Source index in the (possibly upsampled) image for a padded coordinate."""
    i = padded_idx - pad
    if 0 <= i < n:
        return i
    if pad_type == "reflect":
        return -i if i < 0 else 2 * n - 2 - i
    if pad_type == "replicate":
        return min(max(i, 0), n - 1)
    return None  # zero padding -> contributes nothing


def _pack_conv_layer(w, b, *, Hin, Win, Cin, k, stride, pad, upsample, pad_type):
    """Pack one Conv2dBlock (optionally fused with a 2x nearest upsample).

    Returns:
      S2       : (k*Ho_pad, _S_LANES) f32 -- per-tap row selectors stacked along
                 rows, each tap zero-padded to Ho_pad rows.
      Acat     : (k*Win*Cin, Wo*Cout) f32 -- column selection folded with the
                 conv weights, taps concatenated along rows (matches the
                 lane-concat order used in the kernel).
      bias_row : (1, Wo*Cout) f32
      geom     : (Ho, Wo, Cout, Ho_pad)
    """
    Cout = int(w.shape[0])
    assert w.shape[1] == Cin and w.shape[2] == k and w.shape[3] == k
    Hu, Wu = (2 * Hin, 2 * Win) if upsample else (Hin, Win)
    Ho = (Hu + 2 * pad - k) // stride + 1
    Wo = (Wu + 2 * pad - k) // stride + 1
    Ho_pad = -(-Ho // 8) * 8
    assert Hin <= _S_LANES

    # Per-tap row selectors (reflect pad + stride + upsample folded in).
    S = np.zeros((k, Ho_pad, _S_LANES), np.float32)
    for kh in range(k):
        for ho in range(Ho):
            src = _src_index(stride * ho + kh, Hu, pad, pad_type)
            if src is not None:
                S[kh, ho, src // 2 if upsample else src] = 1.0

    # Column selector per horizontal tap.
    sel = np.zeros((k, Win, Wo), np.float32)
    for kw in range(k):
        for wo in range(Wo):
            src = _src_index(stride * wo + kw, Wu, pad, pad_type)
            if src is not None:
                sel[kw, src // 2 if upsample else src, wo] = 1.0

    # A_cat: column selection folded with the conv weights, all taps stacked.
    A5 = np.einsum("qvo,uchq->hvcou", sel, np.asarray(w, np.float32))
    Acat = A5.reshape(k * Win * Cin, Wo * Cout)
    bias_row = np.tile(np.asarray(b, np.float32), Wo).reshape(1, Wo * Cout)
    return S.reshape(k * Ho_pad, _S_LANES), Acat, bias_row, (Ho, Wo, Cout, Ho_pad)


def pack_cyclegan_gen(params, *, n_downsample, n_res, image_hw,
                      norm="in", activ="relu", pad_type="reflect"):
    """Static layer plan + 4 consolidated operator slabs for the whole generator."""
    # TODO(synk): 'adain'/'ln'/'bn'/'sn' Conv2dBlock norm branches and
    # prelu/selu/sigmoid activations are not implemented (unreachable with the
    # standard CycleGAN generator config norm='in', activ='relu').
    assert norm == "in" and activ in ("relu", "lrelu")
    H, W = image_hw

    def cw(p):
        return (np.asarray(jax.device_get(p["w"]), np.float32),
                np.asarray(jax.device_get(p["b"]), np.float32))

    layer_defs = []
    enc = params["encode"]
    # First layer: pad Cin 3 -> 8 (zero weight columns) for a lane-dense input slab.
    w0, b0 = cw(enc[0])
    w0 = np.concatenate(
        [w0, np.zeros((w0.shape[0], _CIN_PAD - w0.shape[1]) + w0.shape[2:], np.float32)], axis=1)
    layer_defs.append(dict(w=w0, b=b0, k=7, stride=1, pad=3, up=False,
                           norm=norm, act=activ, save=False, add=False))
    for i in range(n_downsample):
        wi, bi = cw(enc[1 + i])
        layer_defs.append(dict(w=wi, b=bi, k=4, stride=2, pad=1, up=False,
                               norm=norm, act=activ, save=False, add=False))
    for r in range(n_res):
        p1, p2 = params["res"][r]
        w1, b1 = cw(p1)
        w2, b2 = cw(p2)
        layer_defs.append(dict(w=w1, b=b1, k=3, stride=1, pad=1, up=False,
                               norm=norm, act=activ, save=True, add=False))
        layer_defs.append(dict(w=w2, b=b2, k=3, stride=1, pad=1, up=False,
                               norm=norm, act="none", save=False, add=True))
    dec = params["decode"]
    for i in range(n_downsample):
        wi, bi = cw(dec[i])
        layer_defs.append(dict(w=wi, b=bi, k=5, stride=1, pad=2, up=True,
                               norm=norm, act=activ, save=False, add=False))
    # Last layer: pad Cout 3 -> 8 (zero weights + zero bias) for lane-dense output.
    wl, bl = cw(dec[-1])
    cout_real = int(wl.shape[0])
    wl = np.concatenate(
        [wl, np.zeros((_COUT_PAD - cout_real,) + wl.shape[1:], np.float32)], axis=0)
    bl = np.concatenate([bl, np.zeros((_COUT_PAD - cout_real,), np.float32)])
    layer_defs.append(dict(w=wl, b=bl, k=7, stride=1, pad=3, up=False,
                           norm="none", act="tanh", save=False, add=False))

    plan, s_blocks, a_blocks = [], [], []
    couts_in, bias_last = [], None
    cur = (H, W, _CIN_PAD)
    s_off = a_off = 0
    for L in layer_defs:
        Hin, Win, Cin = cur
        S2, Acat, bias_row, (Ho, Wo, Cout, Ho_pad) = _pack_conv_layer(
            L["w"], L["b"], Hin=Hin, Win=Win, Cin=Cin, k=L["k"], stride=L["stride"],
            pad=L["pad"], upsample=L["up"], pad_type=pad_type)
        # Demo config is lane-dense (W*C == 128) at every layer.
        assert Win * Cin == _LANES and Wo * Cout == _LANES
        if L["norm"] == "in":
            if Cout not in couts_in:
                couts_in.append(Cout)
            m_idx = couts_in.index(Cout)
        else:
            m_idx = -1
            bias_last = bias_row  # bias only matters when there is no InstanceNorm
        plan.append(dict(k=L["k"], Hin=Hin, Ho=Ho, Wo=Wo, Ho_pad=Ho_pad,
                         s_off=s_off, s_rows=S2.shape[0],
                         a_off=a_off, a_rows=Acat.shape[0],
                         norm=L["norm"], act=L["act"], m_idx=m_idx,
                         use_bias=(L["norm"] != "in"),
                         res_save=L["save"], res_add=L["add"]))
        s_blocks.append(S2)
        a_blocks.append(Acat)
        s_off += S2.shape[0]
        a_off += Acat.shape[0]
        cur = (Ho, Wo, Cout)

    # InstanceNorm per-lane channel-broadcast matrices:
    #   M[l, l'] = 1 iff (l % Cout) == (l' % Cout);  colsum @ M gives the
    #   per-channel sum already broadcast back to every lane of that channel,
    #   so the whole fold+broadcast is a single tiny matmul per IN layer.
    lane = np.arange(_LANES)
    m_all = np.stack([(lane[:, None] % C == lane[None, :] % C).astype(np.float32)
                      for C in couts_in], axis=0)

    packed = dict(
        s=jnp.asarray(np.concatenate(s_blocks, axis=0), jnp.bfloat16),
        a=jnp.asarray(np.concatenate(a_blocks, axis=0), jnp.bfloat16),
        m=jnp.asarray(m_all, jnp.float32),
        b=jnp.asarray(bias_last, jnp.float32),
    )
    Ho, Wo, _ = cur
    meta = dict(cin_pad=_CIN_PAD, cout_pad=_COUT_PAD, cout=cout_real, Ho=Ho, Wo=Wo)
    return plan, packed, meta


# ---------------------------------------------------------------------------
# Fused Pallas kernel: the whole generator for one sample per grid step.
# ---------------------------------------------------------------------------
def _make_fused_kernel(plan):
    def kernel(x_ref, s_ref, a_ref, m_ref, blast_ref, out_ref):
        x = x_ref[0]                                    # (H0, 128) f32, one sample
        saved = None
        for L in plan:
            k, Hin, Ho, Wo, Ho_pad = L["k"], L["Hin"], L["Ho"], L["Wo"], L["Ho_pad"]
            if L["res_save"]:
                saved = x                               # ResBlock skip path (f32)

            # ---- conv = 2 matmuls: stacked row-select, then fused-tap GEMM ----
            xb = x.astype(jnp.bfloat16)
            s_blk = s_ref[pl.ds(L["s_off"], L["s_rows"]), :]   # (k*Ho_pad, 16) bf16
            if Hin < _S_LANES:
                s_blk = s_blk[:, :Hin]
            # Exact row selection (S entries are 0/1), all taps in one MXU push.
            t = jnp.dot(s_blk, xb, preferred_element_type=jnp.float32)  # (k*Ho_pad, 128)
            # Lane-axis concat of the per-tap slabs (each 128 lanes -> pure layout).
            r = jnp.concatenate(
                [t[kh * Ho_pad: kh * Ho_pad + Ho, :] for kh in range(k)], axis=1)
            a_blk = a_ref[pl.ds(L["a_off"], L["a_rows"]), :]   # (k*128, 128) bf16
            y = jnp.dot(r.astype(jnp.bfloat16), a_blk,
                        preferred_element_type=jnp.float32)    # (Ho, 128) f32

            if L["use_bias"]:
                y = y + blast_ref[...]                  # only the final (norm-free) layer

            if L["norm"] == "in":
                # InstanceNorm2d(affine=False): per-channel stats over (Ho, Wo),
                # biased variance, eps inside rsqrt.  Channel fold + broadcast is
                # ONE tiny f32 matmul at precision=HIGHEST (no bf16 truncation of
                # the statistics).  Conv bias is omitted here: IN cancels it.
                inv_n = 1.0 / float(Ho * Wo)
                m = m_ref[L["m_idx"]]                   # (128, 128) f32
                sums = jnp.concatenate(
                    [jnp.sum(y, axis=0, keepdims=True),
                     jnp.sum(y * y, axis=0, keepdims=True)], axis=0)   # (2, 128)
                folded = jnp.dot(sums, m, preferred_element_type=jnp.float32,
                                 precision=jax.lax.Precision.HIGHEST) * inv_n
                mean_l = folded[0:1, :]
                var_l = jnp.maximum(folded[1:2, :] - mean_l * mean_l, 0.0)
                y = (y - mean_l) * jax.lax.rsqrt(var_l + _EPS)

            if L["act"] == "relu":
                y = jnp.maximum(y, 0.0)
            elif L["act"] == "lrelu":
                y = jnp.where(y > 0.0, y, 0.2 * y)
            elif L["act"] == "tanh":
                y = jnp.tanh(y)
            # 'none': passthrough

            if L["res_add"]:
                y = y + saved
            x = y

        out_ref[0] = x.astype(out_ref.dtype)

    return kernel


def cyclegan_gen_forward(x_nchw, packed, *, plan, meta):
    """Full CycleGANGen forward; PyTorch-facing NCHW in / NCHW out."""
    B, Cin, H, W = x_nchw.shape
    cpad = meta["cin_pad"]
    # NCHW -> (B, H, W*Cpad) slab with channels zero-padded to lane-dense 128.
    x = jnp.transpose(x_nchw, (0, 2, 3, 1)).astype(jnp.float32)
    x = jnp.pad(x, ((0, 0), (0, 0), (0, 0), (0, cpad - Cin)))
    x2d = x.reshape(B, H, W * cpad)

    s_all, a_all, m_all, bias_last = packed["s"], packed["a"], packed["m"], packed["b"]
    Ho, Wo, opad = meta["Ho"], meta["Wo"], meta["cout_pad"]

    out2d = pl.pallas_call(
        _make_fused_kernel(plan),
        out_shape=jax.ShapeDtypeStruct((B, Ho, Wo * opad), jnp.float32),
        grid_spec=pltpu.PrefetchScalarGridSpec(
            num_scalar_prefetch=0,
            grid=(B,),
            in_specs=[
                pl.BlockSpec((1, H, W * cpad), lambda b: (b, 0, 0)),
                pl.BlockSpec(s_all.shape, lambda b: (0, 0)),
                pl.BlockSpec(a_all.shape, lambda b: (0, 0)),
                pl.BlockSpec(m_all.shape, lambda b: (0, 0, 0)),
                pl.BlockSpec(bias_last.shape, lambda b: (0, 0)),
            ],
            out_specs=pl.BlockSpec((1, Ho, Wo * opad), lambda b: (b, 0, 0)),
        ),
        compiler_params=pltpu.CompilerParams(
            dimension_semantics=("parallel",)),
    )(x2d, s_all, a_all, m_all, bias_last)

    out = out2d.reshape(B, Ho, Wo, opad)[..., :meta["cout"]]
    return jnp.transpose(out, (0, 3, 1, 2))


# ---------------------------------------------------------------------------
# Deterministic parameter construction (matches CycleGANGen.__init__ shapes)
# ---------------------------------------------------------------------------
def init_cyclegan_gen_params(key, *, dim, n_downsample, n_res):
    def conv_wb(key, cout, cin, k):
        kw, kb = jax.random.split(key)
        fan_in = cin * k * k
        w = jax.random.normal(kw, (cout, cin, k, k), jnp.float32) / jnp.sqrt(fan_in)
        b = 0.01 * jax.random.normal(kb, (cout,), jnp.float32)
        return {"w": w, "b": b}

    params = {"encode": [], "res": [], "decode": []}
    d = dim

    key, sub = jax.random.split(key)
    params["encode"].append(conv_wb(sub, d, 3, 7))               # 7x7 s1 p3
    for _ in range(n_downsample):
        key, sub = jax.random.split(key)
        params["encode"].append(conv_wb(sub, 2 * d, d, 4))       # 4x4 s2 p1
        d *= 2
    for _ in range(n_res):
        key, s1 = jax.random.split(key)
        key, s2 = jax.random.split(key)
        params["res"].append((conv_wb(s1, d, d, 3), conv_wb(s2, d, d, 3)))
    for _ in range(n_downsample):
        key, sub = jax.random.split(key)
        params["decode"].append(conv_wb(sub, d // 2, d, 5))      # 2x up + 5x5 s1 p2
        d //= 2
    key, sub = jax.random.split(key)
    params["decode"].append(conv_wb(sub, 3, d, 7))               # 7x7 s1 p3, tanh
    return params


# ---------------------------------------------------------------------------
# Demo
# ---------------------------------------------------------------------------
if __name__ == "__main__":
    cfg = dict(dim=8, n_downsample=2, n_res=2,
               norm="in", activ="relu", pad_type="reflect")

    key = jax.random.PRNGKey(0)
    key_p, key_x = jax.random.split(key)

    raw_params = init_cyclegan_gen_params(
        key_p, dim=cfg["dim"], n_downsample=cfg["n_downsample"], n_res=cfg["n_res"])

    # NCHW input, same convention as the PyTorch module (in_channels fixed to 3).
    x = jax.random.normal(key_x, (2, 3, 16, 16), jnp.float32)

    # One-time host-side weight packing (a real deployment caches this with the
    # weights); the jitted forward is a single fused pallas_call.
    plan, packed, meta = pack_cyclegan_gen(
        raw_params, n_downsample=cfg["n_downsample"], n_res=cfg["n_res"],
        image_hw=(16, 16), norm=cfg["norm"], activ=cfg["activ"],
        pad_type=cfg["pad_type"])

    fwd = jax.jit(functools.partial(cyclegan_gen_forward, plan=plan, meta=meta))

    out = jax.block_until_ready(fwd(x, packed))

    assert out.shape == (2, 3, 16, 16), out.shape
    assert bool(jnp.all(jnp.isfinite(out)))
    assert bool(jnp.max(jnp.abs(out)) <= 1.0 + 1e-6)  # tanh output range
    print("KERNEL_OK")
</pallas_src>

<mosaic_0001>
module attributes {stable_mosaic.version = 11 : i64} {
  func.func @kernel(%arg0: i32, %arg1: memref<1x16x128xf32, #tpu.memory_space<vmem>>, %arg2: memref<504x16xbf16, #tpu.memory_space<vmem>>, %arg3: memref<5632x128xbf16, #tpu.memory_space<vmem>>, %arg4: memref<3x128x128xf32, #tpu.memory_space<vmem>>, %arg5: memref<1x128xf32, #tpu.memory_space<vmem>>, %arg6: memref<1x16x128xf32, #tpu.memory_space<vmem>>) attributes {dimension_semantics = [#tpu.dimension_semantics<parallel>], iteration_bounds = array<i64: 2>, scalar_prefetch = 0 : i64, scratch_operands = 0 : i64, tpu.core_type = #tpu.core_type<tc>, window_params = [{transform_indices = @transform_0, window_bounds = array<i64: 1, 16, 128>}, {pipeline_mode = #tpu.pipeline_mode<synchronous>, transform_indices = @transform_1, window_bounds = array<i64: 504, 16>}, {pipeline_mode = #tpu.pipeline_mode<synchronous>, transform_indices = @transform_2, window_bounds = array<i64: 5632, 128>}, {pipeline_mode = #tpu.pipeline_mode<synchronous>, transform_indices = @transform_3, window_bounds = array<i64: 3, 128, 128>}, {pipeline_mode = #tpu.pipeline_mode<synchronous>, transform_indices = @transform_4, window_bounds = array<i64: 1, 128>}, {transform_indices = @transform_5, window_bounds = array<i64: 1, 16, 128>}]} {
    %c0 = arith.constant 0 : index
    %c0_0 = arith.constant 0 : index
    %c0_1 = arith.constant 0 : index
    %0 = vector.load %arg1[%c0, %c0_0, %c0_1] : memref<1x16x128xf32, #tpu.memory_space<vmem>>, vector<1x16x128xf32>
    %1 = vector.shape_cast %0 : vector<1x16x128xf32> to vector<16x128xf32>
    %2 = arith.truncf %1 : vector<16x128xf32> to vector<16x128xbf16>
    %c0_2 = arith.constant 0 : index
    %c0_3 = arith.constant 0 : index
    %3 = vector.load %arg2[%c0_2, %c0_3] : memref<504x16xbf16, #tpu.memory_space<vmem>>, vector<112x16xbf16>
    %cst = arith.constant dense<0.000000e+00> : vector<112x128xf32>
    %4 = tpu.matmul %3, %2, %cst {dimension_numbers = #tpu.dot_dimension_numbers<[1], [0], [0], [1], [0, 0, 1, 1], [], []>} : vector<112x16xbf16>, vector<16x128xbf16>, vector<112x128xf32> -> vector<112x128xf32>
    %5 = vector.extract_strided_slice %4 {offsets = [0, 0], sizes = [16, 128], strides = [1, 1]} : vector<112x128xf32> to vector<16x128xf32>
    %6 = vector.extract_strided_slice %4 {offsets = [16, 0], sizes = [16, 128], strides = [1, 1]} : vector<112x128xf32> to vector<16x128xf32>
    %7 = vector.extract_strided_slice %4 {offsets = [32, 0], sizes = [16, 128], strides = [1, 1]} : vector<112x128xf32> to vector<16x128xf32>
    %8 = vector.extract_strided_slice %4 {offsets = [48, 0], sizes = [16, 128], strides = [1, 1]} : vector<112x128xf32> to vector<16x128xf32>
    %9 = vector.extract_strided_slice %4 {offsets = [64, 0], sizes = [16, 128], strides = [1, 1]} : vector<112x128xf32> to vector<16x128xf32>
    %10 = vector.extract_strided_slice %4 {offsets = [80, 0], sizes = [16, 128], strides = [1, 1]} : vector<112x128xf32> to vector<16x128xf32>
    %11 = vector.extract_strided_slice %4 {offsets = [96, 0], sizes = [16, 128], strides = [1, 1]} : vector<112x128xf32> to vector<16x128xf32>
    %12 = tpu.concatenate %5, %6, %7, %8, %9, %10, %11 in 1 : vector<16x128xf32>, vector<16x128xf32>, vector<16x128xf32>, vector<16x128xf32>, vector<16x128xf32>, vector<16x128xf32>, vector<16x128xf32> -> vector<16x896xf32>
    %c0_4 = arith.constant 0 : index
    %c0_5 = arith.constant 0 : index
    %13 = vector.load %arg3[%c0_4, %c0_5] : memref<5632x128xbf16, #tpu.memory_space<vmem>>, vector<896x128xbf16>
    %14 = arith.truncf %12 : vector<16x896xf32> to vector<16x896xbf16>
    %cst_6 = arith.constant dense<0.000000e+00> : vector<16x128xf32>
    %15 = tpu.matmul %14, %13, %cst_6 {dimension_numbers = #tpu.dot_dimension_numbers<[1], [0], [0], [1], [0, 0, 1, 1], [], []>} : vector<16x896xbf16>, vector<896x128xbf16>, vector<16x128xf32> -> vector<16x128xf32>
    %c0_7 = arith.constant 0 : index
    %c0_8 = arith.constant 0 : index
    %c0_9 = arith.constant 0 : index
    %16 = vector.load %arg4[%c0_7, %c0_8, %c0_9] : memref<3x128x128xf32, #tpu.memory_space<vmem>>, vector<1x128x128xf32>
    %17 = vector.shape_cast %16 : vector<1x128x128xf32> to vector<128x128xf32>
    %cst_10 = arith.constant dense<0.000000e+00> : vector<128xf32>
    %18 = vector.multi_reduction <add>, %15, %cst_10 [0] : vector<16x128xf32> to vector<128xf32>
    %19 = vector.shape_cast %18 : vector<128xf32> to vector<1x128xf32>
    %20 = arith.mulf %15, %15 : vector<16x128xf32>
    %cst_11 = arith.constant dense<0.000000e+00> : vector<128xf32>
    %21 = vector.multi_reduction <add>, %20, %cst_11 [0] : vector<16x128xf32> to vector<128xf32>
    %22 = vector.shape_cast %21 : vector<128xf32> to vector<1x128xf32>
    %23 = tpu.concatenate %19, %22 in 0 : vector<1x128xf32>, vector<1x128xf32> -> vector<2x128xf32>
    %cst_12 = arith.constant dense<0.000000e+00> : vector<2x128xf32>
    %24 = tpu.matmul %23, %17, %cst_12 {dimension_numbers = #tpu.dot_dimension_numbers<[1], [0], [0], [1], [0, 0, 1, 1], [], []>, precision = #tpu.contract_precision<fp32>} : vector<2x128xf32>, vector<128x128xf32>, vector<2x128xf32> -> vector<2x128xf32>
    %cst_13 = arith.constant 3.906250e-03 : f32
    %25 = vector.broadcast %cst_13 : f32 to vector<2x128xf32>
    %26 = arith.mulf %24, %25 : vector<2x128xf32>
    %27 = vector.extract_strided_slice %26 {offsets = [0, 0], sizes = [1, 128], strides = [1, 1]} : vector<2x128xf32> to vector<1x128xf32>
    %28 = vector.extract_strided_slice %26 {offsets = [1, 0], sizes = [1, 128], strides = [1, 1]} : vector<2x128xf32> to vector<1x128xf32>
    %29 = arith.mulf %27, %27 : vector<1x128xf32>
    %30 = arith.subf %28, %29 : vector<1x128xf32>
    %cst_14 = arith.constant 0.000000e+00 : f32
    %31 = vector.broadcast %cst_14 : f32 to vector<1x128xf32>
    %32 = arith.maximumf %30, %31 : vector<1x128xf32>
    %33 = vector.broadcast %27 : vector<1x128xf32> to vector<16x128xf32>
    %34 = arith.subf %15, %33 : vector<16x128xf32>
    %cst_15 = arith.constant 9.99999974E-6 : f32
    %35 = vector.broadcast %cst_15 : f32 to vector<1x128xf32>
    %36 = arith.addf %32, %35 : vector<1x128xf32>
    %37 = math.rsqrt %36 : vector<1x128xf32>
    %38 = vector.broadcast %37 : vector<1x128xf32> to vector<16x128xf32>
    %39 = arith.mulf %34, %38 : vector<16x128xf32>
    %cst_16 = arith.constant 0.000000e+00 : f32
    %40 = vector.broadcast %cst_16 : f32 to vector<16x128xf32>
    %41 = arith.maximumf %39, %40 : vector<16x128xf32>
    %42 = arith.truncf %41 : vector<16x128xf32> to vector<16x128xbf16>
    %c112 = arith.constant 112 : index
    %c0_17 = arith.constant 0 : index
    %43 = vector.load %arg2[%c112, %c0_17] : memref<504x16xbf16, #tpu.memory_space<vmem>>, vector<32x16xbf16>
    %cst_18 = arith.constant dense<0.000000e+00> : vector<32x128xf32>
    %44 = tpu.matmul %43, %42, %cst_18 {dimension_numbers = #tpu.dot_dimension_numbers<[1], [0], [0], [1], [0, 0, 1, 1], [], []>} : vector<32x16xbf16>, vector<16x128xbf16>, vector<32x128xf32> -> vector<32x128xf32>
    %45 = vector.extract_strided_slice %44 {offsets = [0, 0], sizes = [8, 128], strides = [1, 1]} : vector<32x128xf32> to vector<8x128xf32>
    %46 = vector.extract_strided_slice %44 {offsets = [8, 0], sizes = [8, 128], strides = [1, 1]} : vector<32x128xf32> to vector<8x128xf32>
    %47 = vector.extract_strided_slice %44 {offsets = [16, 0], sizes = [8, 128], strides = [1, 1]} : vector<32x128xf32> to vector<8x128xf32>
    %48 = vector.extract_strided_slice %44 {offsets = [24, 0], sizes = [8, 128], strides = [1, 1]} : vector<32x128xf32> to vector<8x128xf32>
    %49 = tpu.concatenate %45, %46, %47, %48 in 1 : vector<8x128xf32>, vector<8x128xf32>, vector<8x128xf32>, vector<8x128xf32> -> vector<8x512xf32>
    %c896 = arith.constant 896 : index
    %c0_19 = arith.constant 0 : index
    %50 = vector.load %arg3[%c896, %c0_19] : memref<5632x128xbf16, #tpu.memory_space<vmem>>, vector<512x128xbf16>
    %51 = arith.truncf %49 : vector<8x512xf32> to vector<8x512xbf16>
    %cst_20 = arith.constant dense<0.000000e+00> : vector<8x128xf32>
    %52 = tpu.matmul %51, %50, %cst_20 {dimension_numbers = #tpu.dot_dimension_numbers<[1], [0], [0], [1], [0, 0, 1, 1], [], []>} : vector<8x512xbf16>, vector<512x128xbf16>, vector<8x128xf32> -> vector<8x128xf32>
    %c1 = arith.constant 1 : index
    %c0_21 = arith.constant 0 : index
    %c0_22 = arith.constant 0 : index
    %53 = vector.load %arg4[%c1, %c0_21, %c0_22] : memref<3x128x128xf32, #tpu.memory_space<vmem>>, vector<1x128x128xf32>
    %54 = vector.shape_cast %53 : vector<1x128x128xf32> to vector<128x128xf32>
    %cst_23 = arith.constant dense<0.000000e+00> : vector<128xf32>
    %55 = vector.multi_reduction <add>, %52, %cst_23 [0] : vector<8x128xf32> to vector<128xf32>
    %56 = vector.shape_cast %55 : vector<128xf32> to vector<1x128xf32>
    %57 = arith.mulf %52, %52 : vector<8x128xf32>
    %cst_24 = arith.constant dense<0.000000e+00> : vector<128xf32>
    %58 = vector.multi_reduction <add>, %57, %cst_24 [0] : vector<8x128xf32> to vector<128xf32>
    %59 = vector.shape_cast %58 : vector<128xf32> to vector<1x128xf32>
    %60 = tpu.concatenate %56, %59 in 0 : vector<1x128xf32>, vector<1x128xf32> -> vector<2x128xf32>
    %cst_25 = arith.constant dense<0.000000e+00> : vector<2x128xf32>
    %61 = tpu.matmul %60, %54, %cst_25 {dimension_numbers = #tpu.dot_dimension_numbers<[1], [0], [0], [1], [0, 0, 1, 1], [], []>, precision = #tpu.contract_precision<fp32>} : vector<2x128xf32>, vector<128x128xf32>, vector<2x128xf32> -> vector<2x128xf32>
    %cst_26 = arith.constant 1.562500e-02 : f32
    %62 = vector.broadcast %cst_26 : f32 to vector<2x128xf32>
    %63 = arith.mulf %61, %62 : vector<2x128xf32>
    %64 = vector.extract_strided_slice %63 {offsets = [0, 0], sizes = [1, 128], strides = [1, 1]} : vector<2x128xf32> to vector<1x128xf32>
    %65 = vector.extract_strided_slice %63 {offsets = [1, 0], sizes = [1, 128], strides = [1, 1]} : vector<2x128xf32> to vector<1x128xf32>
    %66 = arith.mulf %64, %64 : vector<1x128xf32>
    %67 = arith.subf %65, %66 : vector<1x128xf32>
    %cst_27 = arith.constant 0.000000e+00 : f32
    %68 = vector.broadcast %cst_27 : f32 to vector<1x128xf32>
    %69 = arith.maximumf %67, %68 : vector<1x128xf32>
    %70 = vector.broadcast %64 : vector<1x128xf32> to vector<8x128xf32>
    %71 = arith.subf %52, %70 : vector<8x128xf32>
    %cst_28 = arith.constant 9.99999974E-6 : f32
    %72 = vector.broadcast %cst_28 : f32 to vector<1x128xf32>
    %73 = arith.addf %69, %72 : vector<1x128xf32>
    %74 = math.rsqrt %73 : vector<1x128xf32>
    %75 = vector.broadcast %74 : vector<1x128xf32> to vector<8x128xf32>
    %76 = arith.mulf %71, %75 : vector<8x128xf32>
    %cst_29 = arith.constant 0.000000e+00 : f32
    %77 = vector.broadcast %cst_29 : f32 to vector<8x128xf32>
    %78 = arith.maximumf %76, %77 : vector<8x128xf32>
    %79 = arith.truncf %78 : vector<8x128xf32> to vector<8x128xbf16>
    %c144 = arith.constant 144 : index
    %c0_30 = arith.constant 0 : index
    %80 = vector.load %arg2[%c144, %c0_30] : memref<504x16xbf16, #tpu.memory_space<vmem>>, vector<32x16xbf16>
    %81 = vector.extract_strided_slice %80 {offsets = [0, 0], sizes = [32, 8], strides = [1, 1]} : vector<32x16xbf16> to vector<32x8xbf16>
    %cst_31 = arith.constant dense<0.000000e+00> : vector<32x128xf32>
    %82 = tpu.matmul %81, %79, %cst_31 {dimension_numbers = #tpu.dot_dimension_numbers<[1], [0], [0], [1], [0, 0, 1, 1], [], []>} : vector<32x8xbf16>, vector<8x128xbf16>, vector<32x128xf32> -> vector<32x128xf32>
    %83 = vector.extract_strided_slice %82 {offsets = [0, 0], sizes = [4, 128], strides = [1, 1]} : vector<32x128xf32> to vector<4x128xf32>
    %84 = vector.extract_strided_slice %82 {offsets = [8, 0], sizes = [4, 128], strides = [1, 1]} : vector<32x128xf32> to vector<4x128xf32>
    %85 = vector.extract_strided_slice %82 {offsets = [16, 0], sizes = [4, 128], strides = [1, 1]} : vector<32x128xf32> to vector<4x128xf32>
    %86 = vector.extract_strided_slice %82 {offsets = [24, 0], sizes = [4, 128], strides = [1, 1]} : vector<32x128xf32> to vector<4x128xf32>
    %87 = tpu.concatenate %83, %84, %85, %86 in 1 : vector<4x128xf32>, vector<4x128xf32>, vector<4x128xf32>, vector<4x128xf32> -> vector<4x512xf32>
    %c1408 = arith.constant 1408 : index
    %c0_32 = arith.constant 0 : index
    %88 = vector.load %arg3[%c1408, %c0_32] : memref<5632x128xbf16, #tpu.memory_space<vmem>>, vector<512x128xbf16>
    %89 = arith.truncf %87 : vector<4x512xf32> to vector<4x512xbf16>
    %cst_33 = arith.constant dense<0.000000e+00> : vector<4x128xf32>
    %90 = tpu.matmul %89, %88, %cst_33 {dimension_numbers = #tpu.dot_dimension_numbers<[1], [0], [0], [1], [0, 0, 1, 1], [], []>} : vector<4x512xbf16>, vector<512x128xbf16>, vector<4x128xf32> -> vector<4x128xf32>
    %c2 = arith.constant 2 : index
    %c0_34 = arith.constant 0 : index
    %c0_35 = arith.constant 0 : index
    %91 = vector.load %arg4[%c2, %c0_34, %c0_35] : memref<3x128x128xf32, #tpu.memory_space<vmem>>, vector<1x128x128xf32>
    %92 = vector.shape_cast %91 : vector<1x128x128xf32> to vector<128x128xf32>
    %cst_36 = arith.constant dense<0.000000e+00> : vector<128xf32>
    %93 = vector.multi_reduction <add>, %90, %cst_36 [0] : vector<4x128xf32> to vector<128xf32>
    %94 = vector.shape_cast %93 : vector<128xf32> to vector<1x128xf32>
    %95 = arith.mulf %90, %90 : vector<4x128xf32>
    %cst_37 = arith.constant dense<0.000000e+00> : vector<128xf32>
    %96 = vector.multi_reduction <add>, %95, %cst_37 [0] : vector<4x128xf32> to vector<128xf32>
    %97 = vector.shape_cast %96 : vector<128xf32> to vector<1x128xf32>
    %98 = tpu.concatenate %94, %97 in 0 : vector<1x128xf32>, vector<1x128xf32> -> vector<2x128xf32>
    %cst_38 = arith.constant dense<0.000000e+00> : vector<2x128xf32>
    %99 = tpu.matmul %98, %92, %cst_38 {dimension_numbers = #tpu.dot_dimension_numbers<[1], [0], [0], [1], [0, 0, 1, 1], [], []>, precision = #tpu.contract_precision<fp32>} : vector<2x128xf32>, vector<128x128xf32>, vector<2x128xf32> -> vector<2x128xf32>
    %cst_39 = arith.constant 6.250000e-02 : f32
    %100 = vector.broadcast %cst_39 : f32 to vector<2x128xf32>
    %101 = arith.mulf %99, %100 : vector<2x128xf32>
    %102 = vector.extract_strided_slice %101 {offsets = [0, 0], sizes = [1, 128], strides = [1, 1]} : vector<2x128xf32> to vector<1x128xf32>
    %103 = vector.extract_strided_slice %101 {offsets = [1, 0], sizes = [1, 128], strides = [1, 1]} : vector<2x128xf32> to vector<1x128xf32>
    %104 = arith.mulf %102, %102 : vector<1x128xf32>
    %105 = arith.subf %103, %104 : vector<1x128xf32>
    %cst_40 = arith.constant 0.000000e+00 : f32
    %106 = vector.broadcast %cst_40 : f32 to vector<1x128xf32>
    %107 = arith.maximumf %105, %106 : vector<1x128xf32>
    %108 = vector.broadcast %102 : vector<1x128xf32> to vector<4x128xf32>
    %109 = arith.subf %90, %108 : vector<4x128xf32>
    %cst_41 = arith.constant 9.99999974E-6 : f32
    %110 = vector.broadcast %cst_41 : f32 to vector<1x128xf32>
    %111 = arith.addf %107, %110 : vector<1x128xf32>
    %112 = math.rsqrt %111 : vector<1x128xf32>
    %113 = vector.broadcast %112 : vector<1x128xf32> to vector<4x128xf32>
    %114 = arith.mulf %109, %113 : vector<4x128xf32>
    %cst_42 = arith.constant 0.000000e+00 : f32
    %115 = vector.broadcast %cst_42 : f32 to vector<4x128xf32>
    %116 = arith.maximumf %114, %115 : vector<4x128xf32>
    %117 = arith.truncf %116 : vector<4x128xf32> to vector<4x128xbf16>
    %c176 = arith.constant 176 : index
    %c0_43 = arith.constant 0 : index
    %118 = vector.load %arg2[%c176, %c0_43] : memref<504x16xbf16, #tpu.memory_space<vmem>>, vector<24x16xbf16>
    %119 = vector.extract_strided_slice %118 {offsets = [0, 0], sizes = [24, 4], strides = [1, 1]} : vector<24x16xbf16> to vector<24x4xbf16>
    %cst_44 = arith.constant dense<0.000000e+00> : vector<24x128xf32>
    %120 = tpu.matmul %119, %117, %cst_44 {dimension_numbers = #tpu.dot_dimension_numbers<[1], [0], [0], [1], [0, 0, 1, 1], [], []>} : vector<24x4xbf16>, vector<4x128xbf16>, vector<24x128xf32> -> vector<24x128xf32>
    %121 = vector.extract_strided_slice %120 {offsets = [0, 0], sizes = [4, 128], strides = [1, 1]} : vector<24x128xf32> to vector<4x128xf32>
    %122 = vector.extract_strided_slice %120 {offsets = [8, 0], sizes = [4, 128], strides = [1, 1]} : vector<24x128xf32> to vector<4x128xf32>
    %123 = vector.extract_strided_slice %120 {offsets = [16, 0], sizes = [4, 128], strides = [1, 1]} : vector<24x128xf32> to vector<4x128xf32>
    %124 = tpu.concatenate %121, %122, %123 in 1 : vector<4x128xf32>, vector<4x128xf32>, vector<4x128xf32> -> vector<4x384xf32>
    %c1920 = arith.constant 1920 : index
    %c0_45 = arith.constant 0 : index
    %125 = vector.load %arg3[%c1920, %c0_45] : memref<5632x128xbf16, #tpu.memory_space<vmem>>, vector<384x128xbf16>
    %126 = arith.truncf %124 : vector<4x384xf32> to vector<4x384xbf16>
    %cst_46 = arith.constant dense<0.000000e+00> : vector<4x128xf32>
    %127 = tpu.matmul %126, %125, %cst_46 {dimension_numbers = #tpu.dot_dimension_numbers<[1], [0], [0], [1], [0, 0, 1, 1], [], []>} : vector<4x384xbf16>, vector<384x128xbf16>, vector<4x128xf32> -> vector<4x128xf32>
    %c2_47 = arith.constant 2 : index
    %c0_48 = arith.constant 0 : index
    %c0_49 = arith.constant 0 : index
    %128 = vector.load %arg4[%c2_47, %c0_48, %c0_49] : memref<3x128x128xf32, #tpu.memory_space<vmem>>, vector<1x128x128xf32>
    %129 = vector.shape_cast %128 : vector<1x128x128xf32> to vector<128x128xf32>
    %cst_50 = arith.constant dense<0.000000e+00> : vector<128xf32>
    %130 = vector.multi_reduction <add>, %127, %cst_50 [0] : vector<4x128xf32> to vector<128xf32>
    %131 = vector.shape_cast %130 : vector<128xf32> to vector<1x128xf32>
    %132 = arith.mulf %127, %127 : vector<4x128xf32>
    %cst_51 = arith.constant dense<0.000000e+00> : vector<128xf32>
    %133 = vector.multi_reduction <add>, %132, %cst_51 [0] : vector<4x128xf32> to vector<128xf32>
    %134 = vector.shape_cast %133 : vector<128xf32> to vector<1x128xf32>
    %135 = tpu.concatenate %131, %134 in 0 : vector<1x128xf32>, vector<1x128xf32> -> vector<2x128xf32>
    %cst_52 = arith.constant dense<0.000000e+00> : vector<2x128xf32>
    %136 = tpu.matmul %135, %129, %cst_52 {dimension_numbers = #tpu.dot_dimension_numbers<[1], [0], [0], [1], [0, 0, 1, 1], [], []>, precision = #tpu.contract_precision<fp32>} : vector<2x128xf32>, vector<128x128xf32>, vector<2x128xf32> -> vector<2x128xf32>
    %cst_53 = arith.constant 6.250000e-02 : f32
    %137 = vector.broadcast %cst_53 : f32 to vector<2x128xf32>
    %138 = arith.mulf %136, %137 : vector<2x128xf32>
    %139 = vector.extract_strided_slice %138 {offsets = [0, 0], sizes = [1, 128], strides = [1, 1]} : vector<2x128xf32> to vector<1x128xf32>
    %140 = vector.extract_strided_slice %138 {offsets = [1, 0], sizes = [1, 128], strides = [1, 1]} : vector<2x128xf32> to vector<1x128xf32>
    %141 = arith.mulf %139, %139 : vector<1x128xf32>
    %142 = arith.subf %140, %141 : vector<1x128xf32>
    %cst_54 = arith.constant 0.000000e+00 : f32
    %143 = vector.broadcast %cst_54 : f32 to vector<1x128xf32>
    %144 = arith.maximumf %142, %143 : vector<1x128xf32>
    %145 = vector.broadcast %139 : vector<1x128xf32> to vector<4x128xf32>
    %146 = arith.subf %127, %145 : vector<4x128xf32>
    %cst_55 = arith.constant 9.99999974E-6 : f32
    %147 = vector.broadcast %cst_55 : f32 to vector<1x128xf32>
    %148 = arith.addf %144, %147 : vector<1x128xf32>
    %149 = math.rsqrt %148 : vector<1x128xf32>
    %150 = vector.broadcast %149 : vector<1x128xf32> to vector<4x128xf32>
    %151 = arith.mulf %146, %150 : vector<4x128xf32>
    %cst_56 = arith.constant 0.000000e+00 : f32
    %152 = vector.broadcast %cst_56 : f32 to vector<4x128xf32>
    %153 = arith.maximumf %151, %152 : vector<4x128xf32>
    %154 = arith.truncf %153 : vector<4x128xf32> to vector<4x128xbf16>
    %c200 = arith.constant 200 : index
    %c0_57 = arith.constant 0 : index
    %155 = vector.load %arg2[%c200, %c0_57] : memref<504x16xbf16, #tpu.memory_space<vmem>>, vector<24x16xbf16>
    %156 = vector.extract_strided_slice %155 {offsets = [0, 0], sizes = [24, 4], strides = [1, 1]} : vector<24x16xbf16> to vector<24x4xbf16>
    %cst_58 = arith.constant dense<0.000000e+00> : vector<24x128xf32>
    %157 = tpu.matmul %156, %154, %cst_58 {dimension_numbers = #tpu.dot_dimension_numbers<[1], [0], [0], [1], [0, 0, 1, 1], [], []>} : vector<24x4xbf16>, vector<4x128xbf16>, vector<24x128xf32> -> vector<24x128xf32>
    %158 = vector.extract_strided_slice %157 {offsets = [0, 0], sizes = [4, 128], strides = [1, 1]} : vector<24x128xf32> to vector<4x128xf32>
    %159 = vector.extract_strided_slice %157 {offsets = [8, 0], sizes = [4, 128], strides = [1, 1]} : vector<24x128xf32> to vector<4x128xf32>
    %160 = vector.extract_strided_slice %157 {offsets = [16, 0], sizes = [4, 128], strides = [1, 1]} : vector<24x128xf32> to vector<4x128xf32>
    %161 = tpu.concatenate %158, %159, %160 in 1 : vector<4x128xf32>, vector<4x128xf32>, vector<4x128xf32> -> vector<4x384xf32>
    %c2304 = arith.constant 2304 : index
    %c0_59 = arith.constant 0 : index
    %162 = vector.load %arg3[%c2304, %c0_59] : memref<5632x128xbf16, #tpu.memory_space<vmem>>, vector<384x128xbf16>
    %163 = arith.truncf %161 : vector<4x384xf32> to vector<4x384xbf16>
    %cst_60 = arith.constant dense<0.000000e+00> : vector<4x128xf32>
    %164 = tpu.matmul %163, %162, %cst_60 {dimension_numbers = #tpu.dot_dimension_numbers<[1], [0], [0], [1], [0, 0, 1, 1], [], []>} : vector<4x384xbf16>, vector<384x128xbf16>, vector<4x128xf32> -> vector<4x128xf32>
    %c2_61 = arith.constant 2 : index
    %c0_62 = arith.constant 0 : index
    %c0_63 = arith.constant 0 : index
    %165 = vector.load %arg4[%c2_61, %c0_62, %c0_63] : memref<3x128x128xf32, #tpu.memory_space<vmem>>, vector<1x128x128xf32>
    %166 = vector.shape_cast %165 : vector<1x128x128xf32> to vector<128x128xf32>
    %cst_64 = arith.constant dense<0.000000e+00> : vector<128xf32>
    %167 = vector.multi_reduction <add>, %164, %cst_64 [0] : vector<4x128xf32> to vector<128xf32>
    %168 = vector.shape_cast %167 : vector<128xf32> to vector<1x128xf32>
    %169 = arith.mulf %164, %164 : vector<4x128xf32>
    %cst_65 = arith.constant dense<0.000000e+00> : vector<128xf32>
    %170 = vector.multi_reduction <add>, %169, %cst_65 [0] : vector<4x128xf32> to vector<128xf32>
    %171 = vector.shape_cast %170 : vector<128xf32> to vector<1x128xf32>
    %172 = tpu.concatenate %168, %171 in 0 : vector<1x128xf32>, vector<1x128xf32> -> vector<2x128xf32>
    %cst_66 = arith.constant dense<0.000000e+00> : vector<2x128xf32>
    %173 = tpu.matmul %172, %166, %cst_66 {dimension_numbers = #tpu.dot_dimension_numbers<[1], [0], [0], [1], [0, 0, 1, 1], [], []>, precision = #tpu.contract_precision<fp32>} : vector<2x128xf32>, vector<128x128xf32>, vector<2x128xf32> -> vector<2x128xf32>
    %cst_67 = arith.constant 6.250000e-02 : f32
    %174 = vector.broadcast %cst_67 : f32 to vector<2x128xf32>
    %175 = arith.mulf %173, %174 : vector<2x128xf32>
    %176 = vector.extract_strided_slice %175 {offsets = [0, 0], sizes = [1, 128], strides = [1, 1]} : vector<2x128xf32> to vector<1x128xf32>
    %177 = vector.extract_strided_slice %175 {offsets = [1, 0], sizes = [1, 128], strides = [1, 1]} : vector<2x128xf32> to vector<1x128xf32>
    %178 = arith.mulf %176, %176 : vector<1x128xf32>
    %179 = arith.subf %177, %178 : vector<1x128xf32>
    %cst_68 = arith.constant 0.000000e+00 : f32
    %180 = vector.broadcast %cst_68 : f32 to vector<1x128xf32>
    %181 = arith.maximumf %179, %180 : vector<1x128xf32>
    %182 = vector.broadcast %176 : vector<1x128xf32> to vector<4x128xf32>
    %183 = arith.subf %164, %182 : vector<4x128xf32>
    %cst_69 = arith.constant 9.99999974E-6 : f32
    %184 = vector.broadcast %cst_69 : f32 to vector<1x128xf32>
    %185 = arith.addf %181, %184 : vector<1x128xf32>
    %186 = math.rsqrt %185 : vector<1x128xf32>
    %187 = vector.broadcast %186 : vector<1x128xf32> to vector<4x128xf32>
    %188 = arith.mulf %183, %187 : vector<4x128xf32>
    %189 = arith.addf %188, %116 : vector<4x128xf32>
    %190 = arith.truncf %189 : vector<4x128xf32> to vector<4x128xbf16>
    %c224 = arith.constant 224 : index
    %c0_70 = arith.constant 0 : index
    %191 = vector.load %arg2[%c224, %c0_70] : memref<504x16xbf16, #tpu.memory_space<vmem>>, vector<24x16xbf16>
    %192 = vector.extract_strided_slice %191 {offsets = [0, 0], sizes = [24, 4], strides = [1, 1]} : vector<24x16xbf16> to vector<24x4xbf16>
    %cst_71 = arith.constant dense<0.000000e+00> : vector<24x128xf32>
    %193 = tpu.matmul %192, %190, %cst_71 {dimension_numbers = #tpu.dot_dimension_numbers<[1], [0], [0], [1], [0, 0, 1, 1], [], []>} : vector<24x4xbf16>, vector<4x128xbf16>, vector<24x128xf32> -> vector<24x128xf32>
    %194 = vector.extract_strided_slice %193 {offsets = [0, 0], sizes = [4, 128], strides = [1, 1]} : vector<24x128xf32> to vector<4x128xf32>
    %195 = vector.extract_strided_slice %193 {offsets = [8, 0], sizes = [4, 128], strides = [1, 1]} : vector<24x128xf32> to vector<4x128xf32>
    %196 = vector.extract_strided_slice %193 {offsets = [16, 0], sizes = [4, 128], strides = [1, 1]} : vector<24x128xf32> to vector<4x128xf32>
    %197 = tpu.concatenate %194, %195, %196 in 1 : vector<4x128xf32>, vector<4x128xf32>, vector<4x128xf32> -> vector<4x384xf32>
    %c2688 = arith.constant 2688 : index
    %c0_72 = arith.constant 0 : index
    %198 = vector.load %arg3[%c2688, %c0_72] : memref<5632x128xbf16, #tpu.memory_space<vmem>>, vector<384x128xbf16>
    %199 = arith.truncf %197 : vector<4x384xf32> to vector<4x384xbf16>
    %cst_73 = arith.constant dense<0.000000e+00> : vector<4x128xf32>
    %200 = tpu.matmul %199, %198, %cst_73 {dimension_numbers = #tpu.dot_dimension_numbers<[1], [0], [0], [1], [0, 0, 1, 1], [], []>} : vector<4x384xbf16>, vector<384x128xbf16>, vector<4x128xf32> -> vector<4x128xf32>
    %c2_74 = arith.constant 2 : index
    %c0_75 = arith.constant 0 : index
    %c0_76 = arith.constant 0 : index
    %201 = vector.load %arg4[%c2_74, %c0_75, %c0_76] : memref<3x128x128xf32, #tpu.memory_space<vmem>>, vector<1x128x128xf32>
    %202 = vector.shape_cast %201 : vector<1x128x128xf32> to vector<128x128xf32>
    %cst_77 = arith.constant dense<0.000000e+00> : vector<128xf32>
    %203 = vector.multi_reduction <add>, %200, %cst_77 [0] : vector<4x128xf32> to vector<128xf32>
    %204 = vector.shape_cast %203 : vector<128xf32> to vector<1x128xf32>
    %205 = arith.mulf %200, %200 : vector<4x128xf32>
    %cst_78 = arith.constant dense<0.000000e+00> : vector<128xf32>
    %206 = vector.multi_reduction <add>, %205, %cst_78 [0] : vector<4x128xf32> to vector<128xf32>
    %207 = vector.shape_cast %206 : vector<128xf32> to vector<1x128xf32>
    %208 = tpu.concatenate %204, %207 in 0 : vector<1x128xf32>, vector<1x128xf32> -> vector<2x128xf32>
    %cst_79 = arith.constant dense<0.000000e+00> : vector<2x128xf32>
    %209 = tpu.matmul %208, %202, %cst_79 {dimension_numbers = #tpu.dot_dimension_numbers<[1], [0], [0], [1], [0, 0, 1, 1], [], []>, precision = #tpu.contract_precision<fp32>} : vector<2x128xf32>, vector<128x128xf32>, vector<2x128xf32> -> vector<2x128xf32>
    %cst_80 = arith.constant 6.250000e-02 : f32
    %210 = vector.broadcast %cst_80 : f32 to vector<2x128xf32>
    %211 = arith.mulf %209, %210 : vector<2x128xf32>
    %212 = vector.extract_strided_slice %211 {offsets = [0, 0], sizes = [1, 128], strides = [1, 1]} : vector<2x128xf32> to vector<1x128xf32>
    %213 = vector.extract_strided_slice %211 {offsets = [1, 0], sizes = [1, 128], strides = [1, 1]} : vector<2x128xf32> to vector<1x128xf32>
    %214 = arith.mulf %212, %212 : vector<1x128xf32>
    %215 = arith.subf %213, %214 : vector<1x128xf32>
    %cst_81 = arith.constant 0.000000e+00 : f32
    %216 = vector.broadcast %cst_81 : f32 to vector<1x128xf32>
    %217 = arith.maximumf %215, %216 : vector<1x128xf32>
    %218 = vector.broadcast %212 : vector<1x128xf32> to vector<4x128xf32>
    %219 = arith.subf %200, %218 : vector<4x128xf32>
    %cst_82 = arith.constant 9.99999974E-6 : f32
    %220 = vector.broadcast %cst_82 : f32 to vector<1x128xf32>
    %221 = arith.addf %217, %220 : vector<1x128xf32>
    %222 = math.rsqrt %221 : vector<1x128xf32>
    %223 = vector.broadcast %222 : vector<1x128xf32> to vector<4x128xf32>
    %224 = arith.mulf %219, %223 : vector<4x128xf32>
    %cst_83 = arith.constant 0.000000e+00 : f32
    %225 = vector.broadcast %cst_83 : f32 to vector<4x128xf32>
    %226 = arith.maximumf %224, %225 : vector<4x128xf32>
    %227 = arith.truncf %226 : vector<4x128xf32> to vector<4x128xbf16>
    %c248 = arith.constant 248 : index
    %c0_84 = arith.constant 0 : index
    %228 = vector.load %arg2[%c248, %c0_84] : memref<504x16xbf16, #tpu.memory_space<vmem>>, vector<24x16xbf16>
    %229 = vector.extract_strided_slice %228 {offsets = [0, 0], sizes = [24, 4], strides = [1, 1]} : vector<24x16xbf16> to vector<24x4xbf16>
    %cst_85 = arith.constant dense<0.000000e+00> : vector<24x128xf32>
    %230 = tpu.matmul %229, %227, %cst_85 {dimension_numbers = #tpu.dot_dimension_numbers<[1], [0], [0], [1], [0, 0, 1, 1], [], []>} : vector<24x4xbf16>, vector<4x128xbf16>, vector<24x128xf32> -> vector<24x128xf32>
    %231 = vector.extract_strided_slice %230 {offsets = [0, 0], sizes = [4, 128], strides = [1, 1]} : vector<24x128xf32> to vector<4x128xf32>
    %232 = vector.extract_strided_slice %230 {offsets = [8, 0], sizes = [4, 128], strides = [1, 1]} : vector<24x128xf32> to vector<4x128xf32>
    %233 = vector.extract_strided_slice %230 {offsets = [16, 0], sizes = [4, 128], strides = [1, 1]} : vector<24x128xf32> to vector<4x128xf32>
    %234 = tpu.concatenate %231, %232, %233 in 1 : vector<4x128xf32>, vector<4x128xf32>, vector<4x128xf32> -> vector<4x384xf32>
    %c3072 = arith.constant 3072 : index
    %c0_86 = arith.constant 0 : index
    %235 = vector.load %arg3[%c3072, %c0_86] : memref<5632x128xbf16, #tpu.memory_space<vmem>>, vector<384x128xbf16>
    %236 = arith.truncf %234 : vector<4x384xf32> to vector<4x384xbf16>
    %cst_87 = arith.constant dense<0.000000e+00> : vector<4x128xf32>
    %237 = tpu.matmul %236, %235, %cst_87 {dimension_numbers = #tpu.dot_dimension_numbers<[1], [0], [0], [1], [0, 0, 1, 1], [], []>} : vector<4x384xbf16>, vector<384x128xbf16>, vector<4x128xf32> -> vector<4x128xf32>
    %c2_88 = arith.constant 2 : index
    %c0_89 = arith.constant 0 : index
    %c0_90 = arith.constant 0 : index
    %238 = vector.load %arg4[%c2_88, %c0_89, %c0_90] : memref<3x128x128xf32, #tpu.memory_space<vmem>>, vector<1x128x128xf32>
    %239 = vector.shape_cast %238 : vector<1x128x128xf32> to vector<128x128xf32>
    %cst_91 = arith.constant dense<0.000000e+00> : vector<128xf32>
    %240 = vector.multi_reduction <add>, %237, %cst_91 [0] : vector<4x128xf32> to vector<128xf32>
    %241 = vector.shape_cast %240 : vector<128xf32> to vector<1x128xf32>
    %242 = arith.mulf %237, %237 : vector<4x128xf32>
    %cst_92 = arith.constant dense<0.000000e+00> : vector<128xf32>
    %243 = vector.multi_reduction <add>, %242, %cst_92 [0] : vector<4x128xf32> to vector<128xf32>
    %244 = vector.shape_cast %243 : vector<128xf32> to vector<1x128xf32>
    %245 = tpu.concatenate %241, %244 in 0 : vector<1x128xf32>, vector<1x128xf32> -> vector<2x128xf32>
    %cst_93 = arith.constant dense<0.000000e+00> : vector<2x128xf32>
    %246 = tpu.matmul %245, %239, %cst_93 {dimension_numbers = #tpu.dot_dimension_numbers<[1], [0], [0], [1], [0, 0, 1, 1], [], []>, precision = #tpu.contract_precision<fp32>} : vector<2x128xf32>, vector<128x128xf32>, vector<2x128xf32> -> vector<2x128xf32>
    %cst_94 = arith.constant 6.250000e-02 : f32
    %247 = vector.broadcast %cst_94 : f32 to vector<2x128xf32>
    %248 = arith.mulf %246, %247 : vector<2x128xf32>
    %249 = vector.extract_strided_slice %248 {offsets = [0, 0], sizes = [1, 128], strides = [1, 1]} : vector<2x128xf32> to vector<1x128xf32>
    %250 = vector.extract_strided_slice %248 {offsets = [1, 0], sizes = [1, 128], strides = [1, 1]} : vector<2x128xf32> to vector<1x128xf32>
    %251 = arith.mulf %249, %249 : vector<1x128xf32>
    %252 = arith.subf %250, %251 : vector<1x128xf32>
    %cst_95 = arith.constant 0.000000e+00 : f32
    %253 = vector.broadcast %cst_95 : f32 to vector<1x128xf32>
    %254 = arith.maximumf %252, %253 : vector<1x128xf32>
    %255 = vector.broadcast %249 : vector<1x128xf32> to vector<4x128xf32>
    %256 = arith.subf %237, %255 : vector<4x128xf32>
    %cst_96 = arith.constant 9.99999974E-6 : f32
    %257 = vector.broadcast %cst_96 : f32 to vector<1x128xf32>
    %258 = arith.addf %254, %257 : vector<1x128xf32>
    %259 = math.rsqrt %258 : vector<1x128xf32>
    %260 = vector.broadcast %259 : vector<1x128xf32> to vector<4x128xf32>
    %261 = arith.mulf %256, %260 : vector<4x128xf32>
    %262 = arith.addf %261, %189 : vector<4x128xf32>
    %263 = arith.truncf %262 : vector<4x128xf32> to vector<4x128xbf16>
    %c272 = arith.constant 272 : index
    %c0_97 = arith.constant 0 : index
    %264 = vector.load %arg2[%c272, %c0_97] : memref<504x16xbf16, #tpu.memory_space<vmem>>, vector<40x16xbf16>
    %265 = vector.extract_strided_slice %264 {offsets = [0, 0], sizes = [40, 4], strides = [1, 1]} : vector<40x16xbf16> to vector<40x4xbf16>
    %cst_98 = arith.constant dense<0.000000e+00> : vector<40x128xf32>
    %266 = tpu.matmul %265, %263, %cst_98 {dimension_numbers = #tpu.dot_dimension_numbers<[1], [0], [0], [1], [0, 0, 1, 1], [], []>} : vector<40x4xbf16>, vector<4x128xbf16>, vector<40x128xf32> -> vector<40x128xf32>
    %267 = vector.extract_strided_slice %266 {offsets = [0, 0], sizes = [8, 128], strides = [1, 1]} : vector<40x128xf32> to vector<8x128xf32>
    %268 = vector.extract_strided_slice %266 {offsets = [8, 0], sizes = [8, 128], strides = [1, 1]} : vector<40x128xf32> to vector<8x128xf32>
    %269 = vector.extract_strided_slice %266 {offsets = [16, 0], sizes = [8, 128], strides = [1, 1]} : vector<40x128xf32> to vector<8x128xf32>
    %270 = vector.extract_strided_slice %266 {offsets = [24, 0], sizes = [8, 128], strides = [1, 1]} : vector<40x128xf32> to vector<8x128xf32>
    %271 = vector.extract_strided_slice %266 {offsets = [32, 0], sizes = [8, 128], strides = [1, 1]} : vector<40x128xf32> to vector<8x128xf32>
    %272 = tpu.concatenate %267, %268, %269, %270, %271 in 1 : vector<8x128xf32>, vector<8x128xf32>, vector<8x128xf32>, vector<8x128xf32>, vector<8x128xf32> -> vector<8x640xf32>
    %c3456 = arith.constant 3456 : index
    %c0_99 = arith.constant 0 : index
    %273 = vector.load %arg3[%c3456, %c0_99] : memref<5632x128xbf16, #tpu.memory_space<vmem>>, vector<640x128xbf16>
    %274 = arith.truncf %272 : vector<8x640xf32> to vector<8x640xbf16>
    %cst_100 = arith.constant dense<0.000000e+00> : vector<8x128xf32>
    %275 = tpu.matmul %274, %273, %cst_100 {dimension_numbers = #tpu.dot_dimension_numbers<[1], [0], [0], [1], [0, 0, 1, 1], [], []>} : vector<8x640xbf16>, vector<640x128xbf16>, vector<8x128xf32> -> vector<8x128xf32>
    %c1_101 = arith.constant 1 : index
    %c0_102 = arith.constant 0 : index
    %c0_103 = arith.constant 0 : index
    %276 = vector.load %arg4[%c1_101, %c0_102, %c0_103] : memref<3x128x128xf32, #tpu.memory_space<vmem>>, vector<1x128x128xf32>
    %277 = vector.shape_cast %276 : vector<1x128x128xf32> to vector<128x128xf32>
    %cst_104 = arith.constant dense<0.000000e+00> : vector<128xf32>
    %278 = vector.multi_reduction <add>, %275, %cst_104 [0] : vector<8x128xf32> to vector<128xf32>
    %279 = vector.shape_cast %278 : vector<128xf32> to vector<1x128xf32>
    %280 = arith.mulf %275, %275 : vector<8x128xf32>
    %cst_105 = arith.constant dense<0.000000e+00> : vector<128xf32>
    %281 = vector.multi_reduction <add>, %280, %cst_105 [0] : vector<8x128xf32> to vector<128xf32>
    %282 = vector.shape_cast %281 : vector<128xf32> to vector<1x128xf32>
    %283 = tpu.concatenate %279, %282 in 0 : vector<1x128xf32>, vector<1x128xf32> -> vector<2x128xf32>
    %cst_106 = arith.constant dense<0.000000e+00> : vector<2x128xf32>
    %284 = tpu.matmul %283, %277, %cst_106 {dimension_numbers = #tpu.dot_dimension_numbers<[1], [0], [0], [1], [0, 0, 1, 1], [], []>, precision = #tpu.contract_precision<fp32>} : vector<2x128xf32>, vector<128x128xf32>, vector<2x128xf32> -> vector<2x128xf32>
    %cst_107 = arith.constant 1.562500e-02 : f32
    %285 = vector.broadcast %cst_107 : f32 to vector<2x128xf32>
    %286 = arith.mulf %284, %285 : vector<2x128xf32>
    %287 = vector.extract_strided_slice %286 {offsets = [0, 0], sizes = [1, 128], strides = [1, 1]} : vector<2x128xf32> to vector<1x128xf32>
    %288 = vector.extract_strided_slice %286 {offsets = [1, 0], sizes = [1, 128], strides = [1, 1]} : vector<2x128xf32> to vector<1x128xf32>
    %289 = arith.mulf %287, %287 : vector<1x128xf32>
    %290 = arith.subf %288, %289 : vector<1x128xf32>
    %cst_108 = arith.constant 0.000000e+00 : f32
    %291 = vector.broadcast %cst_108 : f32 to vector<1x128xf32>
    %292 = arith.maximumf %290, %291 : vector<1x128xf32>
    %293 = vector.broadcast %287 : vector<1x128xf32> to vector<8x128xf32>
    %294 = arith.subf %275, %293 : vector<8x128xf32>
    %cst_109 = arith.constant 9.99999974E-6 : f32
    %295 = vector.broadcast %cst_109 : f32 to vector<1x128xf32>
    %296 = arith.addf %292, %295 : vector<1x128xf32>
    %297 = math.rsqrt %296 : vector<1x128xf32>
    %298 = vector.broadcast %297 : vector<1x128xf32> to vector<8x128xf32>
    %299 = arith.mulf %294, %298 : vector<8x128xf32>
    %cst_110 = arith.constant 0.000000e+00 : f32
    %300 = vector.broadcast %cst_110 : f32 to vector<8x128xf32>
    %301 = arith.maximumf %299, %300 : vector<8x128xf32>
    %302 = arith.truncf %301 : vector<8x128xf32> to vector<8x128xbf16>
    %c312 = arith.constant 312 : index
    %c0_111 = arith.constant 0 : index
    %303 = vector.load %arg2[%c312, %c0_111] : memref<504x16xbf16, #tpu.memory_space<vmem>>, vector<80x16xbf16>
    %304 = vector.extract_strided_slice %303 {offsets = [0, 0], sizes = [80, 8], strides = [1, 1]} : vector<80x16xbf16> to vector<80x8xbf16>
    %cst_112 = arith.constant dense<0.000000e+00> : vector<80x128xf32>
    %305 = tpu.matmul %304, %302, %cst_112 {dimension_numbers = #tpu.dot_dimension_numbers<[1], [0], [0], [1], [0, 0, 1, 1], [], []>} : vector<80x8xbf16>, vector<8x128xbf16>, vector<80x128xf32> -> vector<80x128xf32>
    %306 = vector.extract_strided_slice %305 {offsets = [0, 0], sizes = [16, 128], strides = [1, 1]} : vector<80x128xf32> to vector<16x128xf32>
    %307 = vector.extract_strided_slice %305 {offsets = [16, 0], sizes = [16, 128], strides = [1, 1]} : vector<80x128xf32> to vector<16x128xf32>
    %308 = vector.extract_strided_slice %305 {offsets = [32, 0], sizes = [16, 128], strides = [1, 1]} : vector<80x128xf32> to vector<16x128xf32>
    %309 = vector.extract_strided_slice %305 {offsets = [48, 0], sizes = [16, 128], strides = [1, 1]} : vector<80x128xf32> to vector<16x128xf32>
    %310 = vector.extract_strided_slice %305 {offsets = [64, 0], sizes = [16, 128], strides = [1, 1]} : vector<80x128xf32> to vector<16x128xf32>
    %311 = tpu.concatenate %306, %307, %308, %309, %310 in 1 : vector<16x128xf32>, vector<16x128xf32>, vector<16x128xf32>, vector<16x128xf32>, vector<16x128xf32> -> vector<16x640xf32>
    %c4096 = arith.constant 4096 : index
    %c0_113 = arith.constant 0 : index
    %312 = vector.load %arg3[%c4096, %c0_113] : memref<5632x128xbf16, #tpu.memory_space<vmem>>, vector<640x128xbf16>
    %313 = arith.truncf %311 : vector<16x640xf32> to vector<16x640xbf16>
    %cst_114 = arith.constant dense<0.000000e+00> : vector<16x128xf32>
    %314 = tpu.matmul %313, %312, %cst_114 {dimension_numbers = #tpu.dot_dimension_numbers<[1], [0], [0], [1], [0, 0, 1, 1], [], []>} : vector<16x640xbf16>, vector<640x128xbf16>, vector<16x128xf32> -> vector<16x128xf32>
    %c0_115 = arith.constant 0 : index
    %c0_116 = arith.constant 0 : index
    %c0_117 = arith.constant 0 : index
    %315 = vector.load %arg4[%c0_115, %c0_116, %c0_117] : memref<3x128x128xf32, #tpu.memory_space<vmem>>, vector<1x128x128xf32>
    %316 = vector.shape_cast %315 : vector<1x128x128xf32> to vector<128x128xf32>
    %cst_118 = arith.constant dense<0.000000e+00> : vector<128xf32>
    %317 = vector.multi_reduction <add>, %314, %cst_118 [0] : vector<16x128xf32> to vector<128xf32>
    %318 = vector.shape_cast %317 : vector<128xf32> to vector<1x128xf32>
    %319 = arith.mulf %314, %314 : vector<16x128xf32>
    %cst_119 = arith.constant dense<0.000000e+00> : vector<128xf32>
    %320 = vector.multi_reduction <add>, %319, %cst_119 [0] : vector<16x128xf32> to vector<128xf32>
    %321 = vector.shape_cast %320 : vector<128xf32> to vector<1x128xf32>
    %322 = tpu.concatenate %318, %321 in 0 : vector<1x128xf32>, vector<1x128xf32> -> vector<2x128xf32>
    %cst_120 = arith.constant dense<0.000000e+00> : vector<2x128xf32>
    %323 = tpu.matmul %322, %316, %cst_120 {dimension_numbers = #tpu.dot_dimension_numbers<[1], [0], [0], [1], [0, 0, 1, 1], [], []>, precision = #tpu.contract_precision<fp32>} : vector<2x128xf32>, vector<128x128xf32>, vector<2x128xf32> -> vector<2x128xf32>
    %cst_121 = arith.constant 3.906250e-03 : f32
    %324 = vector.broadcast %cst_121 : f32 to vector<2x128xf32>
    %325 = arith.mulf %323, %324 : vector<2x128xf32>
    %326 = vector.extract_strided_slice %325 {offsets = [0, 0], sizes = [1, 128], strides = [1, 1]} : vector<2x128xf32> to vector<1x128xf32>
    %327 = vector.extract_strided_slice %325 {offsets = [1, 0], sizes = [1, 128], strides = [1, 1]} : vector<2x128xf32> to vector<1x128xf32>
    %328 = arith.mulf %326, %326 : vector<1x128xf32>
    %329 = arith.subf %327, %328 : vector<1x128xf32>
    %cst_122 = arith.constant 0.000000e+00 : f32
    %330 = vector.broadcast %cst_122 : f32 to vector<1x128xf32>
    %331 = arith.maximumf %329, %330 : vector<1x128xf32>
    %332 = vector.broadcast %326 : vector<1x128xf32> to vector<16x128xf32>
    %333 = arith.subf %314, %332 : vector<16x128xf32>
    %cst_123 = arith.constant 9.99999974E-6 : f32
    %334 = vector.broadcast %cst_123 : f32 to vector<1x128xf32>
    %335 = arith.addf %331, %334 : vector<1x128xf32>
    %336 = math.rsqrt %335 : vector<1x128xf32>
    %337 = vector.broadcast %336 : vector<1x128xf32> to vector<16x128xf32>
    %338 = arith.mulf %333, %337 : vector<16x128xf32>
    %cst_124 = arith.constant 0.000000e+00 : f32
    %339 = vector.broadcast %cst_124 : f32 to vector<16x128xf32>
    %340 = arith.maximumf %338, %339 : vector<16x128xf32>
    %341 = arith.truncf %340 : vector<16x128xf32> to vector<16x128xbf16>
    %c392 = arith.constant 392 : index
    %c0_125 = arith.constant 0 : index
    %342 = vector.load %arg2[%c392, %c0_125] : memref<504x16xbf16, #tpu.memory_space<vmem>>, vector<112x16xbf16>
    %cst_126 = arith.constant dense<0.000000e+00> : vector<112x128xf32>
    %343 = tpu.matmul %342, %341, %cst_126 {dimension_numbers = #tpu.dot_dimension_numbers<[1], [0], [0], [1], [0, 0, 1, 1], [], []>} : vector<112x16xbf16>, vector<16x128xbf16>, vector<112x128xf32> -> vector<112x128xf32>
    %344 = vector.extract_strided_slice %343 {offsets = [0, 0], sizes = [16, 128], strides = [1, 1]} : vector<112x128xf32> to vector<16x128xf32>
    %345 = vector.extract_strided_slice %343 {offsets = [16, 0], sizes = [16, 128], strides = [1, 1]} : vector<112x128xf32> to vector<16x128xf32>
    %346 = vector.extract_strided_slice %343 {offsets = [32, 0], sizes = [16, 128], strides = [1, 1]} : vector<112x128xf32> to vector<16x128xf32>
    %347 = vector.extract_strided_slice %343 {offsets = [48, 0], sizes = [16, 128], strides = [1, 1]} : vector<112x128xf32> to vector<16x128xf32>
    %348 = vector.extract_strided_slice %343 {offsets = [64, 0], sizes = [16, 128], strides = [1, 1]} : vector<112x128xf32> to vector<16x128xf32>
    %349 = vector.extract_strided_slice %343 {offsets = [80, 0], sizes = [16, 128], strides = [1, 1]} : vector<112x128xf32> to vector<16x128xf32>
    %350 = vector.extract_strided_slice %343 {offsets = [96, 0], sizes = [16, 128], strides = [1, 1]} : vector<112x128xf32> to vector<16x128xf32>
    %351 = tpu.concatenate %344, %345, %346, %347, %348, %349, %350 in 1 : vector<16x128xf32>, vector<16x128xf32>, vector<16x128xf32>, vector<16x128xf32>, vector<16x128xf32>, vector<16x128xf32>, vector<16x128xf32> -> vector<16x896xf32>
    %c4736 = arith.constant 4736 : index
    %c0_127 = arith.constant 0 : index
    %352 = vector.load %arg3[%c4736, %c0_127] : memref<5632x128xbf16, #tpu.memory_space<vmem>>, vector<896x128xbf16>
    %353 = arith.truncf %351 : vector<16x896xf32> to vector<16x896xbf16>
    %cst_128 = arith.constant dense<0.000000e+00> : vector<16x128xf32>
    %354 = tpu.matmul %353, %352, %cst_128 {dimension_numbers = #tpu.dot_dimension_numbers<[1], [0], [0], [1], [0, 0, 1, 1], [], []>} : vector<16x896xbf16>, vector<896x128xbf16>, vector<16x128xf32> -> vector<16x128xf32>
    %c0_129 = arith.constant 0 : index
    %c0_130 = arith.constant 0 : index
    %355 = vector.load %arg5[%c0_129, %c0_130] : memref<1x128xf32, #tpu.memory_space<vmem>>, vector<1x128xf32>
    %356 = vector.broadcast %355 : vector<1x128xf32> to vector<16x128xf32>
    %357 = arith.addf %354, %356 : vector<16x128xf32>
    %358 = math.tanh %357 : vector<16x128xf32>
    %c0_131 = arith.constant 0 : index
    %c0_132 = arith.constant 0 : index
    %c0_133 = arith.constant 0 : index
    %359 = vector.load %arg6[%c0_131, %c0_132, %c0_133] : memref<1x16x128xf32, #tpu.memory_space<vmem>>, vector<1x16x128xf32>
    %360 = vector.shape_cast %359 : vector<1x16x128xf32> to vector<16x128xf32>
    %361 = vector.shape_cast %358 : vector<16x128xf32> to vector<1x16x128xf32>
    tpu.vector_store %arg6[%c0_131, %c0_132, %c0_133], %361 {strides = array<i32>} : memref<1x16x128xf32, #tpu.memory_space<vmem>>, vector<1x16x128xf32>,
    return
  }
  func.func @transform_0(%arg0: i32) -> (i32, i32, i32) {
    %c0_i32 = arith.constant 0 : i32
    %c0_i32_0 = arith.constant 0 : i32
    %c0_i32_1 = arith.constant 0 : i32
    return %arg0, %c0_i32, %c0_i32_0 : i32, i32, i32
  }
  func.func @transform_1(%arg0: i32) -> (i32, i32) {
    %c0_i32 = arith.constant 0 : i32
    %c0_i32_0 = arith.constant 0 : i32
    %c0_i32_1 = arith.constant 0 : i32
    return %c0_i32, %c0_i32_0 : i32, i32
  }
  func.func @transform_2(%arg0: i32) -> (i32, i32) {
    %c0_i32 = arith.constant 0 : i32
    %c0_i32_0 = arith.constant 0 : i32
    %c0_i32_1 = arith.constant 0 : i32
    return %c0_i32, %c0_i32_0 : i32, i32
  }
  func.func @transform_3(%arg0: i32) -> (i32, i32, i32) {
    %c0_i32 = arith.constant 0 : i32
    %c0_i32_0 = arith.constant 0 : i32
    %c0_i32_1 = arith.constant 0 : i32
    %c0_i32_2 = arith.constant 0 : i32
    return %c0_i32, %c0_i32_0, %c0_i32_1 : i32, i32, i32
  }
  func.func @transform_4(%arg0: i32) -> (i32, i32) {
    %c0_i32 = arith.constant 0 : i32
    %c0_i32_0 = arith.constant 0 : i32
    %c0_i32_1 = arith.constant 0 : i32
    return %c0_i32, %c0_i32_0 : i32, i32
  }
  func.func @transform_5(%arg0: i32) -> (i32, i32, i32) {
    %c0_i32 = arith.constant 0 : i32
    %c0_i32_0 = arith.constant 0 : i32
    %c0_i32_1 = arith.constant 0 : i32
    return %arg0, %c0_i32, %c0_i32_0 : i32, i32, i32
  }
}

</mosaic_0001>

<bundles_post_ra>
// kernel: cyclegan_gen_forward.1
= control target key start
LH: loop header
LB: loop body
LE: loop exit
PB: predicated region body
PF: predicated region fallthrough
CT: control target
= control target key end

     0   :  { %10 = vsyncpa [#allocation3], 0  ;;  %s19714_s0 = inlined_call_operand.vmem [shape: f32[2,16,128], index: 0, kind: input, shape index: {}]   ;;  %s19715_s1 = inlined_call_operand.vmem [shape: bf16[504,16], index: 1, kind: input, shape index: {}]   ;;  %s19716_s2 = inlined_call_operand.hbm [shape: bf16[5632,128], index: 2, kind: input, shape index: {}]   ;;  %s19717_s3 = inlined_call_operand.hbm [shape: f32[3,128,128], index: 3, kind: input, shape index: {}]   ;;  %s19718_s4 = inlined_call_operand.hbm [shape: f32[1,128], index: 4, kind: input, shape index: {}]   ;;  %s19719_s5 = inlined_call_operand.vmem [shape: f32[2,16,128], index: 5, kind: output, shape index: {}]  }
   0x1   :  { %11 = vsyncpa [#allocation5], 0  ;;  %s17421_s18 = smov 0  }
   0x2 LB: > { %s17381_s19 = smov [#allocation4]   ;;  %s17427_s21 = sadd.s32 4294967295, %s17379_s18   ;;  %s17379_s18 = sphi %s17421_s18, %s17_s18  }
   0x3   : > { %s186_s20 = sshll.u32 %s17381_s19, 4  ;;  %p11386_p0 = scmp.ge.s32.totalorder %s17379_s18, 1  ;;  %s17436_s20 = int_to_ptr.vmem [resolvable:$true] %s186_s20 }
   0x4   : > { %p158_p1 = scmp.lt.s32.totalorder %s17379_s18, 3  ;;  %p19720_p2 = scmp.eq.s32.totalorder %s17427_s21, 0 }
   0x5   : > { %s17382_s23 = smov [#allocation2]   ;;  %s17383_s26 = smov [#allocation6]  }
   0x6   : > { %p17432_p3 = pnand %p11386_p0, %p158_p1  ;;  %s173_s24 = sshll.u32 %s17382_s23, 4  ;;  %s17440_s24 = int_to_ptr.vmem [resolvable:$true] %s173_s24 }
   0x7   : > { %s17448_s27 = sshll.u32 %s17383_s26, 4  ;;  %s17281_s30 = scalar_lea.hbm %s19717_s3, 6144  ;;  %s201_s27 = int_to_ptr.vmem [resolvable:$true] %s17448_s27 }
   0x8   : > { %s19864_s22 = scalar_select %p17432_p3, 1, 0 }
   0x9   : > { %p16839_p4 = pneg %p17432_p3  ;;  %p17282_p6 = scmp.ne.s32.totalorder %s19717_s3, %s17281_s30 }
   0xa   : > { %p17288_p10 = scmp.lt.u32.totalorder %s17281_s30, %s19717_s3 }
   0xb   : > { %p17444_p5 = pnand %p19720_p2, %p16839_p4 }
   0xd   : > { %p17458_p7 = pneg %p17444_p5 }
   0xf   : > { %p17284_p8 = pnand %p17458_p7, %p17282_p6 }
  0x11   : > { %p17285_p9 = pneg %p17284_p8 }
  0x13   : > { %p17290_p11 = pnand %p17288_p10, %p17285_p9 }
  0x15   : > { %17293 = shalt.err (!%p17290_p11)
}
  0x16   : > { %s17294_s11 = scalar_lea.vmem %s17436_s20, 6144  ;;  %p17302_p1 = scmp.lt.s32.totalorder %s17436_s20, %s17436_s20 }
  0x17   : > { %p17295_p12 = scmp.ne.s32.totalorder %s17436_s20, %s17294_s11  ;;  %p17303_p4 = scmp.lt.s32.totalorder %s17294_s11, %s17294_s11 }
  0x19   : > { %p17297_p13 = pnand %p17295_p12, %p17458_p7  ;;  %p17304_p6 = por %p17303_p4, %p17302_p1 }
  0x1b   : > { %p17298_p0 = pneg %p17297_p13 }
  0x1d   : > { %p17305_p8 = pnand %p17304_p6, %p17298_p0 }
  0x1f   : > { %17308 = shalt.err (!%p17305_p8)
}
  0x20   : > { %s17384_s12 = smov 128   ;;  %s17385_s13 = smov 8  }
  0x21   : > { %16845 = dma.hbm_to_vmem [thread:$0]  (!%p17444_p5), %s19717_s3, 6144, %s17436_s20, [#allocation5], %s17384_s12, %s17384_s12, %s17385_s13  }
  0x22   : > { %s17309_s19 = scalar_lea.hbm %s19716_s2, 45056 }
  0x23   : > { %p17310_p9 = scmp.ne.s32.totalorder %s19716_s2, %s17309_s19  ;;  %p17316_p12 = scmp.lt.u32.totalorder %s17309_s19, %s19716_s2 }
  0x25   : > { %p17312_p10 = pnand %p17310_p9, %p17458_p7 }
  0x27   : > { %p17313_p11 = pneg %p17312_p10 }
  0x29   : > { %p17318_p13 = pnand %p17316_p12, %p17313_p11 }
  0x2b   : > { %17321 = shalt.err (!%p17318_p13)
}
  0x2c   : > { %s17322_s20 = scalar_lea.vmem %s17440_s24, 45056  ;;  %p17330_p6 = scmp.lt.s32.totalorder %s17440_s24, %s17440_s24 }
  0x2d   : > { %p17323_p0 = scmp.ne.s32.totalorder %s17440_s24, %s17322_s20  ;;  %p17331_p8 = scmp.lt.s32.totalorder %s17322_s20, %s17322_s20 }
  0x2f   : > { %p17325_p1 = pnand %p17323_p0, %p17458_p7  ;;  %p17332_p9 = por %p17331_p8, %p17330_p6 }
  0x31   : > { %p17326_p4 = pneg %p17325_p1 }
  0x33   : > { %p17333_p10 = pnand %p17332_p9, %p17326_p4 }
  0x35   : > { %17336 = shalt.err (!%p17333_p10)
}
  0x36   : > { %s17386_s30 = smov 64   ;;  %s17387_s6 = smov 4  }
  0x37   : > { %16842 = dma.hbm_to_vmem [thread:$0]  (!%p17444_p5), %s19716_s2, 45056, %s17440_s24, [#allocation3], %s17386_s30, %s17386_s30, %s17387_s6  }
  0x38   : > { %s17337_s12 = scalar_lea.hbm %s19718_s4, 16 }
  0x39   : > { %p17338_p11 = scmp.ne.s32.totalorder %s19718_s4, %s17337_s12  ;;  %p17344_p0 = scmp.lt.u32.totalorder %s17337_s12, %s19718_s4 }
  0x3b   : > { %p17340_p12 = pnand %p17338_p11, %p17458_p7 }
  0x3d   : > { %p17341_p13 = pneg %p17340_p12 }
  0x3f   : > { %p17346_p1 = pnand %p17344_p0, %p17341_p13 }
  0x41   : > { %17349 = shalt.err (!%p17346_p1)
}
  0x42   : > { %s17350_s17 = scalar_lea.vmem %s201_s27, 16  ;;  %s17357_s24 = scalar_lea.vmem %s201_s27, 32 }
  0x43   : > { %p17351_p4 = scmp.ne.s32.totalorder %s201_s27, %s17350_s17  ;;  %p17358_p9 = scmp.lt.s32.totalorder %s201_s27, %s201_s27 }
  0x44   : > { %p17359_p10 = scmp.lt.s32.totalorder %s17357_s24, %s17350_s17 }
  0x45   : > { %p17353_p6 = pnand %p17351_p4, %p17458_p7 }
  0x46   : > { %p17360_p2 = por %p17359_p10, %p17358_p9 }
  0x47   : > { %p17354_p8 = pneg %p17353_p6 }
  0x49   : > { %p17361_p3 = pnand %p17360_p2, %p17354_p8 }
  0x4b   : > { %17364 = shalt.err (!%p17361_p3)
}
  0x4c   : > { %16848 = dma.hbm_to_vmem [thread:$0]  (!%p17444_p5), %s19718_s4, 16, %s201_s27, [#allocation5]  }
  0x4d   : > { %p19867_p11 = scmp.ne.s32.totalorder %s19864_s22, 0 }
  0x4f   : > { %221 = sbr.rel (%p19867_p11) target bundleno = 8828 (0x227c), region = 40 }
  0x56   : > { %p19868_p12 = scmp.eq.s32.totalorder %s17427_s21, 0 }
  0x58   : > { %17370 = dma.done.wait (%p19868_p12), [#allocation3], 45056   ;;  %p19869_p7 = pmov %p19868_p12 }
  0x5a   : > { %17372 = vsyncadd (%p19869_p7), [#allocation3], 4294922240  ;;  %p19870_p13 = pmov %p19869_p7 }
  0x5b   : > { %p19871_p2 = pmov %p19869_p7 }
  0x5c   : > { %17374 = dma.done.wait (%p19870_p13), [#allocation5], 6160  }
  0x5d   : > { %17376 = vsyncadd (%p19871_p2), [#allocation5], 4294961136  ;;  %p257_p3 = scmp.lt.s32.totalorder %s17427_s21, 1  ;;  %v19740_v0 = vmov 0.0   ;;  %vm17389_vm0 = vmmov 0   ;;  %v16873_v4 = vld [vmem:[%s19715_s1] sm:$0xff]  }
  0x5e   : > { %13254 = vmatprep.subr.bf16.mxu0 %v19740_v0  ;;  %13256 = vmatprep.mubr.msk.bf16.mxu0 %vm17389_vm0, %v19740_v0  ;;  %vm320_vm1 = vcmask 130048   ;;  %v16874_v5 = vld [vmem:[%s19715_s1 + $0x8] sm:$0xff]   ;;  %v16880_v6 = vld [vmem:[#allocation2 + $0xc0] sm:$0xff]   ;;  %v16875_v14 = vld [vmem:[%s19715_s1 + $0x10] sm:$0xff]   ;;  %vm1082_vm2 = vcmask 1040384   ;;  %vm2865_vm3 = vcmask 64512  }
  0x5f   : > { %s20061_s21 = smov (!%p257_p3, %s17427_s21), 1  ;;  %v16881_v7 = vld [vmem:[#allocation2 + $0x80] sm:$0xff]   ;;  %v16884_v10 = vld [vmem:[#allocation2 + $0xc8] sm:$0xff]   ;;  %v16888_v15 = vld [vmem:[#allocation2 + $0x50] sm:$0xff]   ;;  %vm2872_vm4 = vcmask 1043456   ;;  %vm3971_vm5 = vcmask 31744  }
  0x60   : > { %s11822_s22 = sshll.u32 %s20061_s21, 4  ;;  %v16882_v8 = vld [vmem:[#allocation2 + $0x40] sm:$0xff]   ;;  %v16885_v11 = vld [vmem:[#allocation2 + $0x48] sm:$0xff]   ;;  %v16889_v16 = vld [vmem:[#allocation2 + $0x10] sm:$0xff]   ;;  %vm3978_vm6 = vcmask 1041408  }
  0x61   : > { %s261_s8 = scalar_lea.vmem %s19714_s0, %s11822_s22  ;;  %v16883_v9 = vld [vmem:[#allocation2] sm:$0xff]   ;;  %11832 = vmatprep.subr.bf16.mxu1 %v16882_v8  ;;  %v16886_v12 = vld [vmem:[#allocation2 + $0x88] sm:$0xff]   ;;  %v16890_v17 = vld [vmem:[#allocation2 + $0xd0] sm:$0xff]   ;;  %s266_s30 = scalar_lea.vmem %s19719_s5, %s11822_s22 }
  0x62   : > { %v268_v1 = vld [vmem:[%s261_s8] sm:$0xff]  ;;  %v269_v2 = vld [vmem:[%s261_s8 + $0x8] sm:$0xff]  ;;  %11833 = vmatpush3.bf16.msra.mxu1 %v16883_v9  ;;  %v16891_v18 = vld [vmem:[#allocation2 + $0x90] sm:$0xff]  }
  0x63   : > { %v270_v3 = vpack.c.bf16 %v269_v2, %v268_v1  ;;  %11834 = vmatprep.subr.bf16.mxu1 %v16885_v11  ;;  %v16887_v13 = vld [vmem:[#allocation2 + $0x8] sm:$0xff]   ;;  %v16892_v19 = vld [vmem:[#allocation2 + $0x58] sm:$0xff]   ;;  %v16894_v21 = vld [vmem:[#allocation2 + $0x60] sm:$0xff]  }
  0x64   : > { %v16893_v20 = vld [vmem:[#allocation2 + $0x18] sm:$0xff]   ;;  %v16895_v22 = vld [vmem:[#allocation2 + $0x20] sm:$0xff]   ;;  %v16878_v26 = vld [vmem:[%s19715_s1 + $0x28] sm:$0xff]  }
  0x65   : > { %13255 = vmatpush3.bf16.msra.mxu0 %v270_v3  ;;  %v16876_v23 = vld [vmem:[%s19715_s1 + $0x18] sm:$0xff]   ;;  %v16877_v25 = vld [vmem:[%s19715_s1 + $0x20] sm:$0xff]   ;;  %v16879_v27 = vld [vmem:[%s19715_s1 + $0x30] sm:$0xff]  }
  0x66   : > { %11854 = vmatprep.subr.bf16.mxu0 %v16880_v6  ;;  %11835 = vmatpush3.bf16.msra.mxu1 %v16887_v13  ;;  %v16896_v24 = vld [vmem:[#allocation2 + $0xd8] sm:$0xff]   ;;  %v16898_v29 = vld [vmem:[#allocation2 + $0x68] sm:$0xff]   ;;  %v16900_v31 = vld [vmem:[#allocation2 + $0x70] sm:$0xff]  }
  0x67   : > { %11836 = vmatprep.subr.bf16.mxu1 %v16888_v15  ;;  %v16897_v28 = vld [vmem:[#allocation2 + $0x98] sm:$0xff]   ;;  %v16899_v30 = vld [vmem:[#allocation2 + $0x28] sm:$0xff]   ;;  %v16901_v32 = vld [vmem:[#allocation2 + $0xe0] sm:$0xff]  }
  0x68   : > { %13257 = vmatmul.mubr.msk.bf16.vlgmr.msra.gmra.mrb[0].mxu0 %vm320_vm1, %v16873_v4  ;;  %v16902_v33 = vld [vmem:[#allocation2 + $0x30] sm:$0xff]   ;;  %v16903_v34 = vld [vmem:[#allocation2 + $0xa0] sm:$0xff]   ;;  %v16904_v35 = vld [vmem:[#allocation2 + $0x78] sm:$0xff]  }
  0x69   : > { %13260 = vmatprep.mubr.msk.bf16.mxu0 %vm17389_vm0, %v19740_v0  ;;  %11855 = vmatpush3.bf16.msra.mxu0 %v16881_v7  ;;  %v16905_v36 = vld [vmem:[#allocation2 + $0x38] sm:$0xff]   ;;  %v16908_v37 = vld [vmem:[#allocation2 + $0x140] sm:$0xff]   ;;  %v16906_v38 = vld [vmem:[#allocation2 + $0xe8] sm:$0xff]  }
  0x6a   : > { %11856 = vmatprep.subr.bf16.mxu0 %v16884_v10  ;;  %11837 = vmatpush3.bf16.msra.mxu1 %v16889_v16  ;;  %v16907_v39 = vld [vmem:[#allocation2 + $0xa8] sm:$0xff]   ;;  %v16912_v40 = vld [vmem:[#allocation2 + $0xf0] sm:$0xff]   ;;  %v16916_v42 = vld [vmem:[#allocation2 + $0xf8] sm:$0xff]  }
  0x6b   : > { %11838 = vmatprep.subr.bf16.mxu1 %v16892_v19  ;;  %v16913_v41 = vld [vmem:[#allocation2 + $0xb0] sm:$0xff]   ;;  %v16917_v43 = vld [vmem:[#allocation2 + $0xb8] sm:$0xff]   ;;  %v16909_v52 = vld [vmem:[#allocation2 + $0x100] sm:$0xff]  }
  0x6c   : > { %v16910_v55 = vld [vmem:[#allocation2 + $0x148] sm:$0xff]   ;;  %v16914_v58 = vld [vmem:[#allocation2 + $0x150] sm:$0xff]   ;;  %v16918_v1 = vld [vmem:[#allocation2 + $0x158] sm:$0xff]  }
  0x6d   : > { %11857 = vmatpush3.bf16.msra.mxu0 %v16886_v12  ;;  %v16911_v56 = vld [vmem:[#allocation2 + $0x108] sm:$0xff]   ;;  %v16915_v61 = vld [vmem:[#allocation2 + $0x110] sm:$0xff]   ;;  %v16919_v2 = vld [vmem:[#allocation2 + $0x118] sm:$0xff]  }
  0x6e   : > { %11858 = vmatprep.subr.bf16.mxu0 %v16890_v17  ;;  %11839 = vmatpush3.bf16.msra.mxu1 %v16893_v20  ;;  %v16920_v4 = vld [vmem:[#allocation2 + $0x160] sm:$0xff]   ;;  %v16923_v11 = vld [vmem:[#allocation2 + $0x168] sm:$0xff]   ;;  %v16926_v15 = vld [vmem:[#allocation2 + $0x170] sm:$0xff]  }
  0x6f   : > { %11840 = vmatprep.subr.bf16.mxu1 %v16894_v21  ;;  %v16921_v6 = vld [vmem:[#allocation2 + $0x180] sm:$0xff]   ;;  %v16924_v12 = vld [vmem:[#allocation2 + $0x188] sm:$0xff]   ;;  %v16927_v17 = vld [vmem:[#allocation2 + $0x190] sm:$0xff]  }
  0x70   : > { %13261 = vmatmul.mubr.msk.bf16.gmra.mrb[4].mxu0 %vm320_vm1, %v16874_v5  ;;  %v16922_v8 = vld [vmem:[#allocation2 + $0x120] sm:$0xff]   ;;  %v16925_v13 = vld [vmem:[#allocation2 + $0x128] sm:$0xff]   ;;  %v16928_v19 = vld [vmem:[#allocation2 + $0x130] sm:$0xff]  }
  0x71   : > { %13264 = vmatprep.mubr.msk.bf16.mxu0 %vm17389_vm0, %v19740_v0  ;;  %11859 = vmatpush3.bf16.msra.mxu0 %v16891_v18 }
  0x72   : > { %11860 = vmatprep.subr.bf16.mxu0 %v16896_v24  ;;  %11841 = vmatpush3.bf16.msra.mxu1 %v16895_v22  ;;  %v16929_v22 = vld [vmem:[#allocation2 + $0x178] sm:$0xff]  }
  0x73   : > { %11842 = vmatprep.subr.bf16.mxu1 %v16898_v29  ;;  %v16931_v24 = vld [vmem:[#allocation2 + $0x138] sm:$0xff]   ;;  %v16932_v29 = vld [vmem:[#allocation2 + $0x1a0] sm:$0xff]  }
  0x75   : > { %11861 = vmatpush3.bf16.msra.mxu0 %v16897_v28 }
  0x76   : > { %11843 = vmatpush3.bf16.msra.mxu1 %v16899_v30  ;;  %11862 = vmatprep.subr.bf16.mxu0 %v16901_v32 }
  0x77   : > { %11844 = vmatprep.subr.bf16.mxu1 %v16900_v31  ;;  %v16933_v31 = vld [vmem:[#allocation2 + $0x1a8] sm:$0xff]  }
  0x78   : > { %13265 = vmatmul.mubr.msk.bf16.gmra.mrb[8].mxu0 %vm320_vm1, %v16875_v14 }
  0x79   : > { %13268 = vmatprep.mubr.msk.bf16.mxu0 %vm17389_vm0, %v19740_v0  ;;  %11863 = vmatpush3.bf16.msra.mxu0 %v16903_v34 }
  0x7a   : > { %11845 = vmatpush3.bf16.msra.mxu1 %v16902_v33  ;;  %11864 = vmatprep.subr.bf16.mxu0 %v16906_v38  ;;  %v16935_v38 = vld [vmem:[#allocation2 + $0x1b8] sm:$0xff]  }
  0x7b   : > { %11846 = vmatprep.subr.bf16.mxu1 %v16904_v35  ;;  %v16934_v35 = vld [vmem:[#allocation2 + $0x1b0] sm:$0xff]  }
  0x7d   : > { %11865 = vmatpush3.bf16.msra.mxu0 %v16907_v39  ;;  %v19738_v39 = vmov 0.0|0.0  }
  0x7e   : > { %11847 = vmatpush3.bf16.msra.mxu1 %v16905_v36  ;;  %11866 = vmatprep.subr.bf16.mxu0 %v16912_v40  ;;  %v1050_v40 = vld [vmem:[#allocation4] sm:$0xff] }
  0x7f   : > { %11876 = vmatprep.subr.bf16.mxu1 %v16908_v37 }
  0x80   : > { %13269 = vmatmul.mubr.msk.bf16.gmra.mrb[12].mxu0 %vm320_vm1, %v16876_v23  ;;  %v16930_v23 = vld [vmem:[#allocation2 + $0x198] sm:$0xff]  }
  0x81   : > { %13272 = vmatprep.mubr.msk.bf16.mxu0 %vm17389_vm0, %v19740_v0  ;;  %11867 = vmatpush3.bf16.msra.mxu0 %v16913_v41  ;;  %v1051_v41 = vld [vmem:[#allocation4 + $0x8] sm:$0xff] }
  0x82   : > { %11868 = vmatprep.subr.bf16.mxu0 %v16916_v42  ;;  %v1085_v42 = vand.u32 4294901760, %v1050_v40 }
  0x85   : > { %11869 = vmatpush3.bf16.msra.mxu0 %v16917_v43  ;;  %v1088_v43 = vand.u32 4294901760, %v1051_v41 }
  0x86   : > { %13284 = vmatprep.subr.bf16.mxu0 %v19740_v0 }
  0x88   : > { %13273 = vmatmul.mubr.msk.bf16.gmra.mrb[16].mxu0 %vm320_vm1, %v16877_v25 }
  0x89   : > { %13276 = vmatprep.mubr.msk.bf16.mxu0 %vm17389_vm0, %v19740_v0 }
  0x90   : > { %13277 = vmatmul.mubr.msk.bf16.gmra.mrb[20].mxu0 %vm320_vm1, %v16878_v26 }
  0x91   : > { %13280 = vmatprep.mubr.msk.bf16.mxu0 %vm17389_vm0, %v19740_v0 }
  0x98   : > { %13281 = vmatmul.mubr.msk.bf16.gmra.mrb[24].mxu0 %vm320_vm1, %v16879_v27 }
 0x13b   : > { %v376_v44 = vpop.f32.mrb[0].mxu0 }
 0x13c   : > { %v13258_v45 = vpop.f32.mrb[1].mxu0 }
 0x13d   : > { %v379_v46 = vpop.f32.mrb[2].mxu0  ;;  %v1052_v45 = vld [vmem:[#allocation4 + $0x10] sm:$0xff] }
 0x13e   : > { %v543_v47 = vpack.c.bf16 %v379_v46, %v376_v44  ;;  %v13259_v48 = vpop.f32.mrb[3].mxu0  ;;  %v17597_v44 = vpack.c.bf16 %v1088_v43, %v1085_v42  ;;  %v1053_v46 = vld [vmem:[#allocation4 + $0x18] sm:$0xff] }
 0x13f   : > { %v1094_v48 = vand.u32 4294901760, %v1053_v46 }
 0x140   : > { %19872 = vst [vmem:[#allocation9_spill] sm:$0xff] %v17597_v44 }
 0x143   : > { %v384_v49 = vpop.f32.mrb[4].mxu0 }
 0x144   : > { %v13262_v50 = vpop.f32.mrb[5].mxu0 }
 0x145   : > { %v387_v51 = vpop.f32.mrb[6].mxu0  ;;  %v1054_v50 = vld [vmem:[#allocation4 + $0x20] sm:$0xff] }
 0x146   : > { %v13263_v53 = vpop.f32.mrb[7].mxu0  ;;  %v544_v54 = vpack.c.bf16 %v387_v51, %v384_v49  ;;  %v1055_v51 = vld [vmem:[#allocation4 + $0x28] sm:$0xff] }
 0x147   : > { %v1100_v53 = vand.u32 4294901760, %v1055_v51 }
 0x148   : > { %918 = vmatprep.mubr.bf16.mxu1 %v544_v54 }
 0x149   : > { %919 = vmatmul.mubr.bf16.vlgmr.msra.gmra.mrb[0].mxu1 %v543_v47  ;;  %v1091_v47 = vand.u32 4294901760, %v1052_v45 }
 0x14a   : > { %11877 = vmatpush3.bf16.msra.mxu1 %v16909_v52  ;;  %v1097_v52 = vand.u32 4294901760, %v1054_v50 }
 0x14b   : > { %v392_v57 = vpop.f32.mrb[8].mxu0  ;;  %11878 = vmatprep.subr.bf16.mxu1 %v16910_v55  ;;  %v17601_v49 = vpack.c.bf16 %v1094_v48, %v1091_v47  ;;  %v1056_v55 = vld [vmem:[#allocation4 + $0x30] sm:$0xff] }
 0x14c   : > { %v13266_v59 = vpop.f32.mrb[9].mxu0  ;;  %v17605_v54 = vpack.c.bf16 %v1100_v53, %v1097_v52 }
 0x14d   : > { %v395_v60 = vpop.f32.mrb[10].mxu0  ;;  %19873 = vst [vmem:[#allocation10_spill] sm:$0xff] %v17601_v49 }
 0x14e   : > { %v545_v62 = vpack.c.bf16 %v395_v60, %v392_v57  ;;  %v13267_v63 = vpop.f32.mrb[11].mxu0  ;;  %11879 = vmatpush3.bf16.msra.mxu1 %v16911_v56  ;;  %19874 = vst [vmem:[#allocation11_spill] sm:$0xff] %v17605_v54  ;;  %v1057_v56 = vld [vmem:[#allocation4 + $0x38] sm:$0xff]  ;;  %v1103_v57 = vand.u32 4294901760, %v1056_v55  ;;  %v1058_v60 = vld [vmem:[#allocation4 + $0x40] sm:$0xff] }
 0x14f   : > { %11880 = vmatprep.subr.bf16.mxu1 %v16914_v58  ;;  %v1106_v58 = vand.u32 4294901760, %v1057_v56 }
 0x151   : > { %v17609_v59 = vpack.c.bf16 %v1106_v58, %v1103_v57 }
 0x152   : > { %11881 = vmatpush3.bf16.msra.mxu1 %v16915_v61  ;;  %v1059_v61 = vld [vmem:[#allocation4 + $0x48] sm:$0xff] }
 0x153   : > { %v400_v3 = vpop.f32.mrb[12].mxu0  ;;  %11882 = vmatprep.subr.bf16.mxu1 %v16918_v1  ;;  %19875 = vst [vmem:[#allocation12_spill] sm:$0xff] %v17609_v59  ;;  %v1112_v63 = vand.u32 4294901760, %v1059_v61 }
 0x154   : > { %v13270_v5 = vpop.f32.mrb[13].mxu0 }
 0x155   : > { %v403_v7 = vpop.f32.mrb[14].mxu0 }
 0x156   : > { %v546_v9 = vpack.c.bf16 %v403_v7, %v400_v3  ;;  %v13271_v10 = vpop.f32.mrb[15].mxu0  ;;  %11883 = vmatpush3.bf16.msra.mxu1 %v16919_v2  ;;  %v17615_v2 = vld [vmem:[#allocation4 + $0x50] sm:$0xff]  ;;  %v17617_v3 = vld [vmem:[#allocation4 + $0x58] sm:$0xff]  ;;  %v17625_v7 = vld [vmem:[#allocation4 + $0x60] sm:$0xff] }
 0x157   : > { %11884 = vmatprep.subr.bf16.mxu1 %v16920_v4  ;;  %v1115_v4 = vand.u32 4294901760, %v17615_v2  ;;  %v1118_v5 = vand.u32 4294901760, %v17617_v3  ;;  %v1121_v10 = vand.u32 4294901760, %v17625_v7 }
 0x158   : > { %959 = vmatprep.mubr.bf16.mxu0 %v546_v9  ;;  %v17629_v9 = vld [vmem:[#allocation4 + $0x70] sm:$0xff] }
 0x159   : > { %960 = vmatmul.mubr.bf16.vlgmr.msra.gmra.mrb[28].mxu0 %v545_v62  ;;  %v1109_v62 = vand.u32 4294901760, %v1058_v60 }
 0x15a   : > { %13285 = vmatpush3.bf16.msra.mxu0 %v16921_v6  ;;  %11885 = vmatpush3.bf16.msra.mxu1 %v16922_v8  ;;  %v17623_v6 = vpack.c.bf16 %v1118_v5, %v1115_v4  ;;  %v17627_v8 = vld [vmem:[#allocation4 + $0x68] sm:$0xff] }
 0x15b   : > { %13286 = vmatprep.subr.bf16.mxu0 %v19740_v0  ;;  %11886 = vmatprep.subr.bf16.mxu1 %v16923_v11  ;;  %v408_v14 = vpop.f32.mrb[16].mxu0  ;;  %v17613_v1 = vpack.c.bf16 %v1112_v63, %v1109_v62  ;;  %v1124_v11 = vand.u32 4294901760, %v17627_v8 }
 0x15c   : > { %v13274_v16 = vpop.f32.mrb[17].mxu0  ;;  %13300 = vmatprep.mubr.msk.bf16.mxu0 %vm17389_vm0, %v19740_v0  ;;  %19877 = vst [vmem:[#allocation14_spill] sm:$0xff] %v17623_v6 }
 0x15d   : > { %v411_v18 = vpop.f32.mrb[18].mxu0  ;;  %19876 = vst [vmem:[#allocation13_spill] sm:$0xff] %v17613_v1  ;;  %v17645_v16 = vsub.f32 %v1050_v40, %v1085_v42  ;;  %v17695_v42 = vsub.f32 %v1056_v55, %v1103_v57 }
 0x15e   : > { %13287 = vmatpush3.bf16.msra.mxu0 %v16924_v12  ;;  %11887 = vmatpush3.bf16.msra.mxu1 %v16925_v13  ;;  %v547_v20 = vpack.c.bf16 %v411_v18, %v408_v14  ;;  %v13275_v21 = vpop.f32.mrb[19].mxu0  ;;  %v17634_v12 = vld [vmem:[#allocation4 + $0x78] sm:$0xff]  ;;  %v1127_v13 = vand.u32 4294901760, %v17629_v9 }
 0x15f   : > { %13288 = vmatprep.subr.bf16.mxu0 %v19740_v0  ;;  %11888 = vmatprep.subr.bf16.mxu1 %v16926_v15  ;;  %v1130_v14 = vand.u32 4294901760, %v17634_v12  ;;  %v17643_v15 = vpack.c.bf16 %v1124_v11, %v1121_v10 }
 0x161   : > { %19878 = vst [vmem:[#allocation15_spill] sm:$0xff] %v17643_v15  ;;  %v17654_v18 = vpack.c.bf16 %v1130_v14, %v1127_v13 }
 0x162   : > { %13289 = vmatpush3.bf16.msra.mxu0 %v16927_v17  ;;  %11889 = vmatpush3.bf16.msra.mxu1 %v16928_v19  ;;  %v17647_v17 = vsub.f32 %v1051_v41, %v1088_v43  ;;  %v19737_v19 = vand.u32 4294901760, %v17645_v16  ;;  %v17697_v43 = vsub.f32 %v1057_v56, %v1106_v58 }
 0x163   : > { %v416_v25 = vpop.f32.mrb[20].mxu0  ;;  %13290 = vmatprep.subr.bf16.mxu0 %v19740_v0  ;;  %11890 = vmatprep.subr.bf16.mxu1 %v16929_v22  ;;  %19879 = vst [vmem:[#allocation16_spill] sm:$0xff] %v17654_v18 }
 0x164   : > { %v13278_v26 = vpop.f32.mrb[21].mxu0  ;;  %v1179_v21 = vsub.f32 %v17645_v16, %v19737_v19 }
 0x165   : > { %v419_v27 = vpop.f32.mrb[22].mxu0 }
 0x166   : > { %v548_v28 = vpack.c.bf16 %v419_v27, %v416_v25  ;;  %13291 = vmatpush3.bf16.msra.mxu0 %v16930_v23  ;;  %11891 = vmatpush3.bf16.msra.mxu1 %v16931_v24  ;;  %v13279_v30 = vpop.f32.mrb[23].mxu0  ;;  %v17665_v23 = vsub.f32 %v1052_v45, %v1091_v47  ;;  %v17667_v24 = vsub.f32 %v1053_v46, %v1094_v48  ;;  %v1180_v25 = vand.u32 4294901760, %v1179_v21 }
 0x167   : > { %13292 = vmatprep.subr.bf16.mxu0 %v19740_v0  ;;  %15436 = vmatprep.subr.bf16.mxu1 %v19738_v39  ;;  %v19731_v47 = vand.u32 4294901760, %v17695_v42  ;;  %v19730_v48 = vand.u32 4294901760, %v17697_v43 }
 0x168   : > { %1000 = vmatprep.mubr.bf16.mxu1 %v548_v28  ;;  %v19735_v27 = vand.u32 4294901760, %v17665_v23  ;;  %v19734_v28 = vand.u32 4294901760, %v17667_v24 }
 0x169   : > { %1001 = vmatmul.mubr.bf16.vlgmr.msra.gmra.mrb[4].mxu1 %v547_v20  ;;  %v19736_v20 = vand.u32 4294901760, %v17647_v17  ;;  %v1228_v55 = vsub.f32 %v17697_v43, %v19730_v48 }
 0x16a   : > { %13293 = vmatpush3.bf16.msra.mxu0 %v16932_v29  ;;  %13336 = vmatprep.mubr.msk.f32.mxu1 %vm17389_vm0, %v19740_v0  ;;  %v1193_v30 = vsub.f32 %v17665_v23, %v19735_v27 }
 0x16b   : > { %13294 = vmatprep.subr.bf16.mxu0 %v19740_v0  ;;  %v424_v32 = vpop.f32.mrb[24].mxu0  ;;  %15438 = vmatpush3.bf16.msra.mxu1 %v17597_v44  ;;  %v1186_v22 = vsub.f32 %v17647_v17, %v19736_v20  ;;  %v1229_v21 = vand.u32 4294901760, %v1228_v55 }
 0x16c   : > { %v13282_v33 = vpop.f32.mrb[25].mxu0  ;;  %15439 = vmatprep.subr.bf16.mxu1 %v19738_v39 }
 0x16d   : > { %v427_v34 = vpop.f32.mrb[26].mxu0  ;;  %v1187_v26 = vand.u32 4294901760, %v1186_v22  ;;  %v17683_v33 = vsub.f32 %v1055_v51, %v1100_v53  ;;  %v1221_v51 = vsub.f32 %v17695_v42, %v19731_v47  ;;  %v17708_v53 = vsub.f32 %v1059_v61, %v1112_v63 }
 0x16e   : > { %13295 = vmatpush3.bf16.msra.mxu0 %v16933_v31  ;;  %v549_v36 = vpack.c.bf16 %v427_v34, %v424_v32  ;;  %v13283_v37 = vpop.f32.mrb[27].mxu0  ;;  %v1200_v31 = vsub.f32 %v17667_v24, %v19734_v28  ;;  %v17681_v32 = vsub.f32 %v1054_v50, %v1097_v52  ;;  %v1194_v34 = vand.u32 4294901760, %v1193_v30 }
 0x16f   : > { %13296 = vmatprep.subr.bf16.mxu0 %v19740_v0  ;;  %15441 = vmatpush3.bf16.msra.mxu1 %v17601_v49  ;;  %v17673_v29 = vpack.c.bf16 %v1187_v26, %v1180_v25  ;;  %v19732_v37 = vand.u32 4294901760, %v17683_v33  ;;  %v17706_v52 = vsub.f32 %v1058_v60, %v1109_v62  ;;  %v1222_v56 = vand.u32 4294901760, %v1221_v51 }
 0x170   : > { %15442 = vmatprep.subr.bf16.mxu1 %v19738_v39  ;;  %v19728_v58 = vand.u32 4294901760, %v17708_v53  ;;  %v17722_v61 = vsub.f32 %v17615_v2, %v1115_v4  ;;  %v17725_v62 = vsub.f32 %v17617_v3, %v1118_v5  ;;  %v17742_v3 = vsub.f32 %v17625_v7, %v1121_v10 }
 0x171   : > { %19880 = vst [vmem:[#allocation17_spill] sm:$0xff] %v17673_v29  ;;  %v1214_v41 = vsub.f32 %v17683_v33, %v19732_v37  ;;  %v19729_v57 = vand.u32 4294901760, %v17706_v52  ;;  %v17727_v63 = vpack.c.bf16 %v1229_v21, %v1222_v56  ;;  %v17747_v4 = vsub.f32 %v17627_v8, %v1124_v11 }
 0x172   : > { %13297 = vmatpush3.bf16.msra.mxu0 %v16934_v35  ;;  %v1201_v35 = vand.u32 4294901760, %v1200_v31  ;;  %v1242_v60 = vsub.f32 %v17708_v53, %v19728_v58  ;;  %v19727_v30 = vand.u32 4294901760, %v17722_v61  ;;  %v19726_v31 = vand.u32 4294901760, %v17725_v62 }
 0x173   : > { %13298 = vmatprep.subr.bf16.mxu0 %v19740_v0  ;;  %15444 = vmatpush3.bf16.msra.mxu1 %v17605_v54  ;;  %v1215_v46 = vand.u32 4294901760, %v1214_v41  ;;  %v1235_v22 = vsub.f32 %v17706_v52, %v19729_v57  ;;  %19883 = vst [vmem:[#allocation20_spill] sm:$0xff] %v17727_v63  ;;  %v19725_v41 = vand.u32 4294901760, %v17742_v3  ;;  %v17759_v7 = vsub.f32 %v17629_v9, %v1127_v13 }
 0x174   : > { %15445 = vmatprep.subr.bf16.mxu1 %v19738_v39  ;;  %v1243_v26 = vand.u32 4294901760, %v1242_v60  ;;  %v1256_v2 = vsub.f32 %v17725_v62, %v19726_v31  ;;  %v17764_v8 = vsub.f32 %v17634_v12, %v1130_v14 }
 0x175   : > { %v1236_v25 = vand.u32 4294901760, %v1235_v22  ;;  %v1263_v51 = vsub.f32 %v17742_v3, %v19725_v41  ;;  %v19723_v55 = vand.u32 4294901760, %v17759_v7 }
 0x176   : > { %13299 = vmatpush3.bf16.msra.mxu0 %v16935_v38  ;;  %v17687_v38 = vpack.c.bf16 %v1201_v35, %v1194_v34  ;;  %v1249_v35 = vsub.f32 %v17722_v61, %v19727_v30  ;;  %v19722_v56 = vand.u32 4294901760, %v17764_v8 }
 0x177   : > { %15447 = vmatpush3.bf16.msra.mxu1 %v17609_v59  ;;  %v17731_v34 = vpack.c.bf16 %v1243_v26, %v1236_v25  ;;  %v1264_v11 = vand.u32 4294901760, %v1263_v51  ;;  %v1277_v9 = vsub.f32 %v17759_v7, %v19723_v55  ;;  %v17783_v25 = vpack.c.bf16 %v17647_v17, %v17645_v16 }
 0x178   : > { %15448 = vmatprep.subr.bf16.mxu1 %v19738_v39  ;;  %19881 = vst [vmem:[#allocation18_spill] sm:$0xff] %v17687_v38  ;;  %v1250_v5 = vand.u32 4294901760, %v1249_v35  ;;  %v1284_v13 = vsub.f32 %v17764_v8, %v19722_v56  ;;  %v17787_v26 = vpack.c.bf16 %v17667_v24, %v17665_v23  ;;  %v17791_v35 = vpack.c.bf16 %v17683_v33, %v17681_v32 }
 0x179   : > { %13301 = vmatmul.mubr.bf16.vlgmr.msra.gmra.mrb[32].mxu0 %v549_v36  ;;  %v19733_v36 = vand.u32 4294901760, %v17681_v32  ;;  %19884 = vst [vmem:[#allocation21_spill] sm:$0xff] %v17731_v34  ;;  %v1278_v14 = vand.u32 4294901760, %v1277_v9  ;;  %19888 = vst [vmem:[#allocation25_spill] sm:$0xff] %v17783_v25 }
 0x17a   : > { %v1285_v22 = vand.u32 4294901760, %v1284_v13  ;;  %19889 = vst [vmem:[#allocation26_spill] sm:$0xff] %v17787_v26  ;;  %19890 = vst [vmem:[#allocation27_spill] sm:$0xff] %v17791_v35 }
 0x17b   : > { %15450 = vmatpush3.bf16.msra.mxu1 %v17613_v1  ;;  %v1207_v40 = vsub.f32 %v17681_v32, %v19733_v36 }
 0x17c   : > { %15451 = vmatprep.subr.bf16.mxu1 %v19738_v39  ;;  %v17779_v60 = vpack.c.bf16 %v1285_v22, %v1278_v14  ;;  %v17807_v14 = vpack.c.bf16 %v17747_v4, %v17742_v3  ;;  %v17811_v22 = vpack.c.bf16 %v17764_v8, %v17759_v7 }
 0x17d   : > { %v1208_v45 = vand.u32 4294901760, %v1207_v40  ;;  %v1257_v40 = vand.u32 4294901760, %v1256_v2  ;;  %v17795_v2 = vpack.c.bf16 %v17697_v43, %v17695_v42 }
 0x17e   : > { %19887 = vst [vmem:[#allocation24_spill] sm:$0xff] %v17779_v60  ;;  %19894 = vst [vmem:[#allocation31_spill] sm:$0xff] %v17807_v14 }
 0x17f   : > { %15453 = vmatpush3.bf16.msra.mxu1 %v17623_v6  ;;  %v17701_v50 = vpack.c.bf16 %v1215_v46, %v1208_v45  ;;  %v19724_v45 = vand.u32 4294901760, %v17747_v4  ;;  %v17751_v46 = vpack.c.bf16 %v1257_v40, %v1250_v5  ;;  %19891 = vst [vmem:[#allocation28_spill] sm:$0xff] %v17795_v2  ;;  %v17799_v5 = vpack.c.bf16 %v17708_v53, %v17706_v52 }
 0x180   : > { %15454 = vmatprep.subr.bf16.mxu1 %v19738_v39  ;;  %19895 = vst [vmem:[#allocation32_spill] sm:$0xff] %v17811_v22 }
 0x181   : > { %19882 = vst [vmem:[#allocation19_spill] sm:$0xff] %v17701_v50  ;;  %19885 = vst [vmem:[#allocation22_spill] sm:$0xff] %v17751_v46  ;;  %v1270_v10 = vsub.f32 %v17747_v4, %v19724_v45 }
 0x182   : > { %19892 = vst [vmem:[#allocation29_spill] sm:$0xff] %v17799_v5 }
 0x183   : > { %15456 = vmatpush3.bf16.msra.mxu1 %v17643_v15  ;;  %v1271_v21 = vand.u32 4294901760, %v1270_v10 }
 0x184   : > { %15457 = vmatprep.subr.bf16.mxu1 %v19738_v39 }
 0x185   : > { %v17777_v12 = vpack.c.bf16 %v1271_v21, %v1264_v11  ;;  %v17803_v21 = vpack.c.bf16 %v17725_v62, %v17722_v61 }
 0x187   : > { %15459 = vmatpush3.bf16.msra.mxu1 %v17654_v18  ;;  %19886 = vst [vmem:[#allocation23_spill] sm:$0xff] %v17777_v12  ;;  %19893 = vst [vmem:[#allocation30_spill] sm:$0xff] %v17803_v21 }
 0x188   : > { %15460 = vmatprep.subr.bf16.mxu1 %v19738_v39 }
 0x21c   : > { %v11848_v40 = vpop.f32.mrb[0].mxu1 }
 0x21d   : > { %v11849_v51 = vpop.f32.mrb[1].mxu1 }
 0x21e   : > { %v11850_v10 = vadd.f32 %v11849_v51, %v11848_v40  ;;  %v11851_v11 = vpop.f32.mrb[2].mxu1 }
 0x21f   : > { %v11852_v9 = vpop.f32.mrb[3].mxu1 }
 0x220   : > { %v11853_v13 = vadd.f32 %v11852_v9, %v11851_v11 }
 0x22c   : > { %v11870_v56 = vpop.f32.mrb[28].mxu0 }
 0x22d   : > { %v11871_v55 = vpop.f32.mrb[29].mxu0 }
 0x22e   : > { %v11872_v45 = vadd.f32 %v11871_v55, %v11870_v56  ;;  %v11873_v41 = vpop.f32.mrb[30].mxu0 }
 0x22f   : > { %v11874_v40 = vpop.f32.mrb[31].mxu0 }
 0x230   : > { %v962_v51 = vadd.f32 %v11872_v45, %v11850_v10  ;;  %v11875_v31 = vadd.f32 %v11874_v40, %v11873_v41 }
 0x232   : > { %v965_v30 = vadd.f32 %v11875_v31, %v11853_v13 }
 0x23c   : > { %v11892_v58 = vpop.f32.mrb[4].mxu1 }
 0x23d   : > { %v11893_v57 = vpop.f32.mrb[5].mxu1 }
 0x23e   : > { %v11894_v48 = vadd.f32 %v11893_v57, %v11892_v58  ;;  %v11895_v11 = vpop.f32.mrb[6].mxu1 }
 0x23f   : > { %v11896_v9 = vpop.f32.mrb[7].mxu1 }
 0x240   : > { %v11897_v47 = vadd.f32 %v11896_v9, %v11895_v11  ;;  %v1003_v37 = vadd.f32 %v11894_v48, %v962_v51 }
 0x242   : > { %v1006_v36 = vadd.f32 %v11897_v47, %v965_v30 }
 0x24c   : > { %v1043_v28 = vpop.f32.mrb[32].mxu0 }
 0x24d   : > { %v17813_v27 = vadd.f32 %v1043_v28, %v1003_v37  ;;  %v13302_v20 = vpop.f32.mrb[33].mxu0 }
 0x24e   : > { %v1046_v19 = vpop.f32.mrb[34].mxu0 }
 0x24f   : > { %v17815_v39 = vadd.f32 %v1046_v19, %v1006_v36  ;;  %v13303_v55 = vpop.f32.mrb[35].mxu0  ;;  %v1073_v41 = vmul.f32 %v17813_v27, %v17813_v27 }
 0x251   : > { %v1066_v31 = vadd.f32 %v17815_v39, %v17813_v27  ;;  %v1074_v57 = vmul.f32 %v17815_v39, %v17815_v39 }
 0x253   : > { %v1067_v58 = vrot.slane %v1066_v31, 4  ;;  %v1075_v48 = vadd.f32 %v1074_v57, %v1073_v41  ;;  %v19897_v57 = vand.u32 4294901760, %v17645_v16  ;;  %v19903_v16 = vand.u32 4294901760, %v17681_v32 }
 0x254   : > { %v19909_v32 = vand.u32 4294901760, %v17706_v52  ;;  %v19915_v52 = vand.u32 4294901760, %v17742_v3  ;;  %v16936_v3 = vld [vmem:[%s19715_s1 + $0x38] sm:$0xff]  }
 0x255   : > { %v1068_v47 = vadd.f32 %v1067_v58, %v1066_v31  ;;  %v1076_v30 = vrot.slane %v1075_v48, 4  ;;  %v19896_v31 = vmov 0.0|0.0   ;;  %v19898_v58 = vand.u32 4294901760, %v17647_v17  ;;  %13516 = vmatprep.mubr.msk.bf16.mxu0 %vm320_vm1, %v16936_v3  ;;  %v16944_v3 = vld [vmem:[#allocation2 + $0x218] sm:$0xff]  }
 0x256   : > { %v19904_v17 = vand.u32 4294901760, %v17683_v33  ;;  %v19910_v33 = vand.u32 4294901760, %v17708_v53  ;;  %v19916_v53 = vand.u32 4294901760, %v17747_v4 }
 0x257   : > { %v1069_v28 = vrot.slane %v1068_v47, 2  ;;  %v1077_v37 = vadd.f32 %v1076_v30, %v1075_v48  ;;  %v17885_v48 = vpack.c.bf16 %v19898_v58, %v19897_v57  ;;  %v19901_v30 = vand.u32 4294901760, %v17667_v24 }
 0x258   : > { %v19907_v24 = vand.u32 4294901760, %v17697_v43  ;;  %v19913_v43 = vand.u32 4294901760, %v17725_v62  ;;  %v19919_v62 = vand.u32 4294901760, %v17764_v8 }
 0x259   : > { %v1070_v20 = vadd.f32 %v1069_v28, %v1068_v47  ;;  %v1078_v45 = vrot.slane %v1077_v37, 2  ;;  %19899 = vst [vmem:[#allocation33_spill] sm:$0xff] %v17885_v48  ;;  %v19900_v47 = vand.u32 4294901760, %v17665_v23  ;;  %v19906_v23 = vand.u32 4294901760, %v17695_v42 }
 0x25a   : > { %v19912_v42 = vand.u32 4294901760, %v17722_v61  ;;  %v19918_v61 = vand.u32 4294901760, %v17759_v7 }
 0x25b   : > { %v1071_v19 = vrot.slane %v1070_v20, 1  ;;  %v1079_v36 = vadd.f32 %v1078_v45, %v1077_v37  ;;  %v17893_v28 = vpack.c.bf16 %v19901_v30, %v19900_v47  ;;  %v17903_v37 = vpack.c.bf16 %v19904_v17, %v19903_v16 }
 0x25c   : > { %v17919_v45 = vpack.c.bf16 %v19910_v33, %v19909_v32 }
 0x25d   : > { %v1080_v56 = vrot.slane %v1079_v36, 1  ;;  %v1072_v10 = vadd.f32 %v1071_v19, %v1070_v20  ;;  %19902 = vst [vmem:[#allocation34_spill] sm:$0xff] %v17893_v28  ;;  %19905 = vst [vmem:[#allocation35_spill] sm:$0xff] %v17903_v37  ;;  %v17911_v20 = vpack.c.bf16 %v19907_v24, %v19906_v23  ;;  %v17927_v19 = vpack.c.bf16 %v19913_v43, %v19912_v42  ;;  %v16938_v43 = vld [vmem:[#allocation2 + $0x200] sm:$0xff]  }
 0x25e   : > { %19911 = vst [vmem:[#allocation37_spill] sm:$0xff] %v17919_v45 }
 0x25f   : > { %v1081_v13 = vadd.f32 %v1080_v56, %v1079_v36  ;;  %19908 = vst [vmem:[#allocation36_spill] sm:$0xff] %v17911_v20  ;;  %19914 = vst [vmem:[#allocation38_spill] sm:$0xff] %v17927_v19  ;;  %v17935_v36 = vpack.c.bf16 %v19916_v53, %v19915_v52  ;;  %v17943_v56 = vpack.c.bf16 %v19919_v62, %v19918_v61  ;;  %v16937_v52 = vld [vmem:[%s19715_s1 + $0x40] sm:$0xff]   ;;  %v16940_v61 = vld [vmem:[#allocation2 + $0x208] sm:$0xff]  }
 0x260   : > { %v16939_v53 = vld [vmem:[#allocation2 + $0x1c0] sm:$0xff]   ;;  %v16943_v62 = vld [vmem:[#allocation2 + $0x1d0] sm:$0xff]  }
 0x261   : > { %v1083_v40 = vsel %vm1082_vm2, %v1072_v10, %v1081_v13  ;;  %19917 = vst [vmem:[#allocation39_spill] sm:$0xff] %v17935_v36  ;;  %19920 = vst [vmem:[#allocation40_spill] sm:$0xff] %v17943_v56 }
 0x262   : > { %v17824_v51 = vand.u32 4294901760, %v1083_v40 }
 0x264   : > { %v1166_v11 = vsub.f32 %v1083_v40, %v17824_v51 }
 0x266   : > { %v1167_v9 = vand.u32 4294901760, %v1166_v11 }
 0x268   : > { %v1168_v55 = vsub.f32 %v1166_v11, %v1167_v9 }
 0x26a   : > { %v1169_v41 = vand.u32 4294901760, %v1168_v55 }
 0x26c   : > { %13337 = vmatmul.mubr.f32.vlgmr.msra.gmra.mrb[8].mxu1 %v1169_v41 }
 0x26d   : > { %15462 = vmatpush3.bf16.msra.mxu1 %v17673_v29  ;;  %13371 = vmatprep.mubr.msk.f32.mxu1 %vm17389_vm0, %v19740_v0 }
 0x26e   : > { %15463 = vmatprep.subr.bf16.mxu1 %v19896_v31 }
 0x271   : > { %15465 = vmatpush3.bf16.msra.mxu1 %v17687_v38 }
 0x272   : > { %15466 = vmatprep.subr.bf16.mxu1 %v19896_v31 }
 0x275   : > { %15468 = vmatpush3.bf16.msra.mxu1 %v17701_v50 }
 0x276   : > { %15469 = vmatprep.subr.bf16.mxu1 %v19896_v31 }
 0x279   : > { %15471 = vmatpush3.bf16.msra.mxu1 %v17727_v63 }
 0x27a   : > { %15472 = vmatprep.subr.bf16.mxu1 %v19896_v31 }
 0x27d   : > { %15474 = vmatpush3.bf16.msra.mxu1 %v17731_v34 }
 0x27e   : > { %15475 = vmatprep.subr.bf16.mxu1 %v19896_v31 }
 0x281   : > { %15477 = vmatpush3.bf16.msra.mxu1 %v17751_v46 }
 0x282   : > { %15478 = vmatprep.subr.bf16.mxu1 %v19896_v31 }
 0x285   : > { %15480 = vmatpush3.bf16.msra.mxu1 %v17777_v12 }
 0x286   : > { %15481 = vmatprep.subr.bf16.mxu1 %v19896_v31 }
 0x289   : > { %15483 = vmatpush3.bf16.msra.mxu1 %v17779_v60 }
 0x28a   : > { %15484 = vmatprep.subr.bf16.mxu1 %v19896_v31 }
 0x28c   : > { %13372 = vmatmul.mubr.f32.vlgmr.msra.gmra.mrb[8].mxu1 %v17824_v51 }
 0x28d   : > { %15486 = vmatpush3.bf16.msra.mxu1 %v17783_v25  ;;  %13406 = vmatprep.mubr.msk.f32.mxu1 %vm17389_vm0, %v19740_v0 }
 0x28e   : > { %15487 = vmatprep.subr.bf16.mxu1 %v19896_v31 }
 0x291   : > { %15489 = vmatpush3.bf16.msra.mxu1 %v17787_v26 }
 0x292   : > { %15490 = vmatprep.subr.bf16.mxu1 %v19896_v31 }
 0x295   : > { %15492 = vmatpush3.bf16.msra.mxu1 %v17791_v35 }
 0x296   : > { %15493 = vmatprep.subr.bf16.mxu1 %v19896_v31 }
 0x299   : > { %15495 = vmatpush3.bf16.msra.mxu1 %v17795_v2 }
 0x29a   : > { %15496 = vmatprep.subr.bf16.mxu1 %v19896_v31 }
 0x29d   : > { %15498 = vmatpush3.bf16.msra.mxu1 %v17799_v5 }
 0x29e   : > { %15499 = vmatprep.subr.bf16.mxu1 %v19896_v31 }
 0x2a1   : > { %15501 = vmatpush3.bf16.msra.mxu1 %v17803_v21 }
 0x2a2   : > { %15502 = vmatprep.subr.bf16.mxu1 %v19896_v31 }
 0x2a5   : > { %15504 = vmatpush3.bf16.msra.mxu1 %v17807_v14 }
 0x2a6   : > { %15505 = vmatprep.subr.bf16.mxu1 %v19896_v31 }
 0x2a9   : > { %15507 = vmatpush3.bf16.msra.mxu1 %v17811_v22 }
 0x2aa   : > { %15508 = vmatprep.subr.bf16.mxu1 %v19896_v31 }
 0x2ac   : > { %13407 = vmatmul.mubr.f32.vlgmr.msra.gmra.mrb[8].mxu1 %v1166_v11  ;;  %v1732_v11 = vlaneseq }
 0x2ad   : > { %15510 = vmatpush3.bf16.msra.mxu1 %v17597_v44  ;;  %13441 = vmatprep.mubr.msk.f32.mxu1 %vm17389_vm0, %v19740_v0 }
 0x2ae   : > { %15511 = vmatprep.subr.bf16.mxu1 %v19896_v31  ;;  %v1733_v41 = vshrl.u32 %v1732_v11, 7  ;;  %v16951_v11 = vld [vmem:[#allocation2 + $0x1f0] sm:$0xff]  }
 0x2b0   : > { %v17971_v57 = vsub.s32 0, %v1733_v41  ;;  %v17974_v58 = vsub.s32 1, %v1733_v41  ;;  %v16954_v41 = vld [vmem:[#allocation2 + $0x280] sm:$0xff]  }
 0x2b1   : > { %15513 = vmatpush3.bf16.msra.mxu1 %v17601_v49 }
 0x2b2   : > { %15514 = vmatprep.subr.bf16.mxu1 %v19896_v31  ;;  %19921 = vst [vmem:[#allocation41_spill] sm:$0xff] %v17974_v58 }
 0x2b5   : > { %15516 = vmatpush3.bf16.msra.mxu1 %v17605_v54 }
 0x2b6   : > { %15517 = vmatprep.subr.bf16.mxu1 %v19896_v31 }
 0x2b9   : > { %15519 = vmatpush3.bf16.msra.mxu1 %v17609_v59 }
 0x2ba   : > { %15520 = vmatprep.subr.bf16.mxu1 %v19896_v31 }
 0x2bd   : > { %15522 = vmatpush3.bf16.msra.mxu1 %v17613_v1 }
 0x2be   : > { %15523 = vmatprep.subr.bf16.mxu1 %v19896_v31 }
 0x2c1   : > { %15525 = vmatpush3.bf16.msra.mxu1 %v17623_v6 }
 0x2c2   : > { %15526 = vmatprep.subr.bf16.mxu1 %v19896_v31 }
 0x2c5   : > { %15528 = vmatpush3.bf16.msra.mxu1 %v17643_v15 }
 0x2c6   : > { %15529 = vmatprep.subr.bf16.mxu1 %v19896_v31 }
 0x2c9   : > { %15531 = vmatpush3.bf16.msra.mxu1 %v17654_v18 }
 0x2ca   : > { %15532 = vmatprep.subr.bf16.mxu1 %v19896_v31 }
 0x2cc   : > { %13442 = vmatmul.mubr.f32.vlgmr.msra.gmra.mrb[8].mxu1 %v1167_v9 }
 0x2cd   : > { %15534 = vmatpush3.bf16.msra.mxu1 %v17885_v48  ;;  %13476 = vmatprep.mubr.msk.f32.mxu1 %vm17389_vm0, %v19740_v0 }
 0x2ce   : > { %15535 = vmatprep.subr.bf16.mxu1 %v19896_v31 }
 0x2d1   : > { %15537 = vmatpush3.bf16.msra.mxu1 %v17893_v28  ;;  %v18023_v28 = vld [vmem:[#allocation4 + $0xf8] sm:$0xff] }
 0x2d2   : > { %15538 = vmatprep.subr.bf16.mxu1 %v19896_v31  ;;  %v19757_v22 = vand.u32 4294901760, %v18023_v28 }
 0x2d5   : > { %15540 = vmatpush3.bf16.msra.mxu1 %v17903_v37 }
 0x2d6   : > { %15541 = vmatprep.subr.bf16.mxu1 %v19896_v31 }
 0x2d9   : > { %15543 = vmatpush3.bf16.msra.mxu1 %v17911_v20 }
 0x2da   : > { %15544 = vmatprep.subr.bf16.mxu1 %v19896_v31 }
 0x2dd   : > { %15546 = vmatpush3.bf16.msra.mxu1 %v17919_v45  ;;  %v18018_v45 = vld [vmem:[#allocation4 + $0xf0] sm:$0xff] }
 0x2de   : > { %15547 = vmatprep.subr.bf16.mxu1 %v19896_v31  ;;  %v19758_v48 = vand.u32 4294901760, %v18018_v45 }
 0x2e0   : > { %v18043_v2 = vpack.c.bf16 %v19757_v22, %v19758_v48 }
 0x2e1   : > { %15549 = vmatpush3.bf16.msra.mxu1 %v17927_v19  ;;  %v18016_v19 = vld [vmem:[#allocation4 + $0xe8] sm:$0xff] }
 0x2e2   : > { %15550 = vmatprep.subr.bf16.mxu1 %v19896_v31  ;;  %v19759_v37 = vand.u32 4294901760, %v18016_v19  ;;  %19929 = vst [vmem:[#allocation49_spill] sm:$0xff] %v18043_v2 }
 0x2e5   : > { %15552 = vmatpush3.bf16.msra.mxu1 %v17935_v36  ;;  %v18014_v36 = vld [vmem:[#allocation4 + $0xe0] sm:$0xff] }
 0x2e6   : > { %15553 = vmatprep.subr.bf16.mxu1 %v19896_v31  ;;  %v19760_v20 = vand.u32 4294901760, %v18014_v36 }
 0x2e8   : > { %v18032_v14 = vpack.c.bf16 %v19759_v37, %v19760_v20 }
 0x2e9   : > { %15555 = vmatpush3.bf16.msra.mxu1 %v17943_v56 }
 0x2ea   : > { %15556 = vmatprep.subr.bf16.mxu1 %v19896_v31  ;;  %19928 = vst [vmem:[#allocation48_spill] sm:$0xff] %v18032_v14 }
 0x2ec   : > { %13477 = vmatmul.mubr.f32.vlgmr.msra.gmra.mrb[8].mxu1 %v17824_v51 }
 0x2ed   : > { %15558 = vmatpush3.bf16.msra.mxu1 %v17597_v44  ;;  %13511 = vmatprep.mubr.msk.f32.mxu1 %vm17389_vm0, %v19740_v0 }
 0x2ee   : > { %15559 = vmatprep.subr.bf16.mxu1 %v19896_v31 }
 0x2f1   : > { %15561 = vmatpush3.bf16.msra.mxu1 %v17601_v49 }
 0x2f2   : > { %15562 = vmatprep.subr.bf16.mxu1 %v19896_v31 }
 0x2f5   : > { %15564 = vmatpush3.bf16.msra.mxu1 %v17605_v54 }
 0x2f6   : > { %15565 = vmatprep.subr.bf16.mxu1 %v19896_v31 }
 0x2f9   : > { %15567 = vmatpush3.bf16.msra.mxu1 %v17609_v59 }
 0x2fa   : > { %15568 = vmatprep.subr.bf16.mxu1 %v19896_v31 }
 0x2fd   : > { %15570 = vmatpush3.bf16.msra.mxu1 %v17613_v1 }
 0x2fe   : > { %15571 = vmatprep.subr.bf16.mxu1 %v19896_v31 }
 0x301   : > { %15573 = vmatpush3.bf16.msra.mxu1 %v17623_v6 }
 0x302   : > { %15574 = vmatprep.subr.bf16.mxu1 %v19896_v31 }
 0x305   : > { %15576 = vmatpush3.bf16.msra.mxu1 %v17643_v15 }
 0x306   : > { %15577 = vmatprep.subr.bf16.mxu1 %v19896_v31 }
 0x309   : > { %15579 = vmatpush3.bf16.msra.mxu1 %v17654_v18 }
 0x30c   : > { %13512 = vmatmul.mubr.f32.vlgmr.msra.gmra.mrb[8].mxu1 %v17824_v51 }
 0x3df   : > { %v1721_v4 = vpop.f32.mrb[8].mxu1 }
 0x3e0   : > { %v1725_v7 = vmul.f32 0.00390625, %v1721_v4  ;;  %v13513_v8 = vpop.f32.mrb[9].mxu1  ;;  %v16945_v4 = vld [vmem:[#allocation2 + $0x1d8] sm:$0xff]  }
 0x3e1   : > { %v16947_v8 = vld [vmem:[#allocation2 + $0x1e0] sm:$0xff]  }
 0x3e2   : > { %v1726_v10 = vmul.f32 %v1725_v7, %v1725_v7  ;;  %v1735_v51 = vrot.slane %v1725_v7, %v17971_v57 }
 0x3e4   : > { %v1728_v13 = vrot.slane %v1726_v10, 7  ;;  %v1736_v30 = vsub.f32 %v17813_v27, %v1735_v51  ;;  %v1737_v16 = vsub.f32 %v17815_v39, %v1735_v51  ;;  %v16941_v39 = vld [vmem:[#allocation2 + $0x1c8] sm:$0xff]   ;;  %v16942_v27 = vld [vmem:[#allocation2 + $0x210] sm:$0xff]  }
 0x3e5   : > { %v16948_v10 = vld [vmem:[#allocation2 + $0x228] sm:$0xff]  }
 0x3e6   : > { %v1730_v40 = vsub.f32 %v1725_v7, %v1728_v13  ;;  %v16946_v7 = vld [vmem:[#allocation2 + $0x220] sm:$0xff]   ;;  %v16949_v13 = vld [vmem:[#allocation2 + $0x1e8] sm:$0xff]  }
 0x3e8   : > { %v1731_v9 = vmax.f32 %v1730_v40, 0.0  ;;  %v16950_v40 = vld [vmem:[#allocation2 + $0x230] sm:$0xff]  }
 0x3ea   : > { %v1738_v55 = vadd.f32 1e-05, %v1731_v9  ;;  %v16952_v9 = vld [vmem:[#allocation2 + $0x238] sm:$0xff]  }
 0x3ec   : > { %17259 = vrsqrt.f32 %v1738_v55  ;;  %v16953_v55 = vld [vmem:[#allocation2 + $0x1f8] sm:$0xff]  }
 0x3f6   : > { %v17260_v47 = vpop.eup %17259 }
 0x3f7   : > { %v1743_v17 = vrot.slane %v17260_v47, %v17974_v58 }
 0x3f9   : > { %v1744_v23 = vmul.f32 %v1743_v17, %v1736_v30  ;;  %v1745_v24 = vmul.f32 %v1743_v17, %v1737_v16 }
 0x3fb   : > { %v1746_v32 = vmax.f32 %v1744_v23, 0.0  ;;  %v1747_v33 = vmax.f32 %v1745_v24, 0.0  ;;  %v16955_v23 = vld [vmem:[#allocation2 + $0x240] sm:$0xff]  }
 0x3fd   : > { %v1748_v42 = vpack.c.bf16 %v1747_v33, %v1746_v32  ;;  %v16956_v32 = vld [vmem:[#allocation2 + $0x288] sm:$0xff]  }
 0x3ff   : > { %13514 = vmatprep.subr.bf16.mxu0 %v1748_v42 }
 0x400   : > { %13515 = vmatpush3.bf16.msra.mxu0 %v1748_v42  ;;  %v16957_v42 = vld [vmem:[#allocation2 + $0x248] sm:$0xff]  }
 0x401   : > { %12012 = vmatprep.subr.bf16.mxu0 %v16938_v43  ;;  %v16958_v43 = vld [vmem:[#allocation2 + $0x290] sm:$0xff]  }
 0x403   : > { %13517 = vmatmul.mubr.msk.bf16.vlgmr.msra.gmra.mrb[36].mxu0 %vm320_vm1, %v16937_v52  ;;  %v16959_v52 = vld [vmem:[#allocation2 + $0x250] sm:$0xff]  }
 0x404   : > { %12013 = vmatpush3.bf16.msra.mxu0 %v16939_v53  ;;  %v16960_v53 = vld [vmem:[#allocation2 + $0x298] sm:$0xff]  }
 0x405   : > { %12014 = vmatprep.subr.bf16.mxu0 %v16940_v61  ;;  %v16961_v61 = vld [vmem:[#allocation2 + $0x258] sm:$0xff]  }
 0x408   : > { %12015 = vmatpush3.bf16.msra.mxu0 %v16941_v39  ;;  %v16962_v39 = vld [vmem:[#allocation2 + $0x2a0] sm:$0xff]  }
 0x409   : > { %12016 = vmatprep.subr.bf16.mxu0 %v16942_v27  ;;  %v16963_v27 = vld [vmem:[#allocation2 + $0x260] sm:$0xff]  }
 0x40c   : > { %12017 = vmatpush3.bf16.msra.mxu0 %v16943_v62  ;;  %v16964_v62 = vld [vmem:[#allocation2 + $0x2a8] sm:$0xff]  }
 0x40d   : > { %12018 = vmatprep.subr.bf16.mxu0 %v16944_v3  ;;  %v16965_v3 = vld [vmem:[#allocation2 + $0x268] sm:$0xff]  }
 0x410   : > { %12019 = vmatpush3.bf16.msra.mxu0 %v16945_v4  ;;  %v16966_v4 = vld [vmem:[#allocation2 + $0x2b0] sm:$0xff]  }
 0x411   : > { %12020 = vmatprep.subr.bf16.mxu0 %v16946_v7  ;;  %v16967_v7 = vld [vmem:[#allocation2 + $0x270] sm:$0xff]  }
 0x414   : > { %12021 = vmatpush3.bf16.msra.mxu0 %v16947_v8  ;;  %v16968_v8 = vld [vmem:[#allocation2 + $0x2b8] sm:$0xff]  }
 0x415   : > { %12022 = vmatprep.subr.bf16.mxu0 %v16948_v10  ;;  %v16969_v10 = vld [vmem:[#allocation2 + $0x278] sm:$0xff]  }
 0x418   : > { %12023 = vmatpush3.bf16.msra.mxu0 %v16949_v13 }
 0x419   : > { %12024 = vmatprep.subr.bf16.mxu0 %v16950_v40  ;;  %v2159_v40 = vld [vmem:[#allocation4 + $0x80] sm:$0xff] }
 0x41c   : > { %12025 = vmatpush3.bf16.msra.mxu0 %v16951_v11  ;;  %v2160_v11 = vld [vmem:[#allocation4 + $0x88] sm:$0xff] }
 0x41d   : > { %12026 = vmatprep.subr.bf16.mxu0 %v16952_v9  ;;  %v2190_v9 = vand.u32 4294901760, %v2159_v40 }
 0x41f   : > { %v18034_v21 = vsub.f32 %v2159_v40, %v2190_v9 }
 0x420   : > { %12027 = vmatpush3.bf16.msra.mxu0 %v16953_v55  ;;  %v2193_v55 = vand.u32 4294901760, %v2160_v11 }
 0x421   : > { %12034 = vmatprep.subr.bf16.mxu0 %v16954_v41  ;;  %v19763_v35 = vand.u32 4294901760, %v18034_v21 }
 0x422   : > { %v17986_v41 = vpack.c.bf16 %v2193_v55, %v2190_v9  ;;  %v18036_v5 = vsub.f32 %v2160_v11, %v2193_v55 }
 0x423   : > { %v2284_v40 = vsub.f32 %v18034_v21, %v19763_v35 }
 0x424   : > { %19922 = vst [vmem:[#allocation42_spill] sm:$0xff] %v17986_v41  ;;  %v19762_v26 = vand.u32 4294901760, %v18036_v5 }
 0x425   : > { %v2285_v22 = vand.u32 4294901760, %v2284_v40 }
 0x426   : > { %v2291_v11 = vsub.f32 %v18036_v5, %v19762_v26 }
 0x428   : > { %v2292_v48 = vand.u32 4294901760, %v2291_v11 }
 0x42a   : > { %v18062_v25 = vpack.c.bf16 %v2292_v48, %v2285_v22 }
 0x42c   : > { %19930 = vst [vmem:[#allocation50_spill] sm:$0xff] %v18062_v25 }
 0x4d6   : > { %v13518_v51 = vpop.f32.mrb[36].mxu0 }
 0x4d7   : > { %v1803_v47 = vpop.f32.mrb[37].mxu0  ;;  %v1884_v13 = vpack.c.bf16 %v13518_v51, %v13518_v51 }
 0x4d8   : > { %v13519_v30 = vpop.f32.mrb[38].mxu0  ;;  %v1882_v24 = vpack.c.bf16 %v1803_v47, %v1803_v47  ;;  %v2161_v47 = vld [vmem:[#allocation4 + $0x90] sm:$0xff] }
 0x4d9   : > { %v1806_v16 = vpop.f32.mrb[39].mxu0  ;;  %v1885_v33 = vpack.c.bf16 %v13519_v30, %v13519_v30  ;;  %v2162_v30 = vld [vmem:[#allocation4 + $0x98] sm:$0xff] }
 0x4da   : > { %v1883_v17 = vpack.c.bf16 %v1806_v16, %v1806_v16  ;;  %v2196_v16 = vand.u32 4294901760, %v2161_v47  ;;  %v2199_v51 = vand.u32 4294901760, %v2162_v30 }
 0x4dc   : > { %2110 = vmatprep.mubr.bf16.mxu0 %v1883_v17  ;;  %v17990_v17 = vpack.c.bf16 %v2199_v51, %v2196_v16  ;;  %v18054_v9 = vsub.f32 %v2161_v47, %v2196_v16  ;;  %v18056_v55 = vsub.f32 %v2162_v30, %v2199_v51 }
 0x4dd   : > { %2111 = vmatmul.mubr.bf16.vlgmr.msra.gmra.mrb[40].mxu0 %v1882_v24  ;;  %v2164_v24 = vld [vmem:[#allocation4 + $0xa8] sm:$0xff] }
 0x4de   : > { %12035 = vmatpush3.bf16.msra.mxu0 %v16955_v23  ;;  %2150 = vmatprep.mubr.bf16.mxu0 %v1885_v33  ;;  %19923 = vst [vmem:[#allocation43_spill] sm:$0xff] %v17990_v17  ;;  %v2163_v23 = vld [vmem:[#allocation4 + $0xa0] sm:$0xff]  ;;  %v2205_v33 = vand.u32 4294901760, %v2164_v24  ;;  %v19766_v37 = vand.u32 4294901760, %v18054_v9  ;;  %v19764_v20 = vand.u32 4294901760, %v18056_v55 }
 0x4df   : > { %12036 = vmatprep.subr.bf16.mxu0 %v16956_v32  ;;  %v2202_v32 = vand.u32 4294901760, %v2163_v23 }
 0x4e0   : > { %v2298_v26 = vsub.f32 %v18054_v9, %v19766_v37  ;;  %v2305_v47 = vsub.f32 %v18056_v55, %v19764_v20  ;;  %v18072_v16 = vsub.f32 %v2164_v24, %v2205_v33 }
 0x4e1   : > { %v18070_v30 = vsub.f32 %v2163_v23, %v2202_v32 }
 0x4e2   : > { %12037 = vmatpush3.bf16.msra.mxu0 %v16957_v42  ;;  %v17994_v42 = vpack.c.bf16 %v2205_v33, %v2202_v32  ;;  %v2299_v51 = vand.u32 4294901760, %v2298_v26  ;;  %v2306_v40 = vand.u32 4294901760, %v2305_v47  ;;  %v19777_v35 = vand.u32 4294901760, %v18072_v16 }
 0x4e3   : > { %12038 = vmatprep.subr.bf16.mxu0 %v16958_v43  ;;  %v2165_v43 = vld [vmem:[#allocation4 + $0xb0] sm:$0xff]  ;;  %v19765_v11 = vand.u32 4294901760, %v18070_v30 }
 0x4e4   : > { %19924 = vst [vmem:[#allocation44_spill] sm:$0xff] %v17994_v42  ;;  %v18076_v22 = vpack.c.bf16 %v2306_v40, %v2299_v51  ;;  %v2319_v20 = vsub.f32 %v18072_v16, %v19777_v35 }
 0x4e5   : > { %v2312_v48 = vsub.f32 %v18070_v30, %v19765_v11 }
 0x4e6   : > { %12039 = vmatpush3.bf16.msra.mxu0 %v16959_v52  ;;  %v2166_v52 = vld [vmem:[#allocation4 + $0xb8] sm:$0xff]  ;;  %19931 = vst [vmem:[#allocation51_spill] sm:$0xff] %v18076_v22  ;;  %v2320_v32 = vand.u32 4294901760, %v2319_v20 }
 0x4e7   : > { %12040 = vmatprep.subr.bf16.mxu0 %v16960_v53  ;;  %v2208_v53 = vand.u32 4294901760, %v2165_v43  ;;  %v2313_v26 = vand.u32 4294901760, %v2312_v48 }
 0x4e9   : > { %v18084_v23 = vsub.f32 %v2165_v43, %v2208_v53  ;;  %v18090_v51 = vpack.c.bf16 %v2320_v32, %v2313_v26 }
 0x4ea   : > { %12041 = vmatpush3.bf16.msra.mxu0 %v16961_v61  ;;  %v2211_v61 = vand.u32 4294901760, %v2166_v52 }
 0x4eb   : > { %12042 = vmatprep.subr.bf16.mxu0 %v16962_v39  ;;  %v19776_v33 = vand.u32 4294901760, %v18084_v23  ;;  %19932 = vst [vmem:[#allocation52_spill] sm:$0xff] %v18090_v51 }
 0x4ec   : > { %v17998_v39 = vpack.c.bf16 %v2211_v61, %v2208_v53  ;;  %v18086_v24 = vsub.f32 %v2166_v52, %v2211_v61 }
 0x4ed   : > { %v2326_v40 = vsub.f32 %v18084_v23, %v19776_v33 }
 0x4ee   : > { %12043 = vmatpush3.bf16.msra.mxu0 %v16963_v27  ;;  %19925 = vst [vmem:[#allocation45_spill] sm:$0xff] %v17998_v39  ;;  %v2167_v27 = vld [vmem:[#allocation4 + $0xc0] sm:$0xff]  ;;  %v19767_v47 = vand.u32 4294901760, %v18086_v24 }
 0x4ef   : > { %12044 = vmatprep.subr.bf16.mxu0 %v16964_v62  ;;  %v2168_v62 = vld [vmem:[#allocation4 + $0xc8] sm:$0xff]  ;;  %v2327_v52 = vand.u32 4294901760, %v2326_v40 }
 0x4f0   : > { %v2333_v43 = vsub.f32 %v18086_v24, %v19767_v47 }
 0x4f2   : > { %12045 = vmatpush3.bf16.msra.mxu0 %v16965_v3  ;;  %v2214_v3 = vand.u32 4294901760, %v2167_v27  ;;  %v2334_v61 = vand.u32 4294901760, %v2333_v43 }
 0x4f3   : > { %12046 = vmatprep.subr.bf16.mxu0 %v16966_v4  ;;  %v2217_v4 = vand.u32 4294901760, %v2168_v62 }
 0x4f4   : > { %v18095_v11 = vsub.f32 %v2167_v27, %v2214_v3 }
 0x4f5   : > { %v18097_v37 = vsub.f32 %v2168_v62, %v2217_v4 }
 0x4f6   : > { %12047 = vmatpush3.bf16.msra.mxu0 %v16967_v7  ;;  %v18002_v7 = vpack.c.bf16 %v2217_v4, %v2214_v3  ;;  %v19772_v20 = vand.u32 4294901760, %v18095_v11  ;;  %v18116_v4 = vpack.c.bf16 %v2334_v61, %v2327_v52 }
 0x4f7   : > { %12048 = vmatprep.subr.bf16.mxu0 %v16968_v8  ;;  %v18004_v8 = vld [vmem:[#allocation4 + $0xd0] sm:$0xff]  ;;  %v19768_v53 = vand.u32 4294901760, %v18097_v37 }
 0x4f8   : > { %19926 = vst [vmem:[#allocation46_spill] sm:$0xff] %v18002_v7  ;;  %v2340_v48 = vsub.f32 %v18095_v11, %v19772_v20  ;;  %19933 = vst [vmem:[#allocation53_spill] sm:$0xff] %v18116_v4 }
 0x4f9   : > { %v2347_v27 = vsub.f32 %v18097_v37, %v19768_v53 }
 0x4fa   : > { %12049 = vmatpush3.bf16.msra.mxu0 %v16969_v10  ;;  %v18006_v10 = vld [vmem:[#allocation4 + $0xd8] sm:$0xff]  ;;  %v2341_v26 = vand.u32 4294901760, %v2340_v48 }
 0x4fb   : > { %15580 = vmatprep.subr.bf16.mxu0 %v19896_v31  ;;  %v2348_v32 = vand.u32 4294901760, %v2347_v27 }
 0x4fd   : > { %2151 = vmatmul.mubr.bf16.vlgmr.msra.gmra.mrb[44].mxu0 %v1884_v13  ;;  %v2220_v13 = vand.u32 4294901760, %v18004_v8  ;;  %v18120_v47 = vpack.c.bf16 %v2348_v32, %v2341_v26 }
 0x4fe   : > { %13552 = vmatprep.mubr.msk.f32.mxu0 %vm17389_vm0, %v19740_v0  ;;  %15582 = vmatpush3.bf16.msra.mxu0 %v17986_v41  ;;  %v2223_v0 = vand.u32 4294901760, %v18006_v10 }
 0x4ff   : > { %15583 = vmatprep.subr.bf16.mxu0 %v19896_v31  ;;  %v18111_v62 = vsub.f32 %v18004_v8, %v2220_v13  ;;  %19934 = vst [vmem:[#allocation54_spill] sm:$0xff] %v18120_v47 }
 0x500   : > { %v18012_v56 = vpack.c.bf16 %v2223_v0, %v2220_v13  ;;  %v18114_v3 = vsub.f32 %v18006_v10, %v2223_v0  ;;  %v19935_v0 = vand.u32 4294901760, %v18014_v36  ;;  %v19936_v13 = vand.u32 4294901760, %v18016_v19 }
 0x501   : > { %v19771_v40 = vand.u32 4294901760, %v18111_v62 }
 0x502   : > { %15585 = vmatpush3.bf16.msra.mxu0 %v17990_v17  ;;  %19927 = vst [vmem:[#allocation47_spill] sm:$0xff] %v18012_v56  ;;  %v19769_v43 = vand.u32 4294901760, %v18114_v3  ;;  %v18131_v10 = vsub.f32 %v18014_v36, %v19935_v0  ;;  %v18136_v52 = vsub.f32 %v18016_v19, %v19936_v13  ;;  %v19938_v36 = vand.u32 4294901760, %v18018_v45 }
 0x503   : > { %15586 = vmatprep.subr.bf16.mxu0 %v19896_v31  ;;  %v2354_v53 = vsub.f32 %v18111_v62, %v19771_v40  ;;  %v19939_v19 = vand.u32 4294901760, %v18023_v28 }
 0x504   : > { %v2361_v8 = vsub.f32 %v18114_v3, %v19769_v43  ;;  %v19770_v27 = vand.u32 4294901760, %v18131_v10  ;;  %v19775_v26 = vand.u32 4294901760, %v18136_v52  ;;  %v18148_v0 = vsub.f32 %v18018_v45, %v19938_v36 }
 0x505   : > { %v2355_v61 = vand.u32 4294901760, %v2354_v53  ;;  %v18153_v53 = vsub.f32 %v18023_v28, %v19939_v19 }
 0x506   : > { %15588 = vmatpush3.bf16.msra.mxu0 %v17994_v42  ;;  %v2362_v48 = vand.u32 4294901760, %v2361_v8  ;;  %v2368_v43 = vsub.f32 %v18131_v10, %v19770_v27  ;;  %v2375_v8 = vsub.f32 %v18136_v52, %v19775_v26 }
 0x507   : > { %15589 = vmatprep.subr.bf16.mxu0 %v19896_v31 }
 0x508   : > { %v18140_v32 = vpack.c.bf16 %v2362_v48, %v2355_v61  ;;  %v2369_v13 = vand.u32 4294901760, %v2368_v43  ;;  %v19773_v61 = vand.u32 4294901760, %v18148_v0  ;;  %v19774_v48 = vand.u32 4294901760, %v18153_v53 }
 0x509   : > { %v2376_v27 = vand.u32 4294901760, %v2375_v8  ;;  %v18172_v43 = vpack.c.bf16 %v18036_v5, %v18034_v21  ;;  %v18176_v8 = vpack.c.bf16 %v18056_v55, %v18054_v9 }
 0x50a   : > { %15591 = vmatpush3.bf16.msra.mxu0 %v17998_v39  ;;  %19937 = vst [vmem:[#allocation55_spill] sm:$0xff] %v18140_v32  ;;  %v2382_v45 = vsub.f32 %v18148_v0, %v19773_v61  ;;  %v2389_v36 = vsub.f32 %v18153_v53, %v19774_v48  ;;  %v18180_v61 = vpack.c.bf16 %v18072_v16, %v18070_v30 }
 0x50b   : > { %15592 = vmatprep.subr.bf16.mxu0 %v19896_v31  ;;  %v18166_v28 = vpack.c.bf16 %v2376_v27, %v2369_v13  ;;  %19942 = vst [vmem:[#allocation58_spill] sm:$0xff] %v18172_v43  ;;  %19943 = vst [vmem:[#allocation59_spill] sm:$0xff] %v18176_v8  ;;  %v18184_v27 = vpack.c.bf16 %v18086_v24, %v18084_v23  ;;  %v18192_v13 = vpack.c.bf16 %v18114_v3, %v18111_v62 }
 0x50c   : > { %v2383_v19 = vand.u32 4294901760, %v2382_v45  ;;  %v2390_v40 = vand.u32 4294901760, %v2389_v36  ;;  %19944 = vst [vmem:[#allocation60_spill] sm:$0xff] %v18180_v61  ;;  %v18196_v45 = vpack.c.bf16 %v18136_v52, %v18131_v10  ;;  %v18200_v36 = vpack.c.bf16 %v18153_v53, %v18148_v0 }
 0x50d   : > { %19940 = vst [vmem:[#allocation56_spill] sm:$0xff] %v18166_v28  ;;  %19945 = vst [vmem:[#allocation61_spill] sm:$0xff] %v18184_v27 }
 0x50e   : > { %15594 = vmatpush3.bf16.msra.mxu0 %v18002_v7  ;;  %v18168_v20 = vpack.c.bf16 %v2390_v40, %v2383_v19  ;;  %v18188_v40 = vpack.c.bf16 %v18097_v37, %v18095_v11  ;;  %19947 = vst [vmem:[#allocation63_spill] sm:$0xff] %v18192_v13  ;;  %19948 = vst [vmem:[#allocation64_spill] sm:$0xff] %v18196_v45 }
 0x50f   : > { %15595 = vmatprep.subr.bf16.mxu0 %v19896_v31  ;;  %19949 = vst [vmem:[#allocation65_spill] sm:$0xff] %v18200_v36 }
 0x510   : > { %19941 = vst [vmem:[#allocation57_spill] sm:$0xff] %v18168_v20  ;;  %19946 = vst [vmem:[#allocation62_spill] sm:$0xff] %v18188_v40 }
 0x512   : > { %15597 = vmatpush3.bf16.msra.mxu0 %v18012_v56 }
 0x513   : > { %15598 = vmatprep.subr.bf16.mxu0 %v19896_v31 }
 0x516   : > { %15600 = vmatpush3.bf16.msra.mxu0 %v18032_v14 }
 0x517   : > { %15601 = vmatprep.subr.bf16.mxu0 %v19896_v31 }
 0x51a   : > { %15603 = vmatpush3.bf16.msra.mxu0 %v18043_v2 }
 0x51b   : > { %15604 = vmatprep.subr.bf16.mxu0 %v19896_v31 }
 0x5b0   : > { %v12028_v19 = vpop.f32.mrb[40].mxu0 }
 0x5b1   : > { %v12029_v48 = vpop.f32.mrb[41].mxu0 }
 0x5b2   : > { %v12030_v26 = vadd.f32 %v12029_v48, %v12028_v19  ;;  %v12031_v33 = vpop.f32.mrb[42].mxu0 }
 0x5b3   : > { %v12032_v35 = vpop.f32.mrb[43].mxu0 }
 0x5d0   : > { %v12050_v60 = vpop.f32.mrb[44].mxu0 }
 0x5d1   : > { %v12051_v12 = vpop.f32.mrb[45].mxu0 }
 0x5d2   : > { %v12052_v46 = vadd.f32 %v12051_v12, %v12050_v60  ;;  %v12053_v34 = vpop.f32.mrb[46].mxu0 }
 0x5d3   : > { %v12054_v63 = vpop.f32.mrb[47].mxu0 }
 0x5d4   : > { %v18202_v50 = vadd.f32 %v12052_v46, %v12030_v26 }
 0x5d6   : > { %v2175_v38 = vrot.slane %v18202_v50, 4  ;;  %v2181_v29 = vmul.f32 %v18202_v50, %v18202_v50 }
 0x5d8   : > { %v2176_v18 = vadd.f32 %v2175_v38, %v18202_v50  ;;  %v2182_v15 = vrot.slane %v2181_v29, 4  ;;  %v19958_v38 = vand.u32 4294901760, %v18072_v16  ;;  %v19964_v16 = vand.u32 4294901760, %v18097_v37 }
 0x5d9   : > { %v19970_v37 = vand.u32 4294901760, %v18136_v52 }
 0x5da   : > { %v2177_v6 = vrot.slane %v2176_v18, 2  ;;  %v2183_v1 = vadd.f32 %v2182_v15, %v2181_v29  ;;  %v19950_v15 = vmov 0.0   ;;  %v19957_v29 = vand.u32 4294901760, %v18070_v30 }
 0x5db   : > { %v19963_v30 = vand.u32 4294901760, %v18095_v11  ;;  %v19969_v11 = vand.u32 4294901760, %v18131_v10  ;;  %v16970_v10 = vld [vmem:[%s19715_s1 + $0x48] sm:$0xff]  }
 0x5dc   : > { %v2178_v48 = vadd.f32 %v2177_v6, %v2176_v18  ;;  %v2184_v33 = vrot.slane %v2183_v1, 2  ;;  %v19955_v6 = vand.u32 4294901760, %v18056_v55  ;;  %13732 = vmatprep.mubr.msk.bf16.mxu1 %vm2865_vm3, %v16970_v10  ;;  %v16981_v10 = vld [vmem:[#allocation2 + $0x2e0] sm:$0xff]  }
 0x5de   : > { %v2179_v35 = vrot.slane %v2178_v48, 1  ;;  %v2185_v19 = vadd.f32 %v2184_v33, %v2183_v1  ;;  %v19954_v1 = vand.u32 4294901760, %v18054_v9  ;;  %v19961_v9 = vand.u32 4294901760, %v18086_v24 }
 0x5df   : > { %v19967_v24 = vand.u32 4294901760, %v18114_v3  ;;  %v19973_v3 = vand.u32 4294901760, %v18153_v53 }
 0x5e0   : > { %v2186_v59 = vrot.slane %v2185_v19, 1  ;;  %v2180_v12 = vadd.f32 %v2179_v35, %v2178_v48  ;;  %v18278_v18 = vpack.c.bf16 %v19955_v6, %v19954_v1  ;;  %v18304_v48 = vpack.c.bf16 %v19964_v16, %v19963_v30  ;;  %v16971_v30 = vld [vmem:[%s19715_s1 + $0x50] sm:$0xff]   ;;  %v16973_v16 = vld [vmem:[#allocation2 + $0x2c0] sm:$0xff]  }
 0x5e1   : > { %v18320_v35 = vpack.c.bf16 %v19970_v37, %v19969_v11  ;;  %v16977_v11 = vld [vmem:[#allocation2 + $0x2d0] sm:$0xff]   ;;  %v16978_v37 = vld [vmem:[#allocation2 + $0x318] sm:$0xff]  }
 0x5e2   : > { %v2187_v34 = vadd.f32 %v2186_v59, %v2185_v19  ;;  %19956 = vst [vmem:[#allocation67_spill] sm:$0xff] %v18278_v18  ;;  %19965 = vst [vmem:[#allocation70_spill] sm:$0xff] %v18304_v48 }
 0x5e3   : > { %19971 = vst [vmem:[#allocation72_spill] sm:$0xff] %v18320_v35 }
 0x5e4   : > { %v2188_v63 = vsel %vm1082_vm2, %v2180_v12, %v2187_v34 }
 0x5e5   : > { %v18209_v46 = vand.u32 4294901760, %v2188_v63 }
 0x5e7   : > { %v2271_v60 = vsub.f32 %v2188_v63, %v18209_v46 }
 0x5e9   : > { %v2272_v26 = vand.u32 4294901760, %v2271_v60 }
 0x5eb   : > { %v2273_v54 = vsub.f32 %v2271_v60, %v2272_v26 }
 0x5ed   : > { %v2274_v49 = vand.u32 4294901760, %v2273_v54  ;;  %v19952_v54 = vand.u32 4294901760, %v18036_v5  ;;  %v18288_v5 = vpack.c.bf16 %v19958_v38, %v19957_v29 }
 0x5ef   : > { %13553 = vmatmul.mubr.f32.vlgmr.msra.gmra.mrb[48].mxu0 %v2274_v49  ;;  %v19951_v49 = vand.u32 4294901760, %v18034_v21  ;;  %19959 = vst [vmem:[#allocation68_spill] sm:$0xff] %v18288_v5  ;;  %v19960_v21 = vand.u32 4294901760, %v18084_v23  ;;  %v19966_v23 = vand.u32 4294901760, %v18111_v62  ;;  %v19972_v62 = vand.u32 4294901760, %v18148_v0 }
 0x5f0   : > { %15606 = vmatpush3.bf16.msra.mxu0 %v18062_v25  ;;  %13587 = vmatprep.mubr.msk.f32.mxu0 %vm17389_vm0, %v19950_v15 }
 0x5f1   : > { %15607 = vmatprep.subr.bf16.mxu0 %v19896_v31  ;;  %v18270_v59 = vpack.c.bf16 %v19952_v54, %v19951_v49  ;;  %v18296_v55 = vpack.c.bf16 %v19961_v9, %v19960_v21  ;;  %v18312_v33 = vpack.c.bf16 %v19967_v24, %v19966_v23  ;;  %v18328_v19 = vpack.c.bf16 %v19973_v3, %v19972_v62  ;;  %v16972_v21 = vld [vmem:[#allocation2 + $0x300] sm:$0xff]   ;;  %v16974_v23 = vld [vmem:[#allocation2 + $0x308] sm:$0xff]   ;;  %v16976_v24 = vld [vmem:[#allocation2 + $0x310] sm:$0xff]  }
 0x5f2   : > { %v16979_v62 = vld [vmem:[#allocation2 + $0x2d8] sm:$0xff]   ;;  %v16980_v3 = vld [vmem:[#allocation2 + $0x320] sm:$0xff]  }
 0x5f3   : > { %19953 = vst [vmem:[#allocation66_spill] sm:$0xff] %v18270_v59  ;;  %19962 = vst [vmem:[#allocation69_spill] sm:$0xff] %v18296_v55 }
 0x5f4   : > { %15609 = vmatpush3.bf16.msra.mxu0 %v18076_v22  ;;  %19968 = vst [vmem:[#allocation71_spill] sm:$0xff] %v18312_v33  ;;  %19974 = vst [vmem:[#allocation73_spill] sm:$0xff] %v18328_v19 }
 0x5f5   : > { %15610 = vmatprep.subr.bf16.mxu0 %v19896_v31 }
 0x5f8   : > { %15612 = vmatpush3.bf16.msra.mxu0 %v18090_v51 }
 0x5f9   : > { %15613 = vmatprep.subr.bf16.mxu0 %v19896_v31 }
 0x5fc   : > { %15615 = vmatpush3.bf16.msra.mxu0 %v18116_v4 }
 0x5fd   : > { %15616 = vmatprep.subr.bf16.mxu0 %v19896_v31 }
 0x600   : > { %15618 = vmatpush3.bf16.msra.mxu0 %v18120_v47 }
 0x601   : > { %15619 = vmatprep.subr.bf16.mxu0 %v19896_v31 }
 0x604   : > { %15621 = vmatpush3.bf16.msra.mxu0 %v18140_v32 }
 0x605   : > { %15622 = vmatprep.subr.bf16.mxu0 %v19896_v31 }
 0x608   : > { %15624 = vmatpush3.bf16.msra.mxu0 %v18166_v28 }
 0x609   : > { %15625 = vmatprep.subr.bf16.mxu0 %v19896_v31 }
 0x60c   : > { %15627 = vmatpush3.bf16.msra.mxu0 %v18168_v20 }
 0x60d   : > { %15628 = vmatprep.subr.bf16.mxu0 %v19896_v31 }
 0x60f   : > { %13588 = vmatmul.mubr.f32.vlgmr.msra.gmra.mrb[48].mxu0 %v18209_v46 }
 0x610   : > { %15630 = vmatpush3.bf16.msra.mxu0 %v18172_v43  ;;  %13622 = vmatprep.mubr.msk.f32.mxu0 %vm17389_vm0, %v19950_v15 }
 0x611   : > { %15631 = vmatprep.subr.bf16.mxu0 %v19896_v31 }
 0x614   : > { %15633 = vmatpush3.bf16.msra.mxu0 %v18176_v8 }
 0x615   : > { %15634 = vmatprep.subr.bf16.mxu0 %v19896_v31 }
 0x618   : > { %15636 = vmatpush3.bf16.msra.mxu0 %v18180_v61 }
 0x619   : > { %15637 = vmatprep.subr.bf16.mxu0 %v19896_v31 }
 0x61c   : > { %15639 = vmatpush3.bf16.msra.mxu0 %v18184_v27 }
 0x61d   : > { %15640 = vmatprep.subr.bf16.mxu0 %v19896_v31 }
 0x620   : > { %15642 = vmatpush3.bf16.msra.mxu0 %v18188_v40 }
 0x621   : > { %15643 = vmatprep.subr.bf16.mxu0 %v19896_v31 }
 0x624   : > { %15645 = vmatpush3.bf16.msra.mxu0 %v18192_v13 }
 0x625   : > { %15646 = vmatprep.subr.bf16.mxu0 %v19896_v31 }
 0x628   : > { %15648 = vmatpush3.bf16.msra.mxu0 %v18196_v45 }
 0x629   : > { %15649 = vmatprep.subr.bf16.mxu0 %v19896_v31 }
 0x62c   : > { %15651 = vmatpush3.bf16.msra.mxu0 %v18200_v36 }
 0x62d   : > { %15652 = vmatprep.subr.bf16.mxu0 %v19896_v31 }
 0x62f   : > { %13623 = vmatmul.mubr.f32.vlgmr.msra.gmra.mrb[48].mxu0 %v2271_v60 }
 0x630   : > { %15654 = vmatpush3.bf16.msra.mxu0 %v17986_v41  ;;  %13657 = vmatprep.mubr.msk.f32.mxu0 %vm17389_vm0, %v19950_v15 }
 0x631   : > { %15655 = vmatprep.subr.bf16.mxu0 %v19896_v31 }
 0x634   : > { %15657 = vmatpush3.bf16.msra.mxu0 %v17990_v17 }
 0x635   : > { %15658 = vmatprep.subr.bf16.mxu0 %v19896_v31 }
 0x638   : > { %15660 = vmatpush3.bf16.msra.mxu0 %v17994_v42 }
 0x639   : > { %15661 = vmatprep.subr.bf16.mxu0 %v19896_v31 }
 0x63c   : > { %15663 = vmatpush3.bf16.msra.mxu0 %v17998_v39 }
 0x63d   : > { %15664 = vmatprep.subr.bf16.mxu0 %v19896_v31 }
 0x640   : > { %15666 = vmatpush3.bf16.msra.mxu0 %v18002_v7 }
 0x641   : > { %15667 = vmatprep.subr.bf16.mxu0 %v19896_v31 }
 0x644   : > { %15669 = vmatpush3.bf16.msra.mxu0 %v18012_v56 }
 0x645   : > { %15670 = vmatprep.subr.bf16.mxu0 %v19896_v31 }
 0x648   : > { %15672 = vmatpush3.bf16.msra.mxu0 %v18032_v14 }
 0x649   : > { %15673 = vmatprep.subr.bf16.mxu0 %v19896_v31 }
 0x64c   : > { %15675 = vmatpush3.bf16.msra.mxu0 %v18043_v2 }
 0x64d   : > { %15676 = vmatprep.subr.bf16.mxu0 %v19896_v31 }
 0x64f   : > { %13658 = vmatmul.mubr.f32.vlgmr.msra.gmra.mrb[48].mxu0 %v2272_v26 }
 0x650   : > { %15678 = vmatpush3.bf16.msra.mxu0 %v18270_v59  ;;  %13692 = vmatprep.mubr.msk.f32.mxu0 %vm17389_vm0, %v19950_v15  ;;  %v18405_v59 = vld [vmem:[#allocation4 + $0x178] sm:$0xff] }
 0x651   : > { %15679 = vmatprep.subr.bf16.mxu0 %v19896_v31  ;;  %v19818_v45 = vand.u32 4294901760, %v18405_v59 }
 0x654   : > { %15681 = vmatpush3.bf16.msra.mxu0 %v18278_v18 }
 0x655   : > { %15682 = vmatprep.subr.bf16.mxu0 %v19896_v31 }
 0x658   : > { %15684 = vmatpush3.bf16.msra.mxu0 %v18288_v5 }
 0x659   : > { %15685 = vmatprep.subr.bf16.mxu0 %v19896_v31 }
 0x65c   : > { %15687 = vmatpush3.bf16.msra.mxu0 %v18296_v55  ;;  %v18400_v55 = vld [vmem:[#allocation4 + $0x170] sm:$0xff] }
 0x65d   : > { %15688 = vmatprep.subr.bf16.mxu0 %v19896_v31  ;;  %v19819_v36 = vand.u32 4294901760, %v18400_v55 }
 0x65f   : > { %v18425_v61 = vpack.c.bf16 %v19818_v45, %v19819_v36 }
 0x660   : > { %15690 = vmatpush3.bf16.msra.mxu0 %v18304_v48  ;;  %v18398_v48 = vld [vmem:[#allocation4 + $0x168] sm:$0xff] }
 0x661   : > { %15691 = vmatprep.subr.bf16.mxu0 %v19896_v31  ;;  %v19820_v18 = vand.u32 4294901760, %v18398_v48 }
 0x664   : > { %15693 = vmatpush3.bf16.msra.mxu0 %v18312_v33  ;;  %v18396_v33 = vld [vmem:[#allocation4 + $0x160] sm:$0xff] }
 0x665   : > { %15694 = vmatprep.subr.bf16.mxu0 %v19896_v31  ;;  %v19821_v5 = vand.u32 4294901760, %v18396_v33 }
 0x667   : > { %v18414_v13 = vpack.c.bf16 %v19820_v18, %v19821_v5 }
 0x668   : > { %15696 = vmatpush3.bf16.msra.mxu0 %v18320_v35 }
 0x669   : > { %15697 = vmatprep.subr.bf16.mxu0 %v19896_v31 }
 0x66c   : > { %15699 = vmatpush3.bf16.msra.mxu0 %v18328_v19 }
 0x66d   : > { %15700 = vmatprep.subr.bf16.mxu0 %v19896_v31 }
 0x66f   : > { %13693 = vmatmul.mubr.f32.vlgmr.msra.gmra.mrb[48].mxu0 %v18209_v46 }
 0x670   : > { %15702 = vmatpush3.bf16.msra.mxu0 %v17986_v41  ;;  %13727 = vmatprep.mubr.msk.f32.mxu0 %vm17389_vm0, %v19950_v15 }
 0x671   : > { %15703 = vmatprep.subr.bf16.mxu0 %v19896_v31 }
 0x674   : > { %15705 = vmatpush3.bf16.msra.mxu0 %v17990_v17 }
 0x675   : > { %15706 = vmatprep.subr.bf16.mxu0 %v19896_v31 }
 0x678   : > { %15708 = vmatpush3.bf16.msra.mxu0 %v17994_v42 }
 0x679   : > { %15709 = vmatprep.subr.bf16.mxu0 %v19896_v31 }
 0x67c   : > { %15711 = vmatpush3.bf16.msra.mxu0 %v17998_v39 }
 0x67d   : > { %15712 = vmatprep.subr.bf16.mxu0 %v19896_v31 }
 0x680   : > { %15714 = vmatpush3.bf16.msra.mxu0 %v18002_v7 }
 0x681   : > { %15715 = vmatprep.subr.bf16.mxu0 %v19896_v31 }
 0x684   : > { %15717 = vmatpush3.bf16.msra.mxu0 %v18012_v56 }
 0x685   : > { %15718 = vmatprep.subr.bf16.mxu0 %v19896_v31 }
 0x688   : > { %15720 = vmatpush3.bf16.msra.mxu0 %v18032_v14 }
 0x689   : > { %15721 = vmatprep.subr.bf16.mxu0 %v19896_v31 }
 0x68c   : > { %15723 = vmatpush3.bf16.msra.mxu0 %v18043_v2 }
 0x68f   : > { %13728 = vmatmul.mubr.f32.vlgmr.msra.gmra.mrb[48].mxu0 %v18209_v46 }
 0x762   : > { %v2826_v52 = vpop.f32.mrb[48].mxu0 }
 0x763   : > { %v2830_v0 = vmul.f32 0.015625, %v2826_v52  ;;  %v13729_v53 = vpop.f32.mrb[49].mxu0  ;;  %v16982_v52 = vld [vmem:[#allocation2 + $0x328] sm:$0xff]  }
 0x764   : > { %v16984_v53 = vld [vmem:[#allocation2 + $0x330] sm:$0xff]  }
 0x765   : > { %v2831_v12 = vmul.f32 %v2830_v0, %v2830_v0  ;;  %v2840_v49 = vrot.slane %v2830_v0, %v17971_v57 }
 0x767   : > { %v2833_v34 = vrot.slane %v2831_v12, 7  ;;  %v2841_v46 = vsub.f32 %v18202_v50, %v2840_v49  ;;  %v16975_v50 = vld [vmem:[#allocation2 + $0x2c8] sm:$0xff]   ;;  %v16985_v12 = vld [vmem:[#allocation2 + $0x2f0] sm:$0xff]  }
 0x769   : > { %v2835_v63 = vsub.f32 %v2830_v0, %v2833_v34  ;;  %v16983_v0 = vld [vmem:[#allocation2 + $0x2e8] sm:$0xff]   ;;  %v16986_v34 = vld [vmem:[#allocation2 + $0x338] sm:$0xff]  }
 0x76b   : > { %v2836_v60 = vmax.f32 %v2835_v63, 0.0  ;;  %v16987_v63 = vld [vmem:[#allocation2 + $0x2f8] sm:$0xff]  }
 0x76d   : > { %v2842_v26 = vadd.f32 1e-05, %v2836_v60  ;;  %v16988_v60 = vld [vmem:[#allocation2 + $0x380] sm:$0xff]  }
 0x76f   : > { %17261 = vrsqrt.f32 %v2842_v26 }
 0x779   : > { %v17262_v54 = vpop.eup %17261 }
 0x77a   : > { %v2847_v1 = vrot.slane %v17262_v54, %v17974_v58 }
 0x77c   : > { %v2848_v6 = vmul.f32 %v2847_v1, %v2841_v46 }
 0x77e   : > { %v2849_v29 = vmax.f32 %v2848_v6, 0.0  ;;  %v16989_v6 = vld [vmem:[#allocation2 + $0x340] sm:$0xff]  }
 0x780   : > { %v2850_v38 = vpack.c.bf16 %v2849_v29, %v2849_v29 }
 0x782   : > { %16822 = vmatprep.subr.msk.bf16.mxu1 %vm2872_vm4, %v2850_v38  ;;  %v2874_v9 = vsel %vm2872_vm4, %v2850_v38, 0  ;;  %v16990_v38 = vld [vmem:[#allocation2 + $0x388] sm:$0xff]  }
 0x783   : > { %13731 = vmatpush3.bf16.msra.mxu1 %v2874_v9  ;;  %v16991_v9 = vld [vmem:[#allocation2 + $0x348] sm:$0xff]  }
 0x784   : > { %12161 = vmatprep.subr.bf16.mxu1 %v16972_v21 }
 0x786   : > { %13733 = vmatmul.mubr.msk.bf16.vlgmr.msra.gmra.mrb[12].mxu1 %vm2865_vm3, %v16971_v30  ;;  %v16992_v30 = vld [vmem:[#allocation2 + $0x390] sm:$0xff]  }
 0x787   : > { %12162 = vmatpush3.bf16.msra.mxu1 %v16973_v16  ;;  %v16993_v16 = vld [vmem:[#allocation2 + $0x350] sm:$0xff]  }
 0x788   : > { %12163 = vmatprep.subr.bf16.mxu1 %v16974_v23  ;;  %v16994_v23 = vld [vmem:[#allocation2 + $0x398] sm:$0xff]  }
 0x78b   : > { %12164 = vmatpush3.bf16.msra.mxu1 %v16975_v50  ;;  %v16995_v50 = vld [vmem:[#allocation2 + $0x358] sm:$0xff]  }
 0x78c   : > { %12165 = vmatprep.subr.bf16.mxu1 %v16976_v24  ;;  %v16996_v24 = vld [vmem:[#allocation2 + $0x3a0] sm:$0xff]  }
 0x78f   : > { %12166 = vmatpush3.bf16.msra.mxu1 %v16977_v11  ;;  %v16997_v11 = vld [vmem:[#allocation2 + $0x360] sm:$0xff]  }
 0x790   : > { %12167 = vmatprep.subr.bf16.mxu1 %v16978_v37  ;;  %v16998_v37 = vld [vmem:[#allocation2 + $0x3a8] sm:$0xff]  }
 0x793   : > { %12168 = vmatpush3.bf16.msra.mxu1 %v16979_v62  ;;  %v16999_v62 = vld [vmem:[#allocation2 + $0x368] sm:$0xff]  }
 0x794   : > { %12169 = vmatprep.subr.bf16.mxu1 %v16980_v3  ;;  %v17000_v3 = vld [vmem:[#allocation2 + $0x3b0] sm:$0xff]  }
 0x797   : > { %12170 = vmatpush3.bf16.msra.mxu1 %v16981_v10  ;;  %v17001_v10 = vld [vmem:[#allocation2 + $0x370] sm:$0xff]  }
 0x798   : > { %12171 = vmatprep.subr.bf16.mxu1 %v16982_v52  ;;  %v17002_v52 = vld [vmem:[#allocation2 + $0x3b8] sm:$0xff]  }
 0x79b   : > { %12172 = vmatpush3.bf16.msra.mxu1 %v16983_v0  ;;  %v17003_v0 = vld [vmem:[#allocation2 + $0x378] sm:$0xff]  }
 0x79c   : > { %12173 = vmatprep.subr.bf16.mxu1 %v16984_v53 }
 0x79f   : > { %12174 = vmatpush3.bf16.msra.mxu1 %v16985_v12  ;;  %v3266_v12 = vld [vmem:[#allocation4 + $0x100] sm:$0xff] }
 0x7a0   : > { %12175 = vmatprep.subr.bf16.mxu1 %v16986_v34  ;;  %v3267_v34 = vld [vmem:[#allocation4 + $0x108] sm:$0xff] }
 0x7a3   : > { %12176 = vmatpush3.bf16.msra.mxu1 %v16987_v63  ;;  %v3299_v63 = vand.u32 4294901760, %v3266_v12 }
 0x7a4   : > { %12183 = vmatprep.subr.bf16.mxu1 %v16988_v60  ;;  %v3302_v60 = vand.u32 4294901760, %v3267_v34 }
 0x7a5   : > { %v18416_v40 = vsub.f32 %v3266_v12, %v3299_v63 }
 0x7a6   : > { %v18418_v27 = vsub.f32 %v3267_v34, %v3302_v60 }
 0x7a7   : > { %v19824_v8 = vand.u32 4294901760, %v18416_v40 }
 0x7a8   : > { %v19823_v43 = vand.u32 4294901760, %v18418_v27 }
 0x7a9   : > { %v3393_v12 = vsub.f32 %v18416_v40, %v19824_v8 }
 0x7aa   : > { %v3400_v34 = vsub.f32 %v18418_v27, %v19823_v43 }
 0x7ab   : > { %v3394_v45 = vand.u32 4294901760, %v3393_v12 }
 0x7ac   : > { %v3401_v36 = vand.u32 4294901760, %v3400_v34 }
 0x7ae   : > { %v18444_v20 = vpack.c.bf16 %v3401_v36, %v3394_v45 }
 0x859   : > { %v13734_v26 = vpop.f32.mrb[12].mxu1 }
 0x85a   : > { %v2910_v49 = vpop.f32.mrb[13].mxu1  ;;  %v2991_v53 = vpack.c.bf16 %v13734_v26, %v13734_v26 }
 0x85b   : > { %v13735_v54 = vpop.f32.mrb[14].mxu1  ;;  %v2989_v29 = vpack.c.bf16 %v2910_v49, %v2910_v49  ;;  %v18368_v49 = vpack.c.bf16 %v3302_v60, %v3299_v63 }
 0x85c   : > { %v2913_v46 = vpop.f32.mrb[15].mxu1  ;;  %v2992_v21 = vpack.c.bf16 %v13735_v54, %v13735_v54  ;;  %v3268_v54 = vld [vmem:[#allocation4 + $0x110] sm:$0xff] }
 0x85d   : > { %v2990_v1 = vpack.c.bf16 %v2913_v46, %v2913_v46  ;;  %v3269_v46 = vld [vmem:[#allocation4 + $0x118] sm:$0xff] }
 0x85f   : > { %3217 = vmatprep.mubr.bf16.mxu1 %v2990_v1  ;;  %v3305_v1 = vand.u32 4294901760, %v3268_v54 }
 0x860   : > { %3218 = vmatmul.mubr.bf16.vlgmr.msra.gmra.mrb[16].mxu1 %v2989_v29  ;;  %v3270_v29 = vld [vmem:[#allocation4 + $0x120] sm:$0xff] }
 0x861   : > { %12184 = vmatpush3.bf16.msra.mxu1 %v16989_v6  ;;  %3257 = vmatprep.mubr.bf16.mxu1 %v2992_v21  ;;  %v3308_v6 = vand.u32 4294901760, %v3269_v46  ;;  %v3311_v21 = vand.u32 4294901760, %v3270_v29  ;;  %v18436_v63 = vsub.f32 %v3268_v54, %v3305_v1 }
 0x862   : > { %12185 = vmatprep.subr.bf16.mxu1 %v16990_v38  ;;  %v3271_v38 = vld [vmem:[#allocation4 + $0x128] sm:$0xff] }
 0x863   : > { %v18372_v26 = vpack.c.bf16 %v3308_v6, %v3305_v1  ;;  %v18438_v60 = vsub.f32 %v3269_v46, %v3308_v6  ;;  %v19827_v18 = vand.u32 4294901760, %v18436_v63  ;;  %v18452_v46 = vsub.f32 %v3270_v29, %v3311_v21 }
 0x865   : > { %12186 = vmatpush3.bf16.msra.mxu1 %v16991_v9  ;;  %v3314_v9 = vand.u32 4294901760, %v3271_v38  ;;  %v19825_v5 = vand.u32 4294901760, %v18438_v60  ;;  %v3407_v43 = vsub.f32 %v18436_v63, %v19827_v18  ;;  %v19826_v34 = vand.u32 4294901760, %v18452_v46 }
 0x866   : > { %12187 = vmatprep.subr.bf16.mxu1 %v16992_v30 }
 0x867   : > { %v18376_v30 = vpack.c.bf16 %v3314_v9, %v3311_v21  ;;  %v3414_v54 = vsub.f32 %v18438_v60, %v19825_v5  ;;  %v18454_v1 = vsub.f32 %v3271_v38, %v3314_v9  ;;  %v3408_v6 = vand.u32 4294901760, %v3407_v43 }
 0x868   : > { %v3421_v36 = vsub.f32 %v18452_v46, %v19826_v34 }
 0x869   : > { %12188 = vmatpush3.bf16.msra.mxu1 %v16993_v16  ;;  %v3272_v16 = vld [vmem:[#allocation4 + $0x130] sm:$0xff]  ;;  %v3415_v12 = vand.u32 4294901760, %v3414_v54  ;;  %v19838_v8 = vand.u32 4294901760, %v18454_v1 }
 0x86a   : > { %12189 = vmatprep.subr.bf16.mxu1 %v16994_v23  ;;  %v3273_v23 = vld [vmem:[#allocation4 + $0x138] sm:$0xff]  ;;  %v3422_v43 = vand.u32 4294901760, %v3421_v36 }
 0x86b   : > { %v18458_v45 = vpack.c.bf16 %v3415_v12, %v3408_v6  ;;  %v3428_v5 = vsub.f32 %v18454_v1, %v19838_v8 }
 0x86d   : > { %12190 = vmatpush3.bf16.msra.mxu1 %v16995_v50  ;;  %v3317_v50 = vand.u32 4294901760, %v3272_v16  ;;  %v3429_v21 = vand.u32 4294901760, %v3428_v5 }
 0x86e   : > { %12191 = vmatprep.subr.bf16.mxu1 %v16996_v24  ;;  %v3320_v24 = vand.u32 4294901760, %v3273_v23 }
 0x86f   : > { %v18466_v29 = vsub.f32 %v3272_v16, %v3317_v50  ;;  %v18472_v6 = vpack.c.bf16 %v3429_v21, %v3422_v43 }
 0x870   : > { %v18468_v38 = vsub.f32 %v3273_v23, %v3320_v24 }
 0x871   : > { %12192 = vmatpush3.bf16.msra.mxu1 %v16997_v11  ;;  %v18380_v11 = vpack.c.bf16 %v3320_v24, %v3317_v50  ;;  %v19837_v9 = vand.u32 4294901760, %v18466_v29 }
 0x872   : > { %12193 = vmatprep.subr.bf16.mxu1 %v16998_v37  ;;  %v3274_v37 = vld [vmem:[#allocation4 + $0x140] sm:$0xff]  ;;  %v19828_v54 = vand.u32 4294901760, %v18468_v38 }
 0x873   : > { %v3435_v12 = vsub.f32 %v18466_v29, %v19837_v9 }
 0x874   : > { %v3442_v16 = vsub.f32 %v18468_v38, %v19828_v54 }
 0x875   : > { %12194 = vmatpush3.bf16.msra.mxu1 %v16999_v62  ;;  %v3275_v62 = vld [vmem:[#allocation4 + $0x148] sm:$0xff]  ;;  %v3436_v23 = vand.u32 4294901760, %v3435_v12 }
 0x876   : > { %12195 = vmatprep.subr.bf16.mxu1 %v17000_v3  ;;  %v3323_v3 = vand.u32 4294901760, %v3274_v37  ;;  %v3443_v24 = vand.u32 4294901760, %v3442_v16 }
 0x878   : > { %v18477_v34 = vsub.f32 %v3274_v37, %v3323_v3 }
 0x879   : > { %12196 = vmatpush3.bf16.msra.mxu1 %v17001_v10  ;;  %v3326_v10 = vand.u32 4294901760, %v3275_v62 }
 0x87a   : > { %12197 = vmatprep.subr.bf16.mxu1 %v17002_v52  ;;  %v19833_v5 = vand.u32 4294901760, %v18477_v34 }
 0x87b   : > { %v18384_v52 = vpack.c.bf16 %v3326_v10, %v3323_v3  ;;  %v18479_v18 = vsub.f32 %v3275_v62, %v3326_v10  ;;  %v18498_v10 = vpack.c.bf16 %v3443_v24, %v3436_v23 }
 0x87c   : > { %v3449_v36 = vsub.f32 %v18477_v34, %v19833_v5 }
 0x87d   : > { %12198 = vmatpush3.bf16.msra.mxu1 %v17003_v0  ;;  %v18386_v0 = vld [vmem:[#allocation4 + $0x150] sm:$0xff]  ;;  %v19829_v50 = vand.u32 4294901760, %v18479_v18 }
 0x87e   : > { %15724 = vmatprep.subr.bf16.mxu1 %v19896_v31  ;;  %v3329_v44 = vand.u32 4294901760, %v18386_v0  ;;  %v3450_v43 = vand.u32 4294901760, %v3449_v36 }
 0x87f   : > { %v3456_v37 = vsub.f32 %v18479_v18, %v19829_v50 }
 0x880   : > { %3258 = vmatmul.mubr.bf16.vlgmr.msra.gmra.mrb[20].mxu1 %v2991_v53  ;;  %v18388_v53 = vld [vmem:[#allocation4 + $0x158] sm:$0xff]  ;;  %v18493_v62 = vsub.f32 %v18386_v0, %v3329_v44 }
 0x881   : > { %13768 = vmatprep.mubr.msk.f32.mxu1 %vm17389_vm0, %v19950_v15  ;;  %15726 = vmatpush3.bf16.msra.mxu1 %v18368_v49  ;;  %v3332_v19 = vand.u32 4294901760, %v18388_v53  ;;  %v3457_v21 = vand.u32 4294901760, %v3456_v37 }
 0x882   : > { %15727 = vmatprep.subr.bf16.mxu1 %v19896_v31  ;;  %v19832_v12 = vand.u32 4294901760, %v18493_v62 }
 0x883   : > { %v18394_v35 = vpack.c.bf16 %v3332_v19, %v3329_v44  ;;  %v18496_v3 = vsub.f32 %v18388_v53, %v3332_v19  ;;  %v18502_v54 = vpack.c.bf16 %v3457_v21, %v3450_v43  ;;  %v19975_v19 = vand.u32 4294901760, %v18396_v33 }
 0x884   : > { %v3463_v50 = vsub.f32 %v18493_v62, %v19832_v12  ;;  %v19976_v53 = vand.u32 4294901760, %v18398_v48 }
 0x885   : > { %15729 = vmatpush3.bf16.msra.mxu1 %v18372_v26  ;;  %v19830_v16 = vand.u32 4294901760, %v18496_v3  ;;  %v18513_v0 = vsub.f32 %v18396_v33, %v19975_v19  ;;  %v19977_v33 = vand.u32 4294901760, %v18400_v55 }
 0x886   : > { %15730 = vmatprep.subr.bf16.mxu1 %v19896_v31  ;;  %v18518_v23 = vsub.f32 %v18398_v48, %v19976_v53  ;;  %v3464_v24 = vand.u32 4294901760, %v3463_v50  ;;  %v19978_v48 = vand.u32 4294901760, %v18405_v59 }
 0x887   : > { %v3470_v44 = vsub.f32 %v18496_v3, %v19830_v16  ;;  %v19831_v37 = vand.u32 4294901760, %v18513_v0  ;;  %v18530_v19 = vsub.f32 %v18400_v55, %v19977_v33 }
 0x888   : > { %v19836_v43 = vand.u32 4294901760, %v18518_v23  ;;  %v18535_v50 = vsub.f32 %v18405_v59, %v19978_v48 }
 0x889   : > { %15732 = vmatpush3.bf16.msra.mxu1 %v18376_v30  ;;  %v3471_v36 = vand.u32 4294901760, %v3470_v44  ;;  %v3477_v16 = vsub.f32 %v18513_v0, %v19831_v37 }
 0x88a   : > { %15733 = vmatprep.subr.bf16.mxu1 %v19896_v31  ;;  %v3484_v44 = vsub.f32 %v18518_v23, %v19836_v43 }
 0x88b   : > { %v18522_v21 = vpack.c.bf16 %v3471_v36, %v3464_v24  ;;  %v3478_v53 = vand.u32 4294901760, %v3477_v16  ;;  %v19834_v24 = vand.u32 4294901760, %v18530_v19  ;;  %v19835_v36 = vand.u32 4294901760, %v18535_v50 }
 0x88c   : > { %v3485_v37 = vand.u32 4294901760, %v3484_v44  ;;  %v18554_v16 = vpack.c.bf16 %v18418_v27, %v18416_v40  ;;  %v18558_v44 = vpack.c.bf16 %v18438_v60, %v18436_v63 }
 0x88d   : > { %15735 = vmatpush3.bf16.msra.mxu1 %v18380_v11  ;;  %v3491_v55 = vsub.f32 %v18530_v19, %v19834_v24  ;;  %v3498_v33 = vsub.f32 %v18535_v50, %v19835_v36  ;;  %v18562_v24 = vpack.c.bf16 %v18454_v1, %v18452_v46 }
 0x88e   : > { %15736 = vmatprep.subr.bf16.mxu1 %v19896_v31  ;;  %v18548_v59 = vpack.c.bf16 %v3485_v37, %v3478_v53  ;;  %v18566_v37 = vpack.c.bf16 %v18468_v38, %v18466_v29  ;;  %v18574_v53 = vpack.c.bf16 %v18496_v3, %v18493_v62 }
 0x88f   : > { %v3492_v48 = vand.u32 4294901760, %v3491_v55  ;;  %v3499_v12 = vand.u32 4294901760, %v3498_v33  ;;  %v18578_v55 = vpack.c.bf16 %v18518_v23, %v18513_v0  ;;  %v18582_v33 = vpack.c.bf16 %v18535_v50, %v18530_v19 }
 0x891   : > { %15738 = vmatpush3.bf16.msra.mxu1 %v18384_v52  ;;  %v18550_v5 = vpack.c.bf16 %v3499_v12, %v3492_v48  ;;  %v18570_v12 = vpack.c.bf16 %v18479_v18, %v18477_v34 }
 0x892   : > { %15739 = vmatprep.subr.bf16.mxu1 %v19896_v31 }
 0x895   : > { %15741 = vmatpush3.bf16.msra.mxu1 %v18394_v35 }
 0x896   : > { %15742 = vmatprep.subr.bf16.mxu1 %v19896_v31 }
 0x899   : > { %15744 = vmatpush3.bf16.msra.mxu1 %v18414_v13 }
 0x89a   : > { %15745 = vmatprep.subr.bf16.mxu1 %v19896_v31 }
 0x89d   : > { %15747 = vmatpush3.bf16.msra.mxu1 %v18425_v61 }
 0x89e   : > { %15748 = vmatprep.subr.bf16.mxu1 %v19896_v31 }
 0x933   : > { %v12177_v48 = vpop.f32.mrb[16].mxu1 }
 0x934   : > { %v12178_v36 = vpop.f32.mrb[17].mxu1 }
 0x935   : > { %v12179_v43 = vadd.f32 %v12178_v36, %v12177_v48  ;;  %v12180_v9 = vpop.f32.mrb[18].mxu1 }
 0x936   : > { %v12181_v8 = vpop.f32.mrb[19].mxu1 }
 0x953   : > { %v12199_v28 = vpop.f32.mrb[20].mxu1 }
 0x954   : > { %v12200_v32 = vpop.f32.mrb[21].mxu1 }
 0x955   : > { %v12201_v47 = vadd.f32 %v12200_v32, %v12199_v28  ;;  %v12202_v4 = vpop.f32.mrb[22].mxu1 }
 0x956   : > { %v12203_v51 = vpop.f32.mrb[23].mxu1 }
 0x957   : > { %v18584_v22 = vadd.f32 %v12201_v47, %v12179_v43 }
 0x959   : > { %v3282_v25 = vsel %vm2872_vm4, %v18584_v22, 0.0  ;;  %v3289_v2 = vmul.f32 %v18584_v22, %v18584_v22 }
 0x95a   : > { %v3283_v14 = vrot.slane %v3282_v25, 4 }
 0x95b   : > { %v3290_v56 = vsel %vm2872_vm4, %v3289_v2, 0.0 }
 0x95c   : > { %v3284_v7 = vadd.f32 %v3283_v14, %v3282_v25  ;;  %v3291_v36 = vrot.slane %v3290_v56, 4  ;;  %v19979_v25 = vand.u32 4294901760, %v18416_v40  ;;  %v19980_v14 = vand.u32 4294901760, %v18418_v27 }
 0x95d   : > { %v19984_v27 = vand.u32 4294901760, %v18454_v1  ;;  %v19985_v40 = vand.u32 4294901760, %v18466_v29  ;;  %v19988_v1 = vand.u32 4294901760, %v18479_v18  ;;  %v19989_v29 = vand.u32 4294901760, %v18493_v62 }
 0x95e   : > { %v3285_v9 = vrot.slane %v3284_v7, 2  ;;  %v3292_v8 = vadd.f32 %v3291_v36, %v3290_v56  ;;  %v18653_v56 = vpack.c.bf16 %v19980_v14, %v19979_v25  ;;  %v19992_v18 = vand.u32 4294901760, %v18518_v23  ;;  %v19995_v25 = vld [vmem:[#allocation41_spill] sm:$0xff] }
 0x95f   : > { %v19993_v62 = vand.u32 4294901760, %v18530_v19 }
 0x960   : > { %v3286_v48 = vadd.f32 %v3285_v9, %v3284_v7  ;;  %v3293_v39 = vrot.slane %v3292_v8, 2  ;;  %v19983_v7 = vand.u32 4294901760, %v18452_v46  ;;  %v19987_v46 = vand.u32 4294901760, %v18477_v34 }
 0x961   : > { %v19991_v34 = vand.u32 4294901760, %v18513_v0  ;;  %v17004_v0 = vld [vmem:[%s19715_s1 + $0x58] sm:$0xff]  }
 0x962   : > { %v3287_v32 = vrot.slane %v3286_v48, 1  ;;  %v3294_v4 = vadd.f32 %v3293_v39, %v3292_v8  ;;  %v18687_v36 = vpack.c.bf16 %v19988_v1, %v19987_v46  ;;  %13948 = vmatprep.mubr.msk.bf16.mxu0 %vm3971_vm5, %v17004_v0  ;;  %v17008_v46 = vld [vmem:[#allocation2 + $0x408] sm:$0xff]  }
 0x963   : > { %v18703_v8 = vpack.c.bf16 %v19992_v18, %v19991_v34  ;;  %v17009_v1 = vld [vmem:[#allocation2 + $0x3c8] sm:$0xff]   ;;  %v17012_v34 = vld [vmem:[#allocation2 + $0x418] sm:$0xff]  }
 0x964   : > { %v3295_v51 = vrot.slane %v3294_v4, 1  ;;  %v3288_v47 = vadd.f32 %v3287_v32, %v3286_v48  ;;  %v17013_v18 = vld [vmem:[#allocation2 + $0x3d8] sm:$0xff]   ;;  %v17016_v0 = vld [vmem:[#allocation2 + $0x428] sm:$0xff]  }
 0x966   : > { %v3296_v28 = vadd.f32 %v3295_v51, %v3294_v4 }
 0x968   : > { %v3297_v43 = vsel %vm1082_vm2, %v3288_v47, %v3296_v28 }
 0x969   : > { %v18592_v42 = vand.u32 4294901760, %v3297_v43 }
 0x96b   : > { %v3380_v17 = vsub.f32 %v3297_v43, %v18592_v42 }
 0x96d   : > { %v3381_v41 = vand.u32 4294901760, %v3380_v17 }
 0x96f   : > { %v3382_v58 = vsub.f32 %v3380_v17, %v3381_v41 }
 0x971   : > { %v3383_v2 = vand.u32 4294901760, %v3382_v58  ;;  %v19981_v58 = vand.u32 4294901760, %v18436_v63  ;;  %v19986_v63 = vand.u32 4294901760, %v18468_v38  ;;  %v19990_v38 = vand.u32 4294901760, %v18496_v3 }
 0x972   : > { %v19994_v3 = vand.u32 4294901760, %v18535_v50 }
 0x973   : > { %13769 = vmatmul.mubr.f32.vlgmr.msra.gmra.mrb[10].mxu1 %v3383_v2  ;;  %v18695_v9 = vpack.c.bf16 %v19990_v38, %v19989_v29  ;;  %v17010_v29 = vld [vmem:[#allocation2 + $0x410] sm:$0xff]  }
 0x974   : > { %15750 = vmatpush3.bf16.msra.mxu1 %v18444_v20  ;;  %13803 = vmatprep.mubr.msk.f32.mxu1 %vm17389_vm0, %v19950_v15  ;;  %v18711_v48 = vpack.c.bf16 %v19994_v3, %v19993_v62  ;;  %v17011_v38 = vld [vmem:[#allocation2 + $0x3d0] sm:$0xff]   ;;  %v17014_v62 = vld [vmem:[#allocation2 + $0x420] sm:$0xff]  }
 0x975   : > { %15751 = vmatprep.subr.bf16.mxu1 %v19896_v31  ;;  %v17015_v3 = vld [vmem:[#allocation2 + $0x3e0] sm:$0xff]  }
 0x978   : > { %15753 = vmatpush3.bf16.msra.mxu1 %v18458_v45 }
 0x979   : > { %15754 = vmatprep.subr.bf16.mxu1 %v19896_v31 }
 0x97c   : > { %15756 = vmatpush3.bf16.msra.mxu1 %v18472_v6 }
 0x97d   : > { %15757 = vmatprep.subr.bf16.mxu1 %v19896_v31 }
 0x980   : > { %15759 = vmatpush3.bf16.msra.mxu1 %v18498_v10 }
 0x981   : > { %15760 = vmatprep.subr.bf16.mxu1 %v19896_v31 }
 0x984   : > { %15762 = vmatpush3.bf16.msra.mxu1 %v18502_v54 }
 0x985   : > { %15763 = vmatprep.subr.bf16.mxu1 %v19896_v31 }
 0x988   : > { %15765 = vmatpush3.bf16.msra.mxu1 %v18522_v21 }
 0x989   : > { %15766 = vmatprep.subr.bf16.mxu1 %v19896_v31 }
 0x98c   : > { %15768 = vmatpush3.bf16.msra.mxu1 %v18548_v59 }
 0x98d   : > { %15769 = vmatprep.subr.bf16.mxu1 %v19896_v31 }
 0x990   : > { %15771 = vmatpush3.bf16.msra.mxu1 %v18550_v5 }
 0x991   : > { %15772 = vmatprep.subr.bf16.mxu1 %v19896_v31 }
 0x993   : > { %13804 = vmatmul.mubr.f32.vlgmr.msra.gmra.mrb[10].mxu1 %v18592_v42 }
 0x994   : > { %15774 = vmatpush3.bf16.msra.mxu1 %v18554_v16  ;;  %13838 = vmatprep.mubr.msk.f32.mxu1 %vm17389_vm0, %v19950_v15 }
 0x995   : > { %15775 = vmatprep.subr.bf16.mxu1 %v19896_v31 }
 0x998   : > { %15777 = vmatpush3.bf16.msra.mxu1 %v18558_v44 }
 0x999   : > { %15778 = vmatprep.subr.bf16.mxu1 %v19896_v31 }
 0x99c   : > { %15780 = vmatpush3.bf16.msra.mxu1 %v18562_v24 }
 0x99d   : > { %15781 = vmatprep.subr.bf16.mxu1 %v19896_v31 }
 0x9a0   : > { %15783 = vmatpush3.bf16.msra.mxu1 %v18566_v37 }
 0x9a1   : > { %15784 = vmatprep.subr.bf16.mxu1 %v19896_v31 }
 0x9a4   : > { %15786 = vmatpush3.bf16.msra.mxu1 %v18570_v12 }
 0x9a5   : > { %15787 = vmatprep.subr.bf16.mxu1 %v19896_v31 }
 0x9a8   : > { %15789 = vmatpush3.bf16.msra.mxu1 %v18574_v53 }
 0x9a9   : > { %15790 = vmatprep.subr.bf16.mxu1 %v19896_v31 }
 0x9ac   : > { %15792 = vmatpush3.bf16.msra.mxu1 %v18578_v55 }
 0x9ad   : > { %15793 = vmatprep.subr.bf16.mxu1 %v19896_v31 }
 0x9b0   : > { %15795 = vmatpush3.bf16.msra.mxu1 %v18582_v33 }
 0x9b1   : > { %15796 = vmatprep.subr.bf16.mxu1 %v19896_v31 }
 0x9b3   : > { %13839 = vmatmul.mubr.f32.vlgmr.msra.gmra.mrb[10].mxu1 %v3380_v17  ;;  %v19982_v17 = vand.u32 4294901760, %v18438_v60  ;;  %v18679_v60 = vpack.c.bf16 %v19986_v63, %v19985_v40  ;;  %v17005_v63 = vld [vmem:[%s19715_s1 + $0x60] ss:$0 sps:$4 sm:$0xff]  }
 0x9b4   : > { %15798 = vmatpush3.bf16.msra.mxu1 %v18368_v49  ;;  %13873 = vmatprep.mubr.msk.f32.mxu1 %vm17389_vm0, %v19950_v15 }
 0x9b5   : > { %15799 = vmatprep.subr.bf16.mxu1 %v19896_v31  ;;  %v18661_v39 = vpack.c.bf16 %v19982_v17, %v19981_v58 }
 0x9b8   : > { %15801 = vmatpush3.bf16.msra.mxu1 %v18372_v26 }
 0x9b9   : > { %15802 = vmatprep.subr.bf16.mxu1 %v19896_v31 }
 0x9bc   : > { %15804 = vmatpush3.bf16.msra.mxu1 %v18376_v30 }
 0x9bd   : > { %15805 = vmatprep.subr.bf16.mxu1 %v19896_v31 }
 0x9c0   : > { %15807 = vmatpush3.bf16.msra.mxu1 %v18380_v11 }
 0x9c1   : > { %15808 = vmatprep.subr.bf16.mxu1 %v19896_v31 }
 0x9c4   : > { %15810 = vmatpush3.bf16.msra.mxu1 %v18384_v52 }
 0x9c5   : > { %15811 = vmatprep.subr.bf16.mxu1 %v19896_v31 }
 0x9c8   : > { %15813 = vmatpush3.bf16.msra.mxu1 %v18394_v35 }
 0x9c9   : > { %15814 = vmatprep.subr.bf16.mxu1 %v19896_v31 }
 0x9cc   : > { %15816 = vmatpush3.bf16.msra.mxu1 %v18414_v13 }
 0x9cd   : > { %15817 = vmatprep.subr.bf16.mxu1 %v19896_v31 }
 0x9d0   : > { %15819 = vmatpush3.bf16.msra.mxu1 %v18425_v61 }
 0x9d1   : > { %15820 = vmatprep.subr.bf16.mxu1 %v19896_v31 }
 0x9d3   : > { %13874 = vmatmul.mubr.f32.vlgmr.msra.gmra.mrb[10].mxu1 %v3381_v41  ;;  %v18671_v41 = vpack.c.bf16 %v19984_v27, %v19983_v7  ;;  %v17006_v27 = vld [vmem:[#allocation2 + $0x400] sm:$0xff]  }
 0x9d4   : > { %15822 = vmatpush3.bf16.msra.mxu1 %v18653_v56  ;;  %13908 = vmatprep.mubr.msk.f32.mxu1 %vm17389_vm0, %v19950_v15 }
 0x9d5   : > { %15823 = vmatprep.subr.bf16.mxu1 %v19896_v31 }
 0x9d8   : > { %15825 = vmatpush3.bf16.msra.mxu1 %v18661_v39 }
 0x9d9   : > { %15826 = vmatprep.subr.bf16.mxu1 %v19896_v31 }
 0x9dc   : > { %15828 = vmatpush3.bf16.msra.mxu1 %v18671_v41 }
 0x9dd   : > { %15829 = vmatprep.subr.bf16.mxu1 %v19896_v31 }
 0x9e0   : > { %15831 = vmatpush3.bf16.msra.mxu1 %v18679_v60 }
 0x9e1   : > { %15832 = vmatprep.subr.bf16.mxu1 %v19896_v31 }
 0x9e4   : > { %15834 = vmatpush3.bf16.msra.mxu1 %v18687_v36 }
 0x9e5   : > { %15835 = vmatprep.subr.bf16.mxu1 %v19896_v31 }
 0x9e8   : > { %15837 = vmatpush3.bf16.msra.mxu1 %v18695_v9 }
 0x9e9   : > { %15838 = vmatprep.subr.bf16.mxu1 %v19896_v31 }
 0x9ec   : > { %15840 = vmatpush3.bf16.msra.mxu1 %v18703_v8 }
 0x9ed   : > { %15841 = vmatprep.subr.bf16.mxu1 %v19896_v31 }
 0x9f0   : > { %15843 = vmatpush3.bf16.msra.mxu1 %v18711_v48 }
 0x9f1   : > { %15844 = vmatprep.subr.bf16.mxu1 %v19896_v31 }
 0x9f3   : > { %13909 = vmatmul.mubr.f32.vlgmr.msra.gmra.mrb[10].mxu1 %v18592_v42 }
 0x9f4   : > { %15846 = vmatpush3.bf16.msra.mxu1 %v18368_v49  ;;  %13943 = vmatprep.mubr.msk.f32.mxu1 %vm17389_vm0, %v19950_v15 }
 0x9f5   : > { %15847 = vmatprep.subr.bf16.mxu1 %v19896_v31 }
 0x9f8   : > { %15849 = vmatpush3.bf16.msra.mxu1 %v18372_v26 }
 0x9f9   : > { %15850 = vmatprep.subr.bf16.mxu1 %v19896_v31 }
 0x9fc   : > { %15852 = vmatpush3.bf16.msra.mxu1 %v18376_v30 }
 0x9fd   : > { %15853 = vmatprep.subr.bf16.mxu1 %v19896_v31 }
 0xa00   : > { %15855 = vmatpush3.bf16.msra.mxu1 %v18380_v11 }
 0xa01   : > { %15856 = vmatprep.subr.bf16.mxu1 %v19896_v31 }
 0xa04   : > { %15858 = vmatpush3.bf16.msra.mxu1 %v18384_v52 }
 0xa05   : > { %15859 = vmatprep.subr.bf16.mxu1 %v19896_v31 }
 0xa08   : > { %15861 = vmatpush3.bf16.msra.mxu1 %v18394_v35 }
 0xa09   : > { %15862 = vmatprep.subr.bf16.mxu1 %v19896_v31 }
 0xa0c   : > { %15864 = vmatpush3.bf16.msra.mxu1 %v18414_v13 }
 0xa0d   : > { %15865 = vmatprep.subr.bf16.mxu1 %v19896_v31 }
 0xa10   : > { %15867 = vmatpush3.bf16.msra.mxu1 %v18425_v61 }
 0xa13   : > { %13944 = vmatmul.mubr.f32.vlgmr.msra.gmra.mrb[10].mxu1 %v18592_v42 }
 0xae6   : > { %v3935_v23 = vpop.f32.mrb[10].mxu1 }
 0xae7   : > { %v3939_v19 = vmul.f32 0.0625, %v3935_v23  ;;  %v13945_v50 = vpop.f32.mrb[11].mxu1  ;;  %v17017_v23 = vld [vmem:[#allocation2 + $0x3e8] sm:$0xff]  }
 0xae8   : > { %v17019_v50 = vld [vmem:[#allocation2 + $0x3f0] sm:$0xff]  }
 0xae9   : > { %v3940_v32 = vmul.f32 %v3939_v19, %v3939_v19  ;;  %v3949_v43 = vrot.slane %v3939_v19, %v17971_v57 }
 0xaeb   : > { %v3942_v4 = vrot.slane %v3940_v32, 7  ;;  %v3950_v42 = vsub.f32 %v18584_v22, %v3949_v43  ;;  %v17007_v22 = vld [vmem:[#allocation2 + $0x3c0] sm:$0xff]   ;;  %v17020_v32 = vld [vmem:[#allocation2 + $0x438] sm:$0xff]  }
 0xaed   : > { %v3944_v51 = vsub.f32 %v3939_v19, %v3942_v4  ;;  %v17018_v19 = vld [vmem:[#allocation2 + $0x430] sm:$0xff]   ;;  %v17021_v4 = vld [vmem:[#allocation2 + $0x3f8] sm:$0xff]  }
 0xaef   : > { %v3945_v47 = vmax.f32 %v3944_v51, 0.0 }
 0xaf1   : > { %v3951_v28 = vadd.f32 1e-05, %v3945_v47 }
 0xaf3   : > { %17263 = vrsqrt.f32 %v3951_v28 }
 0xafd   : > { %v17264_v2 = vpop.eup %17263 }
 0xafe   : > { %v3956_v14 = vrot.slane %v17264_v2, %v19995_v25 }
 0xb00   : > { %v3957_v58 = vmul.f32 %v3956_v14, %v3950_v42  ;;  %v17022_v42 = vld [vmem:[#allocation2 + $0x440] sm:$0xff]  }
 0xb02   : > { %v18742_v17 = vmax.f32 %v3957_v58, 0.0  ;;  %v17023_v58 = vld [vmem:[#allocation2 + $0x448] sm:$0xff]  }
 0xb04   : > { %v3959_v7 = vpack.c.bf16 %v18742_v17, %v18742_v17 }
 0xb06   : > { %16823 = vmatprep.subr.msk.bf16.mxu0 %vm3978_vm6, %v3959_v7  ;;  %v3980_v40 = vsel %vm3978_vm6, %v3959_v7, 0  ;;  %v17024_v7 = vld [vmem:[#allocation2 + $0x450] sm:$0xff]  }
 0xb07   : > { %13947 = vmatpush3.bf16.msra.mxu0 %v3980_v40  ;;  %v17026_v40 = vld [vmem:[#allocation2 + $0x460] sm:$0xff]  }
 0xb08   : > { %12310 = vmatprep.subr.bf16.mxu0 %v17006_v27  ;;  %v17025_v27 = vld [vmem:[#allocation2 + $0x458] sm:$0xff]  }
 0xb0a   : > { %13949 = vmatmul.mubr.msk.bf16.vlgmr.msra.gmra.mrb[52].mxu0 %vm3971_vm5, %v17005_v63  ;;  %v17027_v63 = vld [vmem:[#allocation2 + $0x468] sm:$0xff]  }
 0xb0b   : > { %12311 = vmatpush3.bf16.msra.mxu0 %v17007_v22  ;;  %v17028_v22 = vld [vmem:[#allocation2 + $0x470] sm:$0xff]  }
 0xb0c   : > { %12312 = vmatprep.subr.bf16.mxu0 %v17008_v46  ;;  %v17029_v46 = vld [vmem:[#allocation2 + $0x478] sm:$0xff]  }
 0xb0f   : > { %12313 = vmatpush3.bf16.msra.mxu0 %v17009_v1 }
 0xb10   : > { %12314 = vmatprep.subr.bf16.mxu0 %v17010_v29 }
 0xb13   : > { %12315 = vmatpush3.bf16.msra.mxu0 %v17011_v38 }
 0xb14   : > { %12316 = vmatprep.subr.bf16.mxu0 %v17012_v34 }
 0xb17   : > { %12317 = vmatpush3.bf16.msra.mxu0 %v17013_v18 }
 0xb18   : > { %12318 = vmatprep.subr.bf16.mxu0 %v17014_v62 }
 0xb1b   : > { %12319 = vmatpush3.bf16.msra.mxu0 %v17015_v3 }
 0xb1c   : > { %12320 = vmatprep.subr.bf16.mxu0 %v17016_v0 }
 0xb1f   : > { %12321 = vmatpush3.bf16.msra.mxu0 %v17017_v23 }
 0xb20   : > { %12322 = vmatprep.subr.bf16.mxu0 %v17018_v19 }
 0xb23   : > { %12323 = vmatpush3.bf16.msra.mxu0 %v17019_v50 }
 0xb24   : > { %12324 = vmatprep.subr.bf16.mxu0 %v17020_v32 }
 0xb27   : > { %12325 = vmatpush3.bf16.msra.mxu0 %v17021_v4 }
 0xb28   : > { %13952 = vmatprep.subr.bf16.mxu0 %v19950_v15 }
 0xbdd   : > { %v13950_v51 = vpop.f32.mrb[52].mxu0 }
 0xbde   : > { %v4016_v47 = vpop.f32.mrb[53].mxu0  ;;  %v4080_v1 = vpack.c.bf16 %v13950_v51, %v13950_v51 }
 0xbdf   : > { %v13951_v28 = vpop.f32.mrb[54].mxu0  ;;  %v4078_v14 = vpack.c.bf16 %v4016_v47, %v4016_v47 }
 0xbe0   : > { %v4019_v43 = vpop.f32.mrb[55].mxu0 }
 0xbe1   : > { %v4079_v2 = vpack.c.bf16 %v4019_v43, %v4019_v43 }
 0xbe3   : > { %4257 = vmatprep.mubr.bf16.mxu0 %v4079_v2 }
 0xbe4   : > { %4258 = vmatmul.mubr.bf16.vlgmr.msra.gmra.mrb[56].mxu0 %v4078_v14 }
 0xbe5   : > { %13953 = vmatpush3.bf16.msra.mxu0 %v17022_v42  ;;  %13968 = vmatprep.mubr.msk.bf16.mxu0 %vm17389_vm0, %v19950_v15 }
 0xbe6   : > { %13954 = vmatprep.subr.bf16.mxu0 %v19950_v15 }
 0xbe9   : > { %13955 = vmatpush3.bf16.msra.mxu0 %v17023_v58 }
 0xbea   : > { %13956 = vmatprep.subr.bf16.mxu0 %v19950_v15 }
 0xbed   : > { %13957 = vmatpush3.bf16.msra.mxu0 %v17024_v7 }
 0xbee   : > { %13958 = vmatprep.subr.bf16.mxu0 %v19950_v15 }
 0xbf1   : > { %13959 = vmatpush3.bf16.msra.mxu0 %v17025_v27 }
 0xbf2   : > { %13960 = vmatprep.subr.bf16.mxu0 %v19950_v15 }
 0xbf5   : > { %13961 = vmatpush3.bf16.msra.mxu0 %v17026_v40 }
 0xbf6   : > { %13962 = vmatprep.subr.bf16.mxu0 %v19950_v15 }
 0xbf9   : > { %13963 = vmatpush3.bf16.msra.mxu0 %v17027_v63 }
 0xbfa   : > { %13964 = vmatprep.subr.bf16.mxu0 %v19950_v15 }
 0xbfd   : > { %13965 = vmatpush3.bf16.msra.mxu0 %v17028_v22 }
 0xbfe   : > { %13966 = vmatprep.subr.bf16.mxu0 %v19950_v15 }
 0xc01   : > { %13967 = vmatpush3.bf16.msra.mxu0 %v17029_v46 }
 0xc02   : > { %15868 = vmatprep.subr.bf16.mxu0 %v19896_v31 }
 0xc04   : > { %13969 = vmatmul.mubr.bf16.vlgmr.msra.gmra.mrb[60].mxu0 %v4080_v1 }
 0xc05   : > { %15870 = vmatpush3.bf16.msra.mxu0 %v18368_v49  ;;  %14004 = vmatprep.mubr.msk.f32.mxu0 %vm17389_vm0, %v19950_v15 }
 0xc06   : > { %15871 = vmatprep.subr.bf16.mxu0 %v19896_v31 }
 0xc09   : > { %15873 = vmatpush3.bf16.msra.mxu0 %v18372_v26 }
 0xc0a   : > { %15874 = vmatprep.subr.bf16.mxu0 %v19896_v31 }
 0xc0d   : > { %15876 = vmatpush3.bf16.msra.mxu0 %v18376_v30 }
 0xc0e   : > { %15877 = vmatprep.subr.bf16.mxu0 %v19896_v31 }
 0xc11   : > { %15879 = vmatpush3.bf16.msra.mxu0 %v18380_v11 }
 0xc12   : > { %15880 = vmatprep.subr.bf16.mxu0 %v19896_v31 }
 0xc15   : > { %15882 = vmatpush3.bf16.msra.mxu0 %v18384_v52 }
 0xc16   : > { %15883 = vmatprep.subr.bf16.mxu0 %v19896_v31 }
 0xc19   : > { %15885 = vmatpush3.bf16.msra.mxu0 %v18394_v35 }
 0xc1a   : > { %15886 = vmatprep.subr.bf16.mxu0 %v19896_v31 }
 0xc1d   : > { %15888 = vmatpush3.bf16.msra.mxu0 %v18414_v13 }
 0xc1e   : > { %15889 = vmatprep.subr.bf16.mxu0 %v19896_v31 }
 0xc21   : > { %15891 = vmatpush3.bf16.msra.mxu0 %v18425_v61 }
 0xc22   : > { %15892 = vmatprep.subr.bf16.mxu0 %v19896_v31 }
 0xcb7   : > { %v12326_v29 = vpop.f32.mrb[56].mxu0 }
 0xcb8   : > { %v12327_v38 = vpop.f32.mrb[57].mxu0 }
 0xcb9   : > { %v12328_v34 = vadd.f32 %v12327_v38, %v12326_v29  ;;  %v12329_v18 = vpop.f32.mrb[58].mxu0 }
 0xcba   : > { %v12330_v62 = vpop.f32.mrb[59].mxu0 }
 0xcbb   : > { %v17030_v62 = vld [vmem:[%s19715_s1 + $0x64] sm:$0xff]  }
 0xcbc   : > { %14184 = vmatprep.mubr.msk.bf16.mxu1 %vm3971_vm5, %v17030_v62  ;;  %v17041_v62 = vld [vmem:[#allocation2 + $0x4a0] sm:$0xff]  }
 0xcd7   : > { %v4299_v3 = vpop.f32.mrb[60].mxu0 }
 0xcd8   : > { %v18781_v0 = vadd.f32 %v12328_v34, %v4299_v3  ;;  %v13970_v23 = vpop.f32.mrb[61].mxu0 }
 0xcd9   : > { %v4302_v19 = vpop.f32.mrb[62].mxu0 }
 0xcda   : > { %v4305_v50 = vsel %vm2872_vm4, %v18781_v0, 0.0  ;;  %v4312_v32 = vmul.f32 %v18781_v0, %v18781_v0  ;;  %v13971_v4 = vpop.f32.mrb[63].mxu0 }
 0xcdb   : > { %v4306_v51 = vrot.slane %v4305_v50, 4 }
 0xcdc   : > { %v4313_v47 = vsel %vm2872_vm4, %v4312_v32, 0.0 }
 0xcdd   : > { %v4307_v28 = vadd.f32 %v4306_v51, %v4305_v50  ;;  %v4314_v43 = vrot.slane %v4313_v47, 4 }
 0xcdf   : > { %v4308_v2 = vrot.slane %v4307_v28, 2  ;;  %v4315_v42 = vadd.f32 %v4314_v43, %v4313_v47 }
 0xce1   : > { %v4309_v14 = vadd.f32 %v4308_v2, %v4307_v28  ;;  %v4316_v58 = vrot.slane %v4315_v42, 2 }
 0xce3   : > { %v4310_v7 = vrot.slane %v4309_v14, 1  ;;  %v4317_v27 = vadd.f32 %v4316_v58, %v4315_v42 }
 0xce5   : > { %v4318_v40 = vrot.slane %v4317_v27, 1  ;;  %v4311_v63 = vadd.f32 %v4310_v7, %v4309_v14 }
 0xce7   : > { %v4319_v22 = vadd.f32 %v4318_v40, %v4317_v27  ;;  %v17032_v27 = vld [vmem:[#allocation2 + $0x4c0] sm:$0xff]  }
 0xce9   : > { %v4320_v46 = vsel %vm1082_vm2, %v4311_v63, %v4319_v22  ;;  %v17031_v63 = vld [vmem:[%s19715_s1 + $0x6c] ss:$0 sps:$4 sm:$0xff]   ;;  %v17033_v22 = vld [vmem:[#allocation2 + $0x480] sm:$0xff]  }
 0xcea   : > { %v18789_v1 = vand.u32 4294901760, %v4320_v46 }
 0xcec   : > { %v4403_v29 = vsub.f32 %v4320_v46, %v18789_v1  ;;  %v17034_v46 = vld [vmem:[#allocation2 + $0x4c8] sm:$0xff]  }
 0xcee   : > { %v4404_v38 = vand.u32 4294901760, %v4403_v29 }
 0xcf0   : > { %v4405_v34 = vsub.f32 %v4403_v29, %v4404_v38 }
 0xcf2   : > { %v4406_v18 = vand.u32 4294901760, %v4405_v34  ;;  %v17039_v34 = vld [vmem:[#allocation2 + $0x498] sm:$0xff]  }
 0xcf4   : > { %14005 = vmatmul.mubr.f32.vlgmr.msra.gmra.mrb[50].mxu0 %v4406_v18  ;;  %v17040_v18 = vld [vmem:[#allocation2 + $0x4e0] sm:$0xff]  }
 0xcf5   : > { %15894 = vmatpush3.bf16.msra.mxu0 %v18444_v20  ;;  %14039 = vmatprep.mubr.msk.f32.mxu0 %vm17389_vm0, %v19950_v15 }
 0xcf6   : > { %15895 = vmatprep.subr.bf16.mxu0 %v19896_v31 }
 0xcf9   : > { %15897 = vmatpush3.bf16.msra.mxu0 %v18458_v45 }
 0xcfa   : > { %15898 = vmatprep.subr.bf16.mxu0 %v19896_v31 }
 0xcfd   : > { %15900 = vmatpush3.bf16.msra.mxu0 %v18472_v6 }
 0xcfe   : > { %15901 = vmatprep.subr.bf16.mxu0 %v19896_v31 }
 0xd01   : > { %15903 = vmatpush3.bf16.msra.mxu0 %v18498_v10 }
 0xd02   : > { %15904 = vmatprep.subr.bf16.mxu0 %v19896_v31 }
 0xd05   : > { %15906 = vmatpush3.bf16.msra.mxu0 %v18502_v54 }
 0xd06   : > { %15907 = vmatprep.subr.bf16.mxu0 %v19896_v31 }
 0xd09   : > { %15909 = vmatpush3.bf16.msra.mxu0 %v18522_v21 }
 0xd0a   : > { %15910 = vmatprep.subr.bf16.mxu0 %v19896_v31 }
 0xd0d   : > { %15912 = vmatpush3.bf16.msra.mxu0 %v18548_v59 }
 0xd0e   : > { %15913 = vmatprep.subr.bf16.mxu0 %v19896_v31 }
 0xd11   : > { %15915 = vmatpush3.bf16.msra.mxu0 %v18550_v5 }
 0xd12   : > { %15916 = vmatprep.subr.bf16.mxu0 %v19896_v31 }
 0xd14   : > { %14040 = vmatmul.mubr.f32.vlgmr.msra.gmra.mrb[50].mxu0 %v18789_v1 }
 0xd15   : > { %15918 = vmatpush3.bf16.msra.mxu0 %v18554_v16  ;;  %14074 = vmatprep.mubr.msk.f32.mxu0 %vm17389_vm0, %v19950_v15 }
 0xd16   : > { %15919 = vmatprep.subr.bf16.mxu0 %v19896_v31 }
 0xd19   : > { %15921 = vmatpush3.bf16.msra.mxu0 %v18558_v44 }
 0xd1a   : > { %15922 = vmatprep.subr.bf16.mxu0 %v19896_v31 }
 0xd1d   : > { %15924 = vmatpush3.bf16.msra.mxu0 %v18562_v24 }
 0xd1e   : > { %15925 = vmatprep.subr.bf16.mxu0 %v19896_v31 }
 0xd21   : > { %15927 = vmatpush3.bf16.msra.mxu0 %v18566_v37 }
 0xd22   : > { %15928 = vmatprep.subr.bf16.mxu0 %v19896_v31 }
 0xd25   : > { %15930 = vmatpush3.bf16.msra.mxu0 %v18570_v12 }
 0xd26   : > { %15931 = vmatprep.subr.bf16.mxu0 %v19896_v31 }
 0xd29   : > { %15933 = vmatpush3.bf16.msra.mxu0 %v18574_v53 }
 0xd2a   : > { %15934 = vmatprep.subr.bf16.mxu0 %v19896_v31 }
 0xd2d   : > { %15936 = vmatpush3.bf16.msra.mxu0 %v18578_v55 }
 0xd2e   : > { %15937 = vmatprep.subr.bf16.mxu0 %v19896_v31 }
 0xd31   : > { %15939 = vmatpush3.bf16.msra.mxu0 %v18582_v33 }
 0xd32   : > { %15940 = vmatprep.subr.bf16.mxu0 %v19896_v31 }
 0xd34   : > { %14075 = vmatmul.mubr.f32.vlgmr.msra.gmra.mrb[50].mxu0 %v4403_v29  ;;  %v17037_v29 = vld [vmem:[#allocation2 + $0x490] sm:$0xff]  }
 0xd35   : > { %15942 = vmatpush3.bf16.msra.mxu0 %v18368_v49  ;;  %14109 = vmatprep.mubr.msk.f32.mxu0 %vm17389_vm0, %v19950_v15 }
 0xd36   : > { %15943 = vmatprep.subr.bf16.mxu0 %v19896_v31 }
 0xd39   : > { %15945 = vmatpush3.bf16.msra.mxu0 %v18372_v26 }
 0xd3a   : > { %15946 = vmatprep.subr.bf16.mxu0 %v19896_v31 }
 0xd3d   : > { %15948 = vmatpush3.bf16.msra.mxu0 %v18376_v30 }
 0xd3e   : > { %15949 = vmatprep.subr.bf16.mxu0 %v19896_v31 }
 0xd41   : > { %15951 = vmatpush3.bf16.msra.mxu0 %v18380_v11 }
 0xd42   : > { %15952 = vmatprep.subr.bf16.mxu0 %v19896_v31 }
 0xd45   : > { %15954 = vmatpush3.bf16.msra.mxu0 %v18384_v52 }
 0xd46   : > { %15955 = vmatprep.subr.bf16.mxu0 %v19896_v31 }
 0xd49   : > { %15957 = vmatpush3.bf16.msra.mxu0 %v18394_v35 }
 0xd4a   : > { %15958 = vmatprep.subr.bf16.mxu0 %v19896_v31 }
 0xd4d   : > { %15960 = vmatpush3.bf16.msra.mxu0 %v18414_v13 }
 0xd4e   : > { %15961 = vmatprep.subr.bf16.mxu0 %v19896_v31 }
 0xd51   : > { %15963 = vmatpush3.bf16.msra.mxu0 %v18425_v61 }
 0xd52   : > { %15964 = vmatprep.subr.bf16.mxu0 %v19896_v31 }
 0xd54   : > { %14110 = vmatmul.mubr.f32.vlgmr.msra.gmra.mrb[50].mxu0 %v4404_v38  ;;  %v17038_v38 = vld [vmem:[#allocation2 + $0x4d8] sm:$0xff]  }
 0xd55   : > { %15966 = vmatpush3.bf16.msra.mxu0 %v18653_v56  ;;  %14144 = vmatprep.mubr.msk.f32.mxu0 %vm17389_vm0, %v19950_v15 }
 0xd56   : > { %15967 = vmatprep.subr.bf16.mxu0 %v19896_v31 }
 0xd59   : > { %15969 = vmatpush3.bf16.msra.mxu0 %v18661_v39 }
 0xd5a   : > { %15970 = vmatprep.subr.bf16.mxu0 %v19896_v31 }
 0xd5d   : > { %15972 = vmatpush3.bf16.msra.mxu0 %v18671_v41 }
 0xd5e   : > { %15973 = vmatprep.subr.bf16.mxu0 %v19896_v31 }
 0xd61   : > { %15975 = vmatpush3.bf16.msra.mxu0 %v18679_v60 }
 0xd62   : > { %15976 = vmatprep.subr.bf16.mxu0 %v19896_v31 }
 0xd65   : > { %15978 = vmatpush3.bf16.msra.mxu0 %v18687_v36 }
 0xd66   : > { %15979 = vmatprep.subr.bf16.mxu0 %v19896_v31 }
 0xd69   : > { %15981 = vmatpush3.bf16.msra.mxu0 %v18695_v9 }
 0xd6a   : > { %15982 = vmatprep.subr.bf16.mxu0 %v19896_v31 }
 0xd6d   : > { %15984 = vmatpush3.bf16.msra.mxu0 %v18703_v8 }
 0xd6e   : > { %15985 = vmatprep.subr.bf16.mxu0 %v19896_v31 }
 0xd71   : > { %15987 = vmatpush3.bf16.msra.mxu0 %v18711_v48 }
 0xd72   : > { %15988 = vmatprep.subr.bf16.mxu0 %v19896_v31 }
 0xd74   : > { %14145 = vmatmul.mubr.f32.vlgmr.msra.gmra.mrb[50].mxu0 %v18789_v1 }
 0xd75   : > { %15990 = vmatpush3.bf16.msra.mxu0 %v18368_v49  ;;  %14179 = vmatprep.mubr.msk.f32.mxu0 %vm17389_vm0, %v19950_v15 }
 0xd76   : > { %15991 = vmatprep.subr.bf16.mxu0 %v19896_v31 }
 0xd79   : > { %15993 = vmatpush3.bf16.msra.mxu0 %v18372_v26 }
 0xd7a   : > { %15994 = vmatprep.subr.bf16.mxu0 %v19896_v31 }
 0xd7d   : > { %15996 = vmatpush3.bf16.msra.mxu0 %v18376_v30 }
 0xd7e   : > { %15997 = vmatprep.subr.bf16.mxu0 %v19896_v31 }
 0xd81   : > { %15999 = vmatpush3.bf16.msra.mxu0 %v18380_v11 }
 0xd82   : > { %16000 = vmatprep.subr.bf16.mxu0 %v19896_v31 }
 0xd85   : > { %16002 = vmatpush3.bf16.msra.mxu0 %v18384_v52 }
 0xd86   : > { %16003 = vmatprep.subr.bf16.mxu0 %v19896_v31 }
 0xd89   : > { %16005 = vmatpush3.bf16.msra.mxu0 %v18394_v35 }
 0xd8a   : > { %16006 = vmatprep.subr.bf16.mxu0 %v19896_v31 }
 0xd8d   : > { %16008 = vmatpush3.bf16.msra.mxu0 %v18414_v13 }
 0xd8e   : > { %16009 = vmatprep.subr.bf16.mxu0 %v19896_v31 }
 0xd91   : > { %16011 = vmatpush3.bf16.msra.mxu0 %v18425_v61 }
 0xd94   : > { %14180 = vmatmul.mubr.f32.vlgmr.msra.gmra.mrb[50].mxu0 %v18789_v1  ;;  %v17036_v1 = vld [vmem:[#allocation2 + $0x4d0] sm:$0xff]  }
 0xe67   : > { %v4958_v3 = vpop.f32.mrb[50].mxu0 }
 0xe68   : > { %v4962_v23 = vmul.f32 0.0625, %v4958_v3  ;;  %v14181_v19 = vpop.f32.mrb[51].mxu0  ;;  %v17042_v3 = vld [vmem:[#allocation2 + $0x4e8] sm:$0xff]  }
 0xe69   : > { %v17044_v19 = vld [vmem:[#allocation2 + $0x4f0] sm:$0xff]  }
 0xe6a   : > { %v4963_v50 = vmul.f32 %v4962_v23, %v4962_v23  ;;  %v4972_v28 = vrot.slane %v4962_v23, %v17971_v57 }
 0xe6c   : > { %v4965_v32 = vrot.slane %v4963_v50, 7  ;;  %v4973_v2 = vsub.f32 %v18781_v0, %v4972_v28  ;;  %v17035_v0 = vld [vmem:[#allocation2 + $0x488] sm:$0xff]   ;;  %v17045_v50 = vld [vmem:[#allocation2 + $0x4b0] sm:$0xff]  }
 0xe6e   : > { %v4967_v4 = vsub.f32 %v4962_v23, %v4965_v32  ;;  %v17043_v23 = vld [vmem:[#allocation2 + $0x4a8] sm:$0xff]   ;;  %v17046_v32 = vld [vmem:[#allocation2 + $0x4f8] sm:$0xff]  }
 0xe70   : > { %v4968_v51 = vmax.f32 %v4967_v4, 0.0  ;;  %v17047_v4 = vld [vmem:[#allocation2 + $0x4b8] sm:$0xff]  }
 0xe72   : > { %v4974_v47 = vadd.f32 1e-05, %v4968_v51 }
 0xe74   : > { %17265 = vrsqrt.f32 %v4974_v47 }
 0xe7e   : > { %v17266_v43 = vpop.eup %17265 }
 0xe7f   : > { %v4979_v42 = vrot.slane %v17266_v43, %v19995_v25 }
 0xe81   : > { %v4980_v14 = vmul.f32 %v4979_v42, %v4973_v2  ;;  %v17048_v42 = vld [vmem:[#allocation2 + $0x500] sm:$0xff]  }
 0xe83   : > { %v4981_v58 = vmax.f32 %v4980_v14, 0.0 }
 0xe85   : > { %v4982_v7 = vpack.c.bf16 %v4981_v58, %v4981_v58  ;;  %v17049_v58 = vld [vmem:[#allocation2 + $0x508] sm:$0xff]  }
 0xe87   : > { %16824 = vmatprep.subr.msk.bf16.mxu1 %vm3978_vm6, %v4982_v7  ;;  %v5001_v40 = vsel %vm3978_vm6, %v4982_v7, 0  ;;  %v17050_v7 = vld [vmem:[#allocation2 + $0x510] sm:$0xff]  }
 0xe88   : > { %14183 = vmatpush3.bf16.msra.mxu1 %v5001_v40  ;;  %v17052_v40 = vld [vmem:[#allocation2 + $0x520] sm:$0xff]  }
 0xe89   : > { %12446 = vmatprep.subr.bf16.mxu1 %v17032_v27  ;;  %v17051_v27 = vld [vmem:[#allocation2 + $0x518] sm:$0xff]  }
 0xe8b   : > { %14185 = vmatmul.mubr.msk.bf16.vlgmr.msra.gmra.mrb[24].mxu1 %vm3971_vm5, %v17031_v63  ;;  %v17053_v63 = vld [vmem:[#allocation2 + $0x528] sm:$0xff]  }
 0xe8c   : > { %12447 = vmatpush3.bf16.msra.mxu1 %v17033_v22  ;;  %v17054_v22 = vld [vmem:[#allocation2 + $0x530] sm:$0xff]  }
 0xe8d   : > { %12448 = vmatprep.subr.bf16.mxu1 %v17034_v46  ;;  %v17055_v46 = vld [vmem:[#allocation2 + $0x538] sm:$0xff]  }
 0xe90   : > { %12449 = vmatpush3.bf16.msra.mxu1 %v17035_v0 }
 0xe91   : > { %12450 = vmatprep.subr.bf16.mxu1 %v17036_v1 }
 0xe94   : > { %12451 = vmatpush3.bf16.msra.mxu1 %v17037_v29 }
 0xe95   : > { %12452 = vmatprep.subr.bf16.mxu1 %v17038_v38 }
 0xe98   : > { %12453 = vmatpush3.bf16.msra.mxu1 %v17039_v34 }
 0xe99   : > { %12454 = vmatprep.subr.bf16.mxu1 %v17040_v18 }
 0xe9c   : > { %12455 = vmatpush3.bf16.msra.mxu1 %v17041_v62 }
 0xe9d   : > { %12456 = vmatprep.subr.bf16.mxu1 %v17042_v3 }
 0xea0   : > { %12457 = vmatpush3.bf16.msra.mxu1 %v17043_v23 }
 0xea1   : > { %12458 = vmatprep.subr.bf16.mxu1 %v17044_v19 }
 0xea4   : > { %12459 = vmatpush3.bf16.msra.mxu1 %v17045_v50 }
 0xea5   : > { %12460 = vmatprep.subr.bf16.mxu1 %v17046_v32 }
 0xea8   : > { %12461 = vmatpush3.bf16.msra.mxu1 %v17047_v4 }
 0xea9   : > { %14188 = vmatprep.subr.bf16.mxu1 %v19950_v15 }
 0xf5e   : > { %v14186_v51 = vpop.f32.mrb[24].mxu1 }
 0xf5f   : > { %v5037_v47 = vpop.f32.mrb[25].mxu1  ;;  %v5101_v0 = vpack.c.bf16 %v14186_v51, %v14186_v51 }
 0xf60   : > { %v14187_v28 = vpop.f32.mrb[26].mxu1  ;;  %v5099_v14 = vpack.c.bf16 %v5037_v47, %v5037_v47 }
 0xf61   : > { %v5040_v43 = vpop.f32.mrb[27].mxu1 }
 0xf62   : > { %v5100_v2 = vpack.c.bf16 %v5040_v43, %v5040_v43 }
 0xf64   : > { %5278 = vmatprep.mubr.bf16.mxu1 %v5100_v2 }
 0xf65   : > { %5279 = vmatmul.mubr.bf16.vlgmr.msra.gmra.mrb[28].mxu1 %v5099_v14 }
 0xf66   : > { %14189 = vmatpush3.bf16.msra.mxu1 %v17048_v42  ;;  %14204 = vmatprep.mubr.msk.bf16.mxu1 %vm17389_vm0, %v19950_v15 }
 0xf67   : > { %14190 = vmatprep.subr.bf16.mxu1 %v19950_v15 }
 0xf6a   : > { %14191 = vmatpush3.bf16.msra.mxu1 %v17049_v58 }
 0xf6b   : > { %14192 = vmatprep.subr.bf16.mxu1 %v19950_v15 }
 0xf6e   : > { %14193 = vmatpush3.bf16.msra.mxu1 %v17050_v7 }
 0xf6f   : > { %14194 = vmatprep.subr.bf16.mxu1 %v19950_v15 }
 0xf72   : > { %14195 = vmatpush3.bf16.msra.mxu1 %v17051_v27 }
 0xf73   : > { %14196 = vmatprep.subr.bf16.mxu1 %v19950_v15 }
 0xf76   : > { %14197 = vmatpush3.bf16.msra.mxu1 %v17052_v40 }
 0xf77   : > { %14198 = vmatprep.subr.bf16.mxu1 %v19950_v15 }
 0xf7a   : > { %14199 = vmatpush3.bf16.msra.mxu1 %v17053_v63 }
 0xf7b   : > { %14200 = vmatprep.subr.bf16.mxu1 %v19950_v15 }
 0xf7e   : > { %14201 = vmatpush3.bf16.msra.mxu1 %v17054_v22 }
 0xf7f   : > { %14202 = vmatprep.subr.bf16.mxu1 %v19950_v15 }
 0xf82   : > { %14203 = vmatpush3.bf16.msra.mxu1 %v17055_v46 }
 0xf83   : > { %16012 = vmatprep.subr.bf16.mxu1 %v19896_v31 }
 0xf85   : > { %14205 = vmatmul.mubr.bf16.vlgmr.msra.gmra.mrb[32].mxu1 %v5101_v0 }
 0xf86   : > { %16014 = vmatpush3.bf16.msra.mxu1 %v18368_v49  ;;  %14240 = vmatprep.mubr.msk.f32.mxu1 %vm17389_vm0, %v19950_v15 }
 0xf87   : > { %16015 = vmatprep.subr.bf16.mxu1 %v19896_v31 }
 0xf8a   : > { %16017 = vmatpush3.bf16.msra.mxu1 %v18372_v26 }
 0xf8b   : > { %16018 = vmatprep.subr.bf16.mxu1 %v19896_v31 }
 0xf8e   : > { %16020 = vmatpush3.bf16.msra.mxu1 %v18376_v30 }
 0xf8f   : > { %16021 = vmatprep.subr.bf16.mxu1 %v19896_v31 }
 0xf92   : > { %16023 = vmatpush3.bf16.msra.mxu1 %v18380_v11 }
 0xf93   : > { %16024 = vmatprep.subr.bf16.mxu1 %v19896_v31 }
 0xf96   : > { %16026 = vmatpush3.bf16.msra.mxu1 %v18384_v52 }
 0xf97   : > { %16027 = vmatprep.subr.bf16.mxu1 %v19896_v31 }
 0xf9a   : > { %16029 = vmatpush3.bf16.msra.mxu1 %v18394_v35 }
 0xf9b   : > { %16030 = vmatprep.subr.bf16.mxu1 %v19896_v31 }
 0xf9e   : > { %16032 = vmatpush3.bf16.msra.mxu1 %v18414_v13 }
 0xf9f   : > { %16033 = vmatprep.subr.bf16.mxu1 %v19896_v31 }
 0xfa2   : > { %16035 = vmatpush3.bf16.msra.mxu1 %v18425_v61 }
 0xfa3   : > { %16036 = vmatprep.subr.bf16.mxu1 %v19896_v31 }
0x1038   : > { %v12462_v1 = vpop.f32.mrb[28].mxu1 }
0x1039   : > { %v12463_v29 = vpop.f32.mrb[29].mxu1 }
0x103a   : > { %v12464_v38 = vadd.f32 %v12463_v29, %v12462_v1  ;;  %v12465_v34 = vpop.f32.mrb[30].mxu1 }
0x103b   : > { %v12466_v18 = vpop.f32.mrb[31].mxu1 }
0x103c   : > { %v17056_v18 = vld [vmem:[%s19715_s1 + $0x70] sm:$0xff]  }
0x103d   : > { %14420 = vmatprep.mubr.msk.bf16.mxu0 %vm3971_vm5, %v17056_v18  ;;  %v17068_v18 = vld [vmem:[#allocation2 + $0x5a8] sm:$0xff]  }
0x1058   : > { %v5320_v62 = vpop.f32.mrb[32].mxu1 }
0x1059   : > { %v18926_v3 = vadd.f32 %v12464_v38, %v5320_v62  ;;  %v14206_v23 = vpop.f32.mrb[33].mxu1 }
0x105a   : > { %v5323_v19 = vpop.f32.mrb[34].mxu1 }
0x105b   : > { %v5326_v50 = vsel %vm2872_vm4, %v18926_v3, 0.0  ;;  %v5333_v32 = vmul.f32 %v18926_v3, %v18926_v3  ;;  %v14207_v4 = vpop.f32.mrb[35].mxu1 }
0x105c   : > { %v5327_v51 = vrot.slane %v5326_v50, 4 }
0x105d   : > { %v5334_v47 = vsel %vm2872_vm4, %v5333_v32, 0.0 }
0x105e   : > { %v5328_v28 = vadd.f32 %v5327_v51, %v5326_v50  ;;  %v5335_v43 = vrot.slane %v5334_v47, 4 }
0x1060   : > { %v5329_v2 = vrot.slane %v5328_v28, 2  ;;  %v5336_v42 = vadd.f32 %v5335_v43, %v5334_v47 }
0x1062   : > { %v5330_v14 = vadd.f32 %v5329_v2, %v5328_v28  ;;  %v5337_v58 = vrot.slane %v5336_v42, 2 }
0x1064   : > { %v5331_v7 = vrot.slane %v5330_v14, 1  ;;  %v5338_v27 = vadd.f32 %v5337_v58, %v5336_v42 }
0x1066   : > { %v5339_v40 = vrot.slane %v5338_v27, 1  ;;  %v5332_v63 = vadd.f32 %v5331_v7, %v5330_v14 }
0x1068   : > { %v5340_v22 = vadd.f32 %v5339_v40, %v5338_v27  ;;  %v17058_v27 = vld [vmem:[#allocation2 + $0x580] sm:$0xff]  }
0x106a   : > { %v5341_v46 = vsel %vm1082_vm2, %v5332_v63, %v5340_v22  ;;  %v17057_v63 = vld [vmem:[%s19715_s1 + $0x78] ss:$0 sps:$4 sm:$0xff]   ;;  %v17060_v22 = vld [vmem:[#allocation2 + $0x588] sm:$0xff]  }
0x106b   : > { %v18934_v0 = vand.u32 4294901760, %v5341_v46 }
0x106d   : > { %v5424_v1 = vsub.f32 %v5341_v46, %v18934_v0  ;;  %v17062_v46 = vld [vmem:[#allocation2 + $0x590] sm:$0xff]  }
0x106f   : > { %v5425_v29 = vand.u32 4294901760, %v5424_v1 }
0x1071   : > { %v5426_v38 = vsub.f32 %v5424_v1, %v5425_v29 }
0x1073   : > { %v5427_v34 = vand.u32 4294901760, %v5426_v38  ;;  %v17066_v38 = vld [vmem:[#allocation2 + $0x5a0] sm:$0xff]  }
0x1075   : > { %14241 = vmatmul.mubr.f32.vlgmr.msra.gmra.mrb[36].mxu1 %v5427_v34  ;;  %v17067_v34 = vld [vmem:[#allocation2 + $0x560] sm:$0xff]  }
0x1076   : > { %16038 = vmatpush3.bf16.msra.mxu1 %v18444_v20  ;;  %14275 = vmatprep.mubr.msk.f32.mxu1 %vm17389_vm0, %v19950_v15 }
0x1077   : > { %16039 = vmatprep.subr.bf16.mxu1 %v19896_v31 }
0x107a   : > { %16041 = vmatpush3.bf16.msra.mxu1 %v18458_v45 }
0x107b   : > { %16042 = vmatprep.subr.bf16.mxu1 %v19896_v31 }
0x107e   : > { %16044 = vmatpush3.bf16.msra.mxu1 %v18472_v6 }
0x107f   : > { %16045 = vmatprep.subr.bf16.mxu1 %v19896_v31 }
0x1082   : > { %16047 = vmatpush3.bf16.msra.mxu1 %v18498_v10 }
0x1083   : > { %16048 = vmatprep.subr.bf16.mxu1 %v19896_v31 }
0x1086   : > { %16050 = vmatpush3.bf16.msra.mxu1 %v18502_v54 }
0x1087   : > { %16051 = vmatprep.subr.bf16.mxu1 %v19896_v31 }
0x108a   : > { %16053 = vmatpush3.bf16.msra.mxu1 %v18522_v21 }
0x108b   : > { %16054 = vmatprep.subr.bf16.mxu1 %v19896_v31 }
0x108e   : > { %16056 = vmatpush3.bf16.msra.mxu1 %v18548_v59 }
0x108f   : > { %16057 = vmatprep.subr.bf16.mxu1 %v19896_v31 }
0x1092   : > { %16059 = vmatpush3.bf16.msra.mxu1 %v18550_v5 }
0x1093   : > { %16060 = vmatprep.subr.bf16.mxu1 %v19896_v31 }
0x1095   : > { %14276 = vmatmul.mubr.f32.vlgmr.msra.gmra.mrb[36].mxu1 %v18934_v0 }
0x1096   : > { %16062 = vmatpush3.bf16.msra.mxu1 %v18554_v16  ;;  %14310 = vmatprep.mubr.msk.f32.mxu1 %vm17389_vm0, %v19950_v15 }
0x1097   : > { %16063 = vmatprep.subr.bf16.mxu1 %v19896_v31 }
0x109a   : > { %16065 = vmatpush3.bf16.msra.mxu1 %v18558_v44 }
0x109b   : > { %16066 = vmatprep.subr.bf16.mxu1 %v19896_v31 }
0x109e   : > { %16068 = vmatpush3.bf16.msra.mxu1 %v18562_v24 }
0x109f   : > { %16069 = vmatprep.subr.bf16.mxu1 %v19896_v31 }
0x10a2   : > { %16071 = vmatpush3.bf16.msra.mxu1 %v18566_v37 }
0x10a3   : > { %16072 = vmatprep.subr.bf16.mxu1 %v19896_v31 }
0x10a6   : > { %16074 = vmatpush3.bf16.msra.mxu1 %v18570_v12 }
0x10a7   : > { %16075 = vmatprep.subr.bf16.mxu1 %v19896_v31 }
0x10aa   : > { %16077 = vmatpush3.bf16.msra.mxu1 %v18574_v53 }
0x10ab   : > { %16078 = vmatprep.subr.bf16.mxu1 %v19896_v31 }
0x10ae   : > { %16080 = vmatpush3.bf16.msra.mxu1 %v18578_v55 }
0x10af   : > { %16081 = vmatprep.subr.bf16.mxu1 %v19896_v31 }
0x10b2   : > { %16083 = vmatpush3.bf16.msra.mxu1 %v18582_v33 }
0x10b3   : > { %16084 = vmatprep.subr.bf16.mxu1 %v19896_v31 }
0x10b5   : > { %14311 = vmatmul.mubr.f32.vlgmr.msra.gmra.mrb[36].mxu1 %v5424_v1  ;;  %v17064_v1 = vld [vmem:[#allocation2 + $0x598] sm:$0xff]  }
0x10b6   : > { %16086 = vmatpush3.bf16.msra.mxu1 %v18368_v49  ;;  %14345 = vmatprep.mubr.msk.f32.mxu1 %vm17389_vm0, %v19950_v15 }
0x10b7   : > { %16087 = vmatprep.subr.bf16.mxu1 %v19896_v31 }
0x10ba   : > { %16089 = vmatpush3.bf16.msra.mxu1 %v18372_v26 }
0x10bb   : > { %16090 = vmatprep.subr.bf16.mxu1 %v19896_v31 }
0x10be   : > { %16092 = vmatpush3.bf16.msra.mxu1 %v18376_v30 }
0x10bf   : > { %16093 = vmatprep.subr.bf16.mxu1 %v19896_v31 }
0x10c2   : > { %16095 = vmatpush3.bf16.msra.mxu1 %v18380_v11 }
0x10c3   : > { %16096 = vmatprep.subr.bf16.mxu1 %v19896_v31 }
0x10c6   : > { %16098 = vmatpush3.bf16.msra.mxu1 %v18384_v52 }
0x10c7   : > { %16099 = vmatprep.subr.bf16.mxu1 %v19896_v31 }
0x10ca   : > { %16101 = vmatpush3.bf16.msra.mxu1 %v18394_v35 }
0x10cb   : > { %16102 = vmatprep.subr.bf16.mxu1 %v19896_v31 }
0x10ce   : > { %16104 = vmatpush3.bf16.msra.mxu1 %v18414_v13 }
0x10cf   : > { %16105 = vmatprep.subr.bf16.mxu1 %v19896_v31 }
0x10d2   : > { %16107 = vmatpush3.bf16.msra.mxu1 %v18425_v61 }
0x10d3   : > { %16108 = vmatprep.subr.bf16.mxu1 %v19896_v31 }
0x10d5   : > { %14346 = vmatmul.mubr.f32.vlgmr.msra.gmra.mrb[36].mxu1 %v5425_v29  ;;  %v17065_v29 = vld [vmem:[#allocation2 + $0x558] sm:$0xff]  }
0x10d6   : > { %16110 = vmatpush3.bf16.msra.mxu1 %v18653_v56  ;;  %14380 = vmatprep.mubr.msk.f32.mxu1 %vm17389_vm0, %v19950_v15 }
0x10d7   : > { %16111 = vmatprep.subr.bf16.mxu1 %v19896_v31 }
0x10da   : > { %16113 = vmatpush3.bf16.msra.mxu1 %v18661_v39 }
0x10db   : > { %16114 = vmatprep.subr.bf16.mxu1 %v19896_v31 }
0x10de   : > { %16116 = vmatpush3.bf16.msra.mxu1 %v18671_v41 }
0x10df   : > { %16117 = vmatprep.subr.bf16.mxu1 %v19896_v31 }
0x10e2   : > { %16119 = vmatpush3.bf16.msra.mxu1 %v18679_v60 }
0x10e3   : > { %16120 = vmatprep.subr.bf16.mxu1 %v19896_v31 }
0x10e6   : > { %16122 = vmatpush3.bf16.msra.mxu1 %v18687_v36 }
0x10e7   : > { %16123 = vmatprep.subr.bf16.mxu1 %v19896_v31 }
0x10ea   : > { %16125 = vmatpush3.bf16.msra.mxu1 %v18695_v9 }
0x10eb   : > { %16126 = vmatprep.subr.bf16.mxu1 %v19896_v31 }
0x10ee   : > { %16128 = vmatpush3.bf16.msra.mxu1 %v18703_v8 }
0x10ef   : > { %16129 = vmatprep.subr.bf16.mxu1 %v19896_v31 }
0x10f2   : > { %16131 = vmatpush3.bf16.msra.mxu1 %v18711_v48 }
0x10f3   : > { %16132 = vmatprep.subr.bf16.mxu1 %v19896_v31 }
0x10f5   : > { %14381 = vmatmul.mubr.f32.vlgmr.msra.gmra.mrb[36].mxu1 %v18934_v0 }
0x10f6   : > { %16134 = vmatpush3.bf16.msra.mxu1 %v18368_v49  ;;  %14415 = vmatprep.mubr.msk.f32.mxu1 %vm17389_vm0, %v19950_v15 }
0x10f7   : > { %16135 = vmatprep.subr.bf16.mxu1 %v19896_v31 }
0x10fa   : > { %16137 = vmatpush3.bf16.msra.mxu1 %v18372_v26 }
0x10fb   : > { %16138 = vmatprep.subr.bf16.mxu1 %v19896_v31 }
0x10fe   : > { %16140 = vmatpush3.bf16.msra.mxu1 %v18376_v30 }
0x10ff   : > { %16141 = vmatprep.subr.bf16.mxu1 %v19896_v31 }
0x1102   : > { %16143 = vmatpush3.bf16.msra.mxu1 %v18380_v11 }
0x1103   : > { %16144 = vmatprep.subr.bf16.mxu1 %v19896_v31 }
0x1106   : > { %16146 = vmatpush3.bf16.msra.mxu1 %v18384_v52 }
0x1107   : > { %16147 = vmatprep.subr.bf16.mxu1 %v19896_v31 }
0x110a   : > { %16149 = vmatpush3.bf16.msra.mxu1 %v18394_v35 }
0x110b   : > { %16150 = vmatprep.subr.bf16.mxu1 %v19896_v31 }
0x110e   : > { %16152 = vmatpush3.bf16.msra.mxu1 %v18414_v13 }
0x110f   : > { %16153 = vmatprep.subr.bf16.mxu1 %v19896_v31 }
0x1112   : > { %16155 = vmatpush3.bf16.msra.mxu1 %v18425_v61 }
0x1115   : > { %14416 = vmatmul.mubr.f32.vlgmr.msra.gmra.mrb[36].mxu1 %v18934_v0  ;;  %v17063_v0 = vld [vmem:[#allocation2 + $0x550] sm:$0xff]  }
0x11e8   : > { %v5979_v62 = vpop.f32.mrb[36].mxu1 }
0x11e9   : > { %v5983_v23 = vmul.f32 0.0625, %v5979_v62  ;;  %v14417_v19 = vpop.f32.mrb[37].mxu1  ;;  %v17069_v62 = vld [vmem:[#allocation2 + $0x568] sm:$0xff]  }
0x11ea   : > { %v17071_v19 = vld [vmem:[#allocation2 + $0x570] sm:$0xff]  }
0x11eb   : > { %v5984_v50 = vmul.f32 %v5983_v23, %v5983_v23  ;;  %v5993_v28 = vrot.slane %v5983_v23, %v17971_v57 }
0x11ed   : > { %v5986_v32 = vrot.slane %v5984_v50, 7  ;;  %v5994_v2 = vsub.f32 %v18926_v3, %v5993_v28  ;;  %v17059_v3 = vld [vmem:[#allocation2 + $0x540] sm:$0xff]   ;;  %v17072_v50 = vld [vmem:[#allocation2 + $0x5b8] sm:$0xff]  }
0x11ef   : > { %v5988_v4 = vsub.f32 %v5983_v23, %v5986_v32  ;;  %v17070_v23 = vld [vmem:[#allocation2 + $0x5b0] sm:$0xff]   ;;  %v17073_v32 = vld [vmem:[#allocation2 + $0x578] sm:$0xff]  }
0x11f1   : > { %v5989_v51 = vmax.f32 %v5988_v4, 0.0 }
0x11f3   : > { %v5995_v47 = vadd.f32 1e-05, %v5989_v51 }
0x11f5   : > { %17267 = vrsqrt.f32 %v5995_v47 }
0x11ff   : > { %v17268_v43 = vpop.eup %17267 }
0x1200   : > { %v6000_v42 = vrot.slane %v17268_v43, %v19995_v25 }
0x1202   : > { %v6001_v14 = vmul.f32 %v6000_v42, %v5994_v2  ;;  %v17074_v2 = vld [vmem:[#allocation2 + $0x5c0] sm:$0xff]  }
0x1204   : > { %v19037_v58 = vadd.f32 %v6001_v14, %v18742_v17  ;;  %v17061_v17 = vld [vmem:[#allocation2 + $0x548] sm:$0xff]  }
0x1205   : > { %v17075_v14 = vld [vmem:[#allocation2 + $0x5c8] sm:$0xff]  }
0x1206   : > { %v6003_v7 = vpack.c.bf16 %v19037_v58, %v19037_v58 }
0x1208   : > { %16825 = vmatprep.subr.msk.bf16.mxu0 %vm3978_vm6, %v6003_v7  ;;  %v6022_v40 = vsel %vm3978_vm6, %v6003_v7, 0  ;;  %v17076_v7 = vld [vmem:[#allocation2 + $0x5d0] sm:$0xff]  }
0x1209   : > { %14419 = vmatpush3.bf16.msra.mxu0 %v6022_v40  ;;  %v17078_v40 = vld [vmem:[#allocation2 + $0x5e0] sm:$0xff]  }
0x120a   : > { %12582 = vmatprep.subr.bf16.mxu0 %v17058_v27  ;;  %v17077_v27 = vld [vmem:[#allocation2 + $0x5d8] sm:$0xff]  }
0x120c   : > { %14421 = vmatmul.mubr.msk.bf16.vlgmr.msra.gmra.mrb[64].mxu0 %vm3971_vm5, %v17057_v63  ;;  %v17079_v63 = vld [vmem:[#allocation2 + $0x5e8] sm:$0xff]  }
0x120d   : > { %12583 = vmatpush3.bf16.msra.mxu0 %v17059_v3  ;;  %v17080_v3 = vld [vmem:[#allocation2 + $0x5f0] sm:$0xff]  }
0x120e   : > { %12584 = vmatprep.subr.bf16.mxu0 %v17060_v22  ;;  %v17081_v22 = vld [vmem:[#allocation2 + $0x5f8] sm:$0xff]  }
0x1211   : > { %12585 = vmatpush3.bf16.msra.mxu0 %v17061_v17 }
0x1212   : > { %12586 = vmatprep.subr.bf16.mxu0 %v17062_v46 }
0x1215   : > { %12587 = vmatpush3.bf16.msra.mxu0 %v17063_v0 }
0x1216   : > { %12588 = vmatprep.subr.bf16.mxu0 %v17064_v1 }
0x1219   : > { %12589 = vmatpush3.bf16.msra.mxu0 %v17065_v29 }
0x121a   : > { %12590 = vmatprep.subr.bf16.mxu0 %v17066_v38 }
0x121d   : > { %12591 = vmatpush3.bf16.msra.mxu0 %v17067_v34 }
0x121e   : > { %12592 = vmatprep.subr.bf16.mxu0 %v17068_v18 }
0x1221   : > { %12593 = vmatpush3.bf16.msra.mxu0 %v17069_v62 }
0x1222   : > { %12594 = vmatprep.subr.bf16.mxu0 %v17070_v23 }
0x1225   : > { %12595 = vmatpush3.bf16.msra.mxu0 %v17071_v19 }
0x1226   : > { %12596 = vmatprep.subr.bf16.mxu0 %v17072_v50 }
0x1229   : > { %12597 = vmatpush3.bf16.msra.mxu0 %v17073_v32 }
0x122a   : > { %14424 = vmatprep.subr.bf16.mxu0 %v19950_v15 }
0x12df   : > { %v14422_v4 = vpop.f32.mrb[64].mxu0 }
0x12e0   : > { %v6058_v51 = vpop.f32.mrb[65].mxu0  ;;  %v6122_v17 = vpack.c.bf16 %v14422_v4, %v14422_v4 }
0x12e1   : > { %v14423_v47 = vpop.f32.mrb[66].mxu0  ;;  %v6120_v42 = vpack.c.bf16 %v6058_v51, %v6058_v51 }
0x12e2   : > { %v6061_v28 = vpop.f32.mrb[67].mxu0 }
0x12e3   : > { %v6121_v43 = vpack.c.bf16 %v6061_v28, %v6061_v28 }
0x12e5   : > { %6299 = vmatprep.mubr.bf16.mxu0 %v6121_v43 }
0x12e6   : > { %6300 = vmatmul.mubr.bf16.vlgmr.msra.gmra.mrb[68].mxu0 %v6120_v42 }
0x12e7   : > { %14425 = vmatpush3.bf16.msra.mxu0 %v17074_v2  ;;  %14440 = vmatprep.mubr.msk.bf16.mxu0 %vm17389_vm0, %v19950_v15 }
0x12e8   : > { %14426 = vmatprep.subr.bf16.mxu0 %v19950_v15 }
0x12eb   : > { %14427 = vmatpush3.bf16.msra.mxu0 %v17075_v14 }
0x12ec   : > { %14428 = vmatprep.subr.bf16.mxu0 %v19950_v15 }
0x12ef   : > { %14429 = vmatpush3.bf16.msra.mxu0 %v17076_v7 }
0x12f0   : > { %14430 = vmatprep.subr.bf16.mxu0 %v19950_v15 }
0x12f3   : > { %14431 = vmatpush3.bf16.msra.mxu0 %v17077_v27 }
0x12f4   : > { %14432 = vmatprep.subr.bf16.mxu0 %v19950_v15 }
0x12f7   : > { %14433 = vmatpush3.bf16.msra.mxu0 %v17078_v40 }
0x12f8   : > { %14434 = vmatprep.subr.bf16.mxu0 %v19950_v15 }
0x12fb   : > { %14435 = vmatpush3.bf16.msra.mxu0 %v17079_v63 }
0x12fc   : > { %14436 = vmatprep.subr.bf16.mxu0 %v19950_v15 }
0x12ff   : > { %14437 = vmatpush3.bf16.msra.mxu0 %v17080_v3 }
0x1300   : > { %14438 = vmatprep.subr.bf16.mxu0 %v19950_v15 }
0x1303   : > { %14439 = vmatpush3.bf16.msra.mxu0 %v17081_v22 }
0x1304   : > { %16156 = vmatprep.subr.bf16.mxu0 %v19896_v31 }
0x1306   : > { %14441 = vmatmul.mubr.bf16.vlgmr.msra.gmra.mrb[72].mxu0 %v6122_v17 }
0x1307   : > { %16158 = vmatpush3.bf16.msra.mxu0 %v18368_v49  ;;  %14476 = vmatprep.mubr.msk.f32.mxu0 %vm17389_vm0, %v19950_v15 }
0x1308   : > { %16159 = vmatprep.subr.bf16.mxu0 %v19896_v31 }
0x130b   : > { %16161 = vmatpush3.bf16.msra.mxu0 %v18372_v26 }
0x130c   : > { %16162 = vmatprep.subr.bf16.mxu0 %v19896_v31 }
0x130f   : > { %16164 = vmatpush3.bf16.msra.mxu0 %v18376_v30 }
0x1310   : > { %16165 = vmatprep.subr.bf16.mxu0 %v19896_v31 }
0x1313   : > { %16167 = vmatpush3.bf16.msra.mxu0 %v18380_v11 }
0x1314   : > { %16168 = vmatprep.subr.bf16.mxu0 %v19896_v31 }
0x1317   : > { %16170 = vmatpush3.bf16.msra.mxu0 %v18384_v52 }
0x1318   : > { %16171 = vmatprep.subr.bf16.mxu0 %v19896_v31 }
0x131b   : > { %16173 = vmatpush3.bf16.msra.mxu0 %v18394_v35 }
0x131c   : > { %16174 = vmatprep.subr.bf16.mxu0 %v19896_v31 }
0x131f   : > { %16176 = vmatpush3.bf16.msra.mxu0 %v18414_v13 }
0x1320   : > { %16177 = vmatprep.subr.bf16.mxu0 %v19896_v31 }
0x1323   : > { %16179 = vmatpush3.bf16.msra.mxu0 %v18425_v61 }
0x1324   : > { %16180 = vmatprep.subr.bf16.mxu0 %v19896_v31 }
0x13b9   : > { %v12598_v46 = vpop.f32.mrb[68].mxu0 }
0x13ba   : > { %v12599_v0 = vpop.f32.mrb[69].mxu0 }
0x13bb   : > { %v12600_v1 = vadd.f32 %v12599_v0, %v12598_v46  ;;  %v12601_v29 = vpop.f32.mrb[70].mxu0 }
0x13bc   : > { %v12602_v38 = vpop.f32.mrb[71].mxu0 }
0x13bd   : > { %v17082_v38 = vld [vmem:[%s19715_s1 + $0x7c] sm:$0xff]  }
0x13be   : > { %14656 = vmatprep.mubr.msk.bf16.mxu1 %vm3971_vm5, %v17082_v38  ;;  %v17093_v38 = vld [vmem:[#allocation2 + $0x620] sm:$0xff]  }
0x13d9   : > { %v6341_v34 = vpop.f32.mrb[72].mxu0 }
0x13da   : > { %v19076_v18 = vadd.f32 %v12600_v1, %v6341_v34  ;;  %v14442_v62 = vpop.f32.mrb[73].mxu0 }
0x13db   : > { %v6344_v23 = vpop.f32.mrb[74].mxu0 }
0x13dc   : > { %v6347_v19 = vsel %vm2872_vm4, %v19076_v18, 0.0  ;;  %v6354_v50 = vmul.f32 %v19076_v18, %v19076_v18  ;;  %v14443_v32 = vpop.f32.mrb[75].mxu0 }
0x13dd   : > { %v6348_v4 = vrot.slane %v6347_v19, 4 }
0x13de   : > { %v6355_v51 = vsel %vm2872_vm4, %v6354_v50, 0.0 }
0x13df   : > { %v6349_v47 = vadd.f32 %v6348_v4, %v6347_v19  ;;  %v6356_v28 = vrot.slane %v6355_v51, 4 }
0x13e1   : > { %v6350_v43 = vrot.slane %v6349_v47, 2  ;;  %v6357_v2 = vadd.f32 %v6356_v28, %v6355_v51 }
0x13e3   : > { %v6351_v42 = vadd.f32 %v6350_v43, %v6349_v47  ;;  %v6358_v14 = vrot.slane %v6357_v2, 2 }
0x13e5   : > { %v6352_v7 = vrot.slane %v6351_v42, 1  ;;  %v6359_v27 = vadd.f32 %v6358_v14, %v6357_v2 }
0x13e7   : > { %v6360_v40 = vrot.slane %v6359_v27, 1  ;;  %v6353_v63 = vadd.f32 %v6352_v7, %v6351_v42 }
0x13e9   : > { %v6361_v3 = vadd.f32 %v6360_v40, %v6359_v27  ;;  %v17084_v27 = vld [vmem:[#allocation2 + $0x640] sm:$0xff]  }
0x13eb   : > { %v6362_v22 = vsel %vm1082_vm2, %v6353_v63, %v6361_v3  ;;  %v17083_v63 = vld [vmem:[%s19715_s1 + $0x84] ss:$0 sps:$4 sm:$0xff]  }
0x13ec   : > { %v19084_v17 = vand.u32 4294901760, %v6362_v22  ;;  %v17085_v3 = vld [vmem:[#allocation2 + $0x600] sm:$0xff]  }
0x13ee   : > { %v6445_v46 = vsub.f32 %v6362_v22, %v19084_v17  ;;  %v17086_v22 = vld [vmem:[#allocation2 + $0x648] sm:$0xff]  }
0x13f0   : > { %v6446_v0 = vand.u32 4294901760, %v6445_v46 }
0x13f2   : > { %v6447_v1 = vsub.f32 %v6445_v46, %v6446_v0 }
0x13f4   : > { %v6448_v29 = vand.u32 4294901760, %v6447_v1  ;;  %v17091_v1 = vld [vmem:[#allocation2 + $0x618] sm:$0xff]  }
0x13f6   : > { %14477 = vmatmul.mubr.f32.vlgmr.msra.gmra.mrb[76].mxu0 %v6448_v29  ;;  %v17092_v29 = vld [vmem:[#allocation2 + $0x660] sm:$0xff]  }
0x13f7   : > { %16182 = vmatpush3.bf16.msra.mxu0 %v18444_v20  ;;  %14511 = vmatprep.mubr.msk.f32.mxu0 %vm17389_vm0, %v19950_v15 }
0x13f8   : > { %16183 = vmatprep.subr.bf16.mxu0 %v19896_v31 }
0x13fb   : > { %16185 = vmatpush3.bf16.msra.mxu0 %v18458_v45 }
0x13fc   : > { %16186 = vmatprep.subr.bf16.mxu0 %v19896_v31 }
0x13ff   : > { %16188 = vmatpush3.bf16.msra.mxu0 %v18472_v6 }
0x1400   : > { %16189 = vmatprep.subr.bf16.mxu0 %v19896_v31 }
0x1403   : > { %16191 = vmatpush3.bf16.msra.mxu0 %v18498_v10 }
0x1404   : > { %16192 = vmatprep.subr.bf16.mxu0 %v19896_v31 }
0x1407   : > { %16194 = vmatpush3.bf16.msra.mxu0 %v18502_v54 }
0x1408   : > { %16195 = vmatprep.subr.bf16.mxu0 %v19896_v31 }
0x140b   : > { %16197 = vmatpush3.bf16.msra.mxu0 %v18522_v21 }
0x140c   : > { %16198 = vmatprep.subr.bf16.mxu0 %v19896_v31 }
0x140f   : > { %16200 = vmatpush3.bf16.msra.mxu0 %v18548_v59 }
0x1410   : > { %16201 = vmatprep.subr.bf16.mxu0 %v19896_v31 }
0x1413   : > { %16203 = vmatpush3.bf16.msra.mxu0 %v18550_v5 }
0x1414   : > { %16204 = vmatprep.subr.bf16.mxu0 %v19896_v31 }
0x1416   : > { %14512 = vmatmul.mubr.f32.vlgmr.msra.gmra.mrb[76].mxu0 %v19084_v17 }
0x1417   : > { %16206 = vmatpush3.bf16.msra.mxu0 %v18554_v16  ;;  %14546 = vmatprep.mubr.msk.f32.mxu0 %vm17389_vm0, %v19950_v15 }
0x1418   : > { %16207 = vmatprep.subr.bf16.mxu0 %v19896_v31 }
0x141b   : > { %16209 = vmatpush3.bf16.msra.mxu0 %v18558_v44 }
0x141c   : > { %16210 = vmatprep.subr.bf16.mxu0 %v19896_v31 }
0x141f   : > { %16212 = vmatpush3.bf16.msra.mxu0 %v18562_v24 }
0x1420   : > { %16213 = vmatprep.subr.bf16.mxu0 %v19896_v31 }
0x1423   : > { %16215 = vmatpush3.bf16.msra.mxu0 %v18566_v37 }
0x1424   : > { %16216 = vmatprep.subr.bf16.mxu0 %v19896_v31 }
0x1427   : > { %16218 = vmatpush3.bf16.msra.mxu0 %v18570_v12 }
0x1428   : > { %16219 = vmatprep.subr.bf16.mxu0 %v19896_v31 }
0x142b   : > { %16221 = vmatpush3.bf16.msra.mxu0 %v18574_v53 }
0x142c   : > { %16222 = vmatprep.subr.bf16.mxu0 %v19896_v31 }
0x142f   : > { %16224 = vmatpush3.bf16.msra.mxu0 %v18578_v55 }
0x1430   : > { %16225 = vmatprep.subr.bf16.mxu0 %v19896_v31 }
0x1433   : > { %16227 = vmatpush3.bf16.msra.mxu0 %v18582_v33 }
0x1434   : > { %16228 = vmatprep.subr.bf16.mxu0 %v19896_v31 }
0x1436   : > { %14547 = vmatmul.mubr.f32.vlgmr.msra.gmra.mrb[76].mxu0 %v6445_v46  ;;  %v17089_v46 = vld [vmem:[#allocation2 + $0x610] sm:$0xff]  }
0x1437   : > { %16230 = vmatpush3.bf16.msra.mxu0 %v18368_v49  ;;  %14581 = vmatprep.mubr.msk.f32.mxu0 %vm17389_vm0, %v19950_v15 }
0x1438   : > { %16231 = vmatprep.subr.bf16.mxu0 %v19896_v31 }
0x143b   : > { %16233 = vmatpush3.bf16.msra.mxu0 %v18372_v26 }
0x143c   : > { %16234 = vmatprep.subr.bf16.mxu0 %v19896_v31 }
0x143f   : > { %16236 = vmatpush3.bf16.msra.mxu0 %v18376_v30 }
0x1440   : > { %16237 = vmatprep.subr.bf16.mxu0 %v19896_v31 }
0x1443   : > { %16239 = vmatpush3.bf16.msra.mxu0 %v18380_v11 }
0x1444   : > { %16240 = vmatprep.subr.bf16.mxu0 %v19896_v31 }
0x1447   : > { %16242 = vmatpush3.bf16.msra.mxu0 %v18384_v52 }
0x1448   : > { %16243 = vmatprep.subr.bf16.mxu0 %v19896_v31 }
0x144b   : > { %16245 = vmatpush3.bf16.msra.mxu0 %v18394_v35 }
0x144c   : > { %16246 = vmatprep.subr.bf16.mxu0 %v19896_v31 }
0x144f   : > { %16248 = vmatpush3.bf16.msra.mxu0 %v18414_v13 }
0x1450   : > { %16249 = vmatprep.subr.bf16.mxu0 %v19896_v31 }
0x1453   : > { %16251 = vmatpush3.bf16.msra.mxu0 %v18425_v61 }
0x1454   : > { %16252 = vmatprep.subr.bf16.mxu0 %v19896_v31 }
0x1456   : > { %14582 = vmatmul.mubr.f32.vlgmr.msra.gmra.mrb[76].mxu0 %v6446_v0  ;;  %v17090_v0 = vld [vmem:[#allocation2 + $0x658] sm:$0xff]  }
0x1457   : > { %16254 = vmatpush3.bf16.msra.mxu0 %v18653_v56  ;;  %14616 = vmatprep.mubr.msk.f32.mxu0 %vm17389_vm0, %v19950_v15 }
0x1458   : > { %16255 = vmatprep.subr.bf16.mxu0 %v19896_v31 }
0x145b   : > { %16257 = vmatpush3.bf16.msra.mxu0 %v18661_v39 }
0x145c   : > { %16258 = vmatprep.subr.bf16.mxu0 %v19896_v31 }
0x145f   : > { %16260 = vmatpush3.bf16.msra.mxu0 %v18671_v41 }
0x1460   : > { %16261 = vmatprep.subr.bf16.mxu0 %v19896_v31 }
0x1463   : > { %16263 = vmatpush3.bf16.msra.mxu0 %v18679_v60 }
0x1464   : > { %16264 = vmatprep.subr.bf16.mxu0 %v19896_v31 }
0x1467   : > { %16266 = vmatpush3.bf16.msra.mxu0 %v18687_v36 }
0x1468   : > { %16267 = vmatprep.subr.bf16.mxu0 %v19896_v31 }
0x146b   : > { %16269 = vmatpush3.bf16.msra.mxu0 %v18695_v9 }
0x146c   : > { %16270 = vmatprep.subr.bf16.mxu0 %v19896_v31 }
0x146f   : > { %16272 = vmatpush3.bf16.msra.mxu0 %v18703_v8 }
0x1470   : > { %16273 = vmatprep.subr.bf16.mxu0 %v19896_v31 }
0x1473   : > { %16275 = vmatpush3.bf16.msra.mxu0 %v18711_v48 }
0x1474   : > { %16276 = vmatprep.subr.bf16.mxu0 %v19896_v31 }
0x1476   : > { %14617 = vmatmul.mubr.f32.vlgmr.msra.gmra.mrb[76].mxu0 %v19084_v17 }
0x1477   : > { %16278 = vmatpush3.bf16.msra.mxu0 %v18368_v49  ;;  %14651 = vmatprep.mubr.msk.f32.mxu0 %vm17389_vm0, %v19950_v15 }
0x1478   : > { %16279 = vmatprep.subr.bf16.mxu0 %v19896_v31 }
0x147b   : > { %16281 = vmatpush3.bf16.msra.mxu0 %v18372_v26 }
0x147c   : > { %16282 = vmatprep.subr.bf16.mxu0 %v19896_v31 }
0x147f   : > { %16284 = vmatpush3.bf16.msra.mxu0 %v18376_v30 }
0x1480   : > { %16285 = vmatprep.subr.bf16.mxu0 %v19896_v31 }
0x1483   : > { %16287 = vmatpush3.bf16.msra.mxu0 %v18380_v11 }
0x1484   : > { %16288 = vmatprep.subr.bf16.mxu0 %v19896_v31 }
0x1487   : > { %16290 = vmatpush3.bf16.msra.mxu0 %v18384_v52 }
0x1488   : > { %16291 = vmatprep.subr.bf16.mxu0 %v19896_v31 }
0x148b   : > { %16293 = vmatpush3.bf16.msra.mxu0 %v18394_v35 }
0x148c   : > { %16294 = vmatprep.subr.bf16.mxu0 %v19896_v31 }
0x148f   : > { %16296 = vmatpush3.bf16.msra.mxu0 %v18414_v13 }
0x1490   : > { %16297 = vmatprep.subr.bf16.mxu0 %v19896_v31 }
0x1493   : > { %16299 = vmatpush3.bf16.msra.mxu0 %v18425_v61 }
0x1494   : > { %14890 = vmatprep.subr.bf16.mxu0 %v19950_v15 }
0x1496   : > { %14652 = vmatmul.mubr.f32.vlgmr.msra.gmra.mrb[76].mxu0 %v19084_v17  ;;  %v17088_v17 = vld [vmem:[#allocation2 + $0x650] sm:$0xff]  }
0x1497   : > { %14892 = vmatprep.mubr.msk.bf16.mxu0 %vm17389_vm0, %v19950_v15 }
0x1569   : > { %v7000_v34 = vpop.f32.mrb[76].mxu0 }
0x156a   : > { %v7004_v62 = vmul.f32 0.0625, %v7000_v34  ;;  %v14653_v23 = vpop.f32.mrb[77].mxu0  ;;  %v17094_v34 = vld [vmem:[#allocation2 + $0x668] sm:$0xff]  }
0x156b   : > { %v17096_v23 = vld [vmem:[#allocation2 + $0x670] sm:$0xff]  }
0x156c   : > { %v7005_v19 = vmul.f32 %v7004_v62, %v7004_v62  ;;  %v7014_v47 = vrot.slane %v7004_v62, %v17971_v57 }
0x156e   : > { %v7007_v50 = vrot.slane %v7005_v19, 7  ;;  %v7015_v43 = vsub.f32 %v19076_v18, %v7014_v47  ;;  %v17087_v18 = vld [vmem:[#allocation2 + $0x608] sm:$0xff]   ;;  %v17097_v19 = vld [vmem:[#allocation2 + $0x630] sm:$0xff]  }
0x1570   : > { %v7009_v32 = vsub.f32 %v7004_v62, %v7007_v50  ;;  %v17095_v62 = vld [vmem:[#allocation2 + $0x628] sm:$0xff]   ;;  %v17098_v50 = vld [vmem:[#allocation2 + $0x678] sm:$0xff]  }
0x1572   : > { %v7010_v4 = vmax.f32 %v7009_v32, 0.0  ;;  %v17099_v32 = vld [vmem:[#allocation2 + $0x638] sm:$0xff]  }
0x1574   : > { %v7016_v51 = vadd.f32 1e-05, %v7010_v4 }
0x1576   : > { %17269 = vrsqrt.f32 %v7016_v51 }
0x1580   : > { %v17270_v28 = vpop.eup %17269 }
0x1581   : > { %v7021_v2 = vrot.slane %v17270_v28, %v19995_v25 }
0x1583   : > { %v7022_v42 = vmul.f32 %v7021_v2, %v7015_v43  ;;  %v17100_v2 = vld [vmem:[#allocation2 + $0x680] sm:$0xff]  }
0x1585   : > { %v7023_v14 = vmax.f32 %v7022_v42, 0.0 }
0x1587   : > { %v7024_v7 = vpack.c.bf16 %v7023_v14, %v7023_v14  ;;  %v17101_v14 = vld [vmem:[#allocation2 + $0x688] sm:$0xff]  }
0x1589   : > { %16826 = vmatprep.subr.msk.bf16.mxu1 %vm3978_vm6, %v7024_v7  ;;  %v7043_v40 = vsel %vm3978_vm6, %v7024_v7, 0  ;;  %v17102_v7 = vld [vmem:[#allocation2 + $0x690] sm:$0xff]  }
0x158a   : > { %14655 = vmatpush3.bf16.msra.mxu1 %v7043_v40  ;;  %v17104_v40 = vld [vmem:[#allocation2 + $0x6a0] sm:$0xff]  }
0x158b   : > { %12718 = vmatprep.subr.bf16.mxu1 %v17084_v27  ;;  %v17103_v27 = vld [vmem:[#allocation2 + $0x698] sm:$0xff]  }
0x158d   : > { %14657 = vmatmul.mubr.msk.bf16.vlgmr.msra.gmra.mrb[40].mxu1 %vm3971_vm5, %v17083_v63  ;;  %v17105_v63 = vld [vmem:[#allocation2 + $0x6a8] sm:$0xff]  }
0x158e   : > { %12719 = vmatpush3.bf16.msra.mxu1 %v17085_v3  ;;  %v17106_v3 = vld [vmem:[#allocation2 + $0x6b0] sm:$0xff]  }
0x158f   : > { %12720 = vmatprep.subr.bf16.mxu1 %v17086_v22  ;;  %v17107_v22 = vld [vmem:[#allocation2 + $0x6b8] sm:$0xff]  }
0x1592   : > { %12721 = vmatpush3.bf16.msra.mxu1 %v17087_v18 }
0x1593   : > { %12722 = vmatprep.subr.bf16.mxu1 %v17088_v17 }
0x1596   : > { %12723 = vmatpush3.bf16.msra.mxu1 %v17089_v46 }
0x1597   : > { %12724 = vmatprep.subr.bf16.mxu1 %v17090_v0 }
0x159a   : > { %12725 = vmatpush3.bf16.msra.mxu1 %v17091_v1 }
0x159b   : > { %12726 = vmatprep.subr.bf16.mxu1 %v17092_v29 }
0x159e   : > { %12727 = vmatpush3.bf16.msra.mxu1 %v17093_v38 }
0x159f   : > { %12728 = vmatprep.subr.bf16.mxu1 %v17094_v34 }
0x15a2   : > { %12729 = vmatpush3.bf16.msra.mxu1 %v17095_v62 }
0x15a3   : > { %12730 = vmatprep.subr.bf16.mxu1 %v17096_v23 }
0x15a6   : > { %12731 = vmatpush3.bf16.msra.mxu1 %v17097_v19 }
0x15a7   : > { %12732 = vmatprep.subr.bf16.mxu1 %v17098_v50 }
0x15aa   : > { %12733 = vmatpush3.bf16.msra.mxu1 %v17099_v32 }
0x15ab   : > { %14660 = vmatprep.subr.bf16.mxu1 %v19950_v15 }
0x1660   : > { %v14658_v4 = vpop.f32.mrb[40].mxu1 }
0x1661   : > { %v7079_v51 = vpop.f32.mrb[41].mxu1  ;;  %v7143_v18 = vpack.c.bf16 %v14658_v4, %v14658_v4 }
0x1662   : > { %v14659_v47 = vpop.f32.mrb[42].mxu1  ;;  %v7141_v42 = vpack.c.bf16 %v7079_v51, %v7079_v51 }
0x1663   : > { %v7082_v28 = vpop.f32.mrb[43].mxu1 }
0x1664   : > { %v7142_v43 = vpack.c.bf16 %v7082_v28, %v7082_v28 }
0x1666   : > { %7320 = vmatprep.mubr.bf16.mxu1 %v7142_v43 }
0x1667   : > { %7321 = vmatmul.mubr.bf16.vlgmr.msra.gmra.mrb[44].mxu1 %v7141_v42 }
0x1668   : > { %14661 = vmatpush3.bf16.msra.mxu1 %v17100_v2  ;;  %14676 = vmatprep.mubr.msk.bf16.mxu1 %vm17389_vm0, %v19950_v15 }
0x1669   : > { %14662 = vmatprep.subr.bf16.mxu1 %v19950_v15 }
0x166c   : > { %14663 = vmatpush3.bf16.msra.mxu1 %v17101_v14 }
0x166d   : > { %14664 = vmatprep.subr.bf16.mxu1 %v19950_v15 }
0x1670   : > { %14665 = vmatpush3.bf16.msra.mxu1 %v17102_v7 }
0x1671   : > { %14666 = vmatprep.subr.bf16.mxu1 %v19950_v15 }
0x1674   : > { %14667 = vmatpush3.bf16.msra.mxu1 %v17103_v27 }
0x1675   : > { %14668 = vmatprep.subr.bf16.mxu1 %v19950_v15 }
0x1678   : > { %14669 = vmatpush3.bf16.msra.mxu1 %v17104_v40 }
0x1679   : > { %14670 = vmatprep.subr.bf16.mxu1 %v19950_v15 }
0x167c   : > { %14671 = vmatpush3.bf16.msra.mxu1 %v17105_v63 }
0x167d   : > { %14672 = vmatprep.subr.bf16.mxu1 %v19950_v15 }
0x1680   : > { %14673 = vmatpush3.bf16.msra.mxu1 %v17106_v3 }
0x1681   : > { %14674 = vmatprep.subr.bf16.mxu1 %v19950_v15 }
0x1684   : > { %14675 = vmatpush3.bf16.msra.mxu1 %v17107_v22 }
0x1685   : > { %16300 = vmatprep.subr.bf16.mxu1 %v19896_v31 }
0x1687   : > { %14677 = vmatmul.mubr.bf16.vlgmr.msra.gmra.mrb[48].mxu1 %v7143_v18 }
0x1688   : > { %16302 = vmatpush3.bf16.msra.mxu1 %v18368_v49  ;;  %14712 = vmatprep.mubr.msk.f32.mxu1 %vm17389_vm0, %v19950_v15 }
0x1689   : > { %16303 = vmatprep.subr.bf16.mxu1 %v19896_v31 }
0x168c   : > { %16305 = vmatpush3.bf16.msra.mxu1 %v18372_v26 }
0x168d   : > { %16306 = vmatprep.subr.bf16.mxu1 %v19896_v31 }
0x1690   : > { %16308 = vmatpush3.bf16.msra.mxu1 %v18376_v30 }
0x1691   : > { %16309 = vmatprep.subr.bf16.mxu1 %v19896_v31 }
0x1694   : > { %16311 = vmatpush3.bf16.msra.mxu1 %v18380_v11 }
0x1695   : > { %16312 = vmatprep.subr.bf16.mxu1 %v19896_v31 }
0x1698   : > { %16314 = vmatpush3.bf16.msra.mxu1 %v18384_v52 }
0x1699   : > { %16315 = vmatprep.subr.bf16.mxu1 %v19896_v31 }
0x169c   : > { %16317 = vmatpush3.bf16.msra.mxu1 %v18394_v35 }
0x169d   : > { %16318 = vmatprep.subr.bf16.mxu1 %v19896_v31 }
0x16a0   : > { %16320 = vmatpush3.bf16.msra.mxu1 %v18414_v13 }
0x16a1   : > { %16321 = vmatprep.subr.bf16.mxu1 %v19896_v31 }
0x16a4   : > { %16323 = vmatpush3.bf16.msra.mxu1 %v18425_v61 }
0x16a5   : > { %16324 = vmatprep.subr.bf16.mxu1 %v19896_v31 }
0x173a   : > { %v12734_v17 = vpop.f32.mrb[44].mxu1 }
0x173b   : > { %v12735_v46 = vpop.f32.mrb[45].mxu1 }
0x173c   : > { %v12736_v0 = vadd.f32 %v12735_v46, %v12734_v17  ;;  %v12737_v1 = vpop.f32.mrb[46].mxu1 }
0x173d   : > { %v12738_v29 = vpop.f32.mrb[47].mxu1 }
0x173e   : > { %v17125_v29 = vld [vmem:[#allocation2 + $0x738] sm:$0xff]  }
0x175a   : > { %v7362_v38 = vpop.f32.mrb[48].mxu1 }
0x175b   : > { %v19224_v34 = vadd.f32 %v12736_v0, %v7362_v38  ;;  %v14678_v62 = vpop.f32.mrb[49].mxu1  ;;  %v17126_v38 = vld [vmem:[#allocation2 + $0x6f8] sm:$0xff]  }
0x175c   : > { %v7365_v23 = vpop.f32.mrb[50].mxu1 }
0x175d   : > { %v7368_v19 = vsel %vm2872_vm4, %v19224_v34, 0.0  ;;  %v7375_v50 = vmul.f32 %v19224_v34, %v19224_v34  ;;  %v14679_v32 = vpop.f32.mrb[51].mxu1 }
0x175e   : > { %v7369_v4 = vrot.slane %v7368_v19, 4 }
0x175f   : > { %v7376_v51 = vsel %vm2872_vm4, %v7375_v50, 0.0 }
0x1760   : > { %v7370_v47 = vadd.f32 %v7369_v4, %v7368_v19  ;;  %v7377_v28 = vrot.slane %v7376_v51, 4  ;;  %v17128_v4 = vld [vmem:[#allocation2 + $0x740] sm:$0xff]  }
0x1762   : > { %v7371_v43 = vrot.slane %v7370_v47, 2  ;;  %v7378_v2 = vadd.f32 %v7377_v28, %v7376_v51  ;;  %v17130_v28 = vld [vmem:[#allocation2 + $0x748] sm:$0xff]  }
0x1764   : > { %v7372_v42 = vadd.f32 %v7371_v43, %v7370_v47  ;;  %v7379_v14 = vrot.slane %v7378_v2, 2  ;;  %v17129_v47 = vld [vmem:[#allocation2 + $0x788] sm:$0xff]   ;;  %v17131_v43 = vld [vmem:[#allocation2 + $0x790] sm:$0xff]  }
0x1766   : > { %v7373_v7 = vrot.slane %v7372_v42, 1  ;;  %v7380_v27 = vadd.f32 %v7379_v14, %v7378_v2 }
0x1768   : > { %v7381_v40 = vrot.slane %v7380_v27, 1  ;;  %v7374_v63 = vadd.f32 %v7373_v7, %v7372_v42  ;;  %v17132_v7 = vld [vmem:[#allocation2 + $0x750] sm:$0xff]  }
0x176a   : > { %v7382_v3 = vadd.f32 %v7381_v40, %v7380_v27 }
0x176c   : > { %v7383_v22 = vsel %vm1082_vm2, %v7374_v63, %v7382_v3  ;;  %v17133_v63 = vld [vmem:[#allocation2 + $0x798] sm:$0xff]  }
0x176d   : > { %v19232_v18 = vand.u32 4294901760, %v7383_v22  ;;  %v17134_v3 = vld [vmem:[#allocation2 + $0x758] sm:$0xff]  }
0x176f   : > { %v7466_v17 = vsub.f32 %v7383_v22, %v19232_v18  ;;  %v17135_v22 = vld [vmem:[#allocation2 + $0x7a0] sm:$0xff]  }
0x1771   : > { %v7467_v46 = vand.u32 4294901760, %v7466_v17 }
0x1773   : > { %v7468_v0 = vsub.f32 %v7466_v17, %v7467_v46 }
0x1775   : > { %v7469_v1 = vand.u32 4294901760, %v7468_v0  ;;  %v17136_v0 = vld [vmem:[#allocation2 + $0x760] sm:$0xff]  }
0x1777   : > { %14713 = vmatmul.mubr.f32.vlgmr.msra.gmra.mrb[38].mxu1 %v7469_v1 }
0x1778   : > { %16326 = vmatpush3.bf16.msra.mxu1 %v18444_v20  ;;  %14747 = vmatprep.mubr.msk.f32.mxu1 %vm17389_vm0, %v19950_v15 }
0x1779   : > { %16327 = vmatprep.subr.bf16.mxu1 %v19896_v31 }
0x177c   : > { %16329 = vmatpush3.bf16.msra.mxu1 %v18458_v45 }
0x177d   : > { %16330 = vmatprep.subr.bf16.mxu1 %v19896_v31 }
0x1780   : > { %16332 = vmatpush3.bf16.msra.mxu1 %v18472_v6 }
0x1781   : > { %16333 = vmatprep.subr.bf16.mxu1 %v19896_v31 }
0x1784   : > { %16335 = vmatpush3.bf16.msra.mxu1 %v18498_v10 }
0x1785   : > { %16336 = vmatprep.subr.bf16.mxu1 %v19896_v31 }
0x1788   : > { %16338 = vmatpush3.bf16.msra.mxu1 %v18502_v54 }
0x1789   : > { %16339 = vmatprep.subr.bf16.mxu1 %v19896_v31 }
0x178c   : > { %16341 = vmatpush3.bf16.msra.mxu1 %v18522_v21 }
0x178d   : > { %16342 = vmatprep.subr.bf16.mxu1 %v19896_v31 }
0x1790   : > { %16344 = vmatpush3.bf16.msra.mxu1 %v18548_v59 }
0x1791   : > { %16345 = vmatprep.subr.bf16.mxu1 %v19896_v31 }
0x1794   : > { %16347 = vmatpush3.bf16.msra.mxu1 %v18550_v5 }
0x1795   : > { %16348 = vmatprep.subr.bf16.mxu1 %v19896_v31 }
0x1797   : > { %14748 = vmatmul.mubr.f32.vlgmr.msra.gmra.mrb[38].mxu1 %v19232_v18 }
0x1798   : > { %16350 = vmatpush3.bf16.msra.mxu1 %v18554_v16  ;;  %14782 = vmatprep.mubr.msk.f32.mxu1 %vm17389_vm0, %v19950_v15  ;;  %v17108_v16 = vld [vmem:[%s19715_s1 + $0x88] sm:$0xff]  }
0x1799   : > { %16351 = vmatprep.subr.bf16.mxu1 %v19896_v31 }
0x179c   : > { %16353 = vmatpush3.bf16.msra.mxu1 %v18558_v44  ;;  %v17112_v44 = vld [vmem:[#allocation2 + $0x6c0] sm:$0xff]  }
0x179d   : > { %16354 = vmatprep.subr.bf16.mxu1 %v19896_v31 }
0x17a0   : > { %16356 = vmatpush3.bf16.msra.mxu1 %v18562_v24  ;;  %v17111_v24 = vld [vmem:[#allocation2 + $0x700] sm:$0xff]  }
0x17a1   : > { %16357 = vmatprep.subr.bf16.mxu1 %v19896_v31 }
0x17a4   : > { %16359 = vmatpush3.bf16.msra.mxu1 %v18566_v37  ;;  %v17113_v37 = vld [vmem:[#allocation2 + $0x708] sm:$0xff]  }
0x17a5   : > { %16360 = vmatprep.subr.bf16.mxu1 %v19896_v31 }
0x17a8   : > { %16362 = vmatpush3.bf16.msra.mxu1 %v18570_v12  ;;  %v17114_v12 = vld [vmem:[#allocation2 + $0x6c8] sm:$0xff]  }
0x17a9   : > { %16363 = vmatprep.subr.bf16.mxu1 %v19896_v31 }
0x17ac   : > { %16365 = vmatpush3.bf16.msra.mxu1 %v18574_v53  ;;  %v17115_v53 = vld [vmem:[#allocation2 + $0x710] sm:$0xff]  }
0x17ad   : > { %16366 = vmatprep.subr.bf16.mxu1 %v19896_v31 }
0x17b0   : > { %16368 = vmatpush3.bf16.msra.mxu1 %v18578_v55  ;;  %v17109_v55 = vld [vmem:[%s19715_s1 + $0x90] sm:$0xff]  }
0x17b1   : > { %16369 = vmatprep.subr.bf16.mxu1 %v19896_v31 }
0x17b4   : > { %16371 = vmatpush3.bf16.msra.mxu1 %v18582_v33  ;;  %v17116_v33 = vld [vmem:[#allocation2 + $0x6d0] sm:$0xff]  }
0x17b5   : > { %16372 = vmatprep.subr.bf16.mxu1 %v19896_v31 }
0x17b7   : > { %14783 = vmatmul.mubr.f32.vlgmr.msra.gmra.mrb[38].mxu1 %v7466_v17 }
0x17b8   : > { %16374 = vmatpush3.bf16.msra.mxu1 %v18368_v49  ;;  %14817 = vmatprep.mubr.msk.f32.mxu1 %vm17389_vm0, %v19950_v15 }
0x17b9   : > { %16375 = vmatprep.subr.bf16.mxu1 %v19896_v31 }
0x17bc   : > { %16377 = vmatpush3.bf16.msra.mxu1 %v18372_v26 }
0x17bd   : > { %16378 = vmatprep.subr.bf16.mxu1 %v19896_v31 }
0x17c0   : > { %16380 = vmatpush3.bf16.msra.mxu1 %v18376_v30 }
0x17c1   : > { %16381 = vmatprep.subr.bf16.mxu1 %v19896_v31 }
0x17c4   : > { %16383 = vmatpush3.bf16.msra.mxu1 %v18380_v11 }
0x17c5   : > { %16384 = vmatprep.subr.bf16.mxu1 %v19896_v31 }
0x17c8   : > { %16386 = vmatpush3.bf16.msra.mxu1 %v18384_v52 }
0x17c9   : > { %16387 = vmatprep.subr.bf16.mxu1 %v19896_v31 }
0x17cc   : > { %16389 = vmatpush3.bf16.msra.mxu1 %v18394_v35 }
0x17cd   : > { %16390 = vmatprep.subr.bf16.mxu1 %v19896_v31 }
0x17d0   : > { %16392 = vmatpush3.bf16.msra.mxu1 %v18414_v13 }
0x17d1   : > { %16393 = vmatprep.subr.bf16.mxu1 %v19896_v31 }
0x17d4   : > { %16395 = vmatpush3.bf16.msra.mxu1 %v18425_v61 }
0x17d5   : > { %16396 = vmatprep.subr.bf16.mxu1 %v19896_v31 }
0x17d7   : > { %14818 = vmatmul.mubr.f32.vlgmr.msra.gmra.mrb[38].mxu1 %v7467_v46 }
0x17d8   : > { %16398 = vmatpush3.bf16.msra.mxu1 %v18653_v56  ;;  %14852 = vmatprep.mubr.msk.f32.mxu1 %vm17389_vm0, %v19950_v15  ;;  %v17117_v56 = vld [vmem:[#allocation2 + $0x718] sm:$0xff]  }
0x17d9   : > { %16399 = vmatprep.subr.bf16.mxu1 %v19896_v31 }
0x17dc   : > { %16401 = vmatpush3.bf16.msra.mxu1 %v18661_v39  ;;  %v17118_v39 = vld [vmem:[#allocation2 + $0x6d8] sm:$0xff]  }
0x17dd   : > { %16402 = vmatprep.subr.bf16.mxu1 %v19896_v31 }
0x17e0   : > { %16404 = vmatpush3.bf16.msra.mxu1 %v18671_v41  ;;  %v17119_v41 = vld [vmem:[#allocation2 + $0x720] sm:$0xff]  }
0x17e1   : > { %16405 = vmatprep.subr.bf16.mxu1 %v19896_v31 }
0x17e4   : > { %16407 = vmatpush3.bf16.msra.mxu1 %v18679_v60  ;;  %v17110_v60 = vld [vmem:[%s19715_s1 + $0x98] ss:$0 sps:$4 sm:$0xff]  }
0x17e5   : > { %16408 = vmatprep.subr.bf16.mxu1 %v19896_v31 }
0x17e8   : > { %16410 = vmatpush3.bf16.msra.mxu1 %v18687_v36  ;;  %v17120_v36 = vld [vmem:[#allocation2 + $0x6e0] sm:$0xff]  }
0x17e9   : > { %16411 = vmatprep.subr.bf16.mxu1 %v19896_v31 }
0x17ec   : > { %16413 = vmatpush3.bf16.msra.mxu1 %v18695_v9  ;;  %v17121_v9 = vld [vmem:[#allocation2 + $0x728] sm:$0xff]  }
0x17ed   : > { %16414 = vmatprep.subr.bf16.mxu1 %v19896_v31 }
0x17f0   : > { %16416 = vmatpush3.bf16.msra.mxu1 %v18703_v8  ;;  %v17122_v8 = vld [vmem:[#allocation2 + $0x6e8] sm:$0xff]  }
0x17f1   : > { %16417 = vmatprep.subr.bf16.mxu1 %v19896_v31 }
0x17f4   : > { %16419 = vmatpush3.bf16.msra.mxu1 %v18711_v48  ;;  %v17123_v48 = vld [vmem:[#allocation2 + $0x730] sm:$0xff]  }
0x17f5   : > { %16420 = vmatprep.subr.bf16.mxu1 %v19896_v31 }
0x17f7   : > { %14853 = vmatmul.mubr.f32.vlgmr.msra.gmra.mrb[38].mxu1 %v19232_v18 }
0x17f8   : > { %16422 = vmatpush3.bf16.msra.mxu1 %v18368_v49  ;;  %14887 = vmatprep.mubr.msk.f32.mxu1 %vm17389_vm0, %v19950_v15 }
0x17f9   : > { %16423 = vmatprep.subr.bf16.mxu1 %v19896_v31 }
0x17fc   : > { %16425 = vmatpush3.bf16.msra.mxu1 %v18372_v26 }
0x17fd   : > { %16426 = vmatprep.subr.bf16.mxu1 %v19896_v31 }
0x1800   : > { %16428 = vmatpush3.bf16.msra.mxu1 %v18376_v30 }
0x1801   : > { %16429 = vmatprep.subr.bf16.mxu1 %v19896_v31 }
0x1804   : > { %16431 = vmatpush3.bf16.msra.mxu1 %v18380_v11 }
0x1805   : > { %16432 = vmatprep.subr.bf16.mxu1 %v19896_v31 }
0x1808   : > { %16434 = vmatpush3.bf16.msra.mxu1 %v18384_v52 }
0x1809   : > { %16435 = vmatprep.subr.bf16.mxu1 %v19896_v31 }
0x180c   : > { %16437 = vmatpush3.bf16.msra.mxu1 %v18394_v35 }
0x180d   : > { %16438 = vmatprep.subr.bf16.mxu1 %v19896_v31 }
0x1810   : > { %16440 = vmatpush3.bf16.msra.mxu1 %v18414_v13 }
0x1811   : > { %16441 = vmatprep.subr.bf16.mxu1 %v19896_v31 }
0x1814   : > { %16443 = vmatpush3.bf16.msra.mxu1 %v18425_v61 }
0x1815   : > { %15134 = vmatprep.subr.bf16.mxu1 %v19950_v15 }
0x1817   : > { %14888 = vmatmul.mubr.f32.vlgmr.msra.gmra.mrb[38].mxu1 %v19232_v18 }
0x1818   : > { %15136 = vmatprep.mubr.msk.bf16.mxu1 %vm17389_vm0, %v19950_v15 }
0x18ea   : > { %v8021_v20 = vpop.f32.mrb[38].mxu1 }
0x18eb   : > { %v8025_v49 = vmul.f32 0.0625, %v8021_v20  ;;  %v14889_v26 = vpop.f32.mrb[39].mxu1  ;;  %v17137_v20 = vld [vmem:[#allocation2 + $0x7a8] sm:$0xff]  }
0x18ec   : > { %v17139_v26 = vld [vmem:[#allocation2 + $0x7b0] sm:$0xff]  }
0x18ed   : > { %v8026_v30 = vmul.f32 %v8025_v49, %v8025_v49  ;;  %v8035_v13 = vrot.slane %v8025_v49, %v17971_v57 }
0x18ef   : > { %v8028_v35 = vrot.slane %v8026_v30, 7  ;;  %v8036_v61 = vsub.f32 %v19224_v34, %v8035_v13  ;;  %v17127_v34 = vld [vmem:[#allocation2 + $0x780] sm:$0xff]   ;;  %v17140_v30 = vld [vmem:[#allocation2 + $0x770] sm:$0xff]   ;;  %v17144_v13 = vld [vmem:[#allocation2 + $0x7c8] sm:$0xff]  }
0x18f1   : > { %v8030_v11 = vsub.f32 %v8025_v49, %v8028_v35  ;;  %v17138_v49 = vld [vmem:[#allocation2 + $0x768] sm:$0xff]   ;;  %v17141_v35 = vld [vmem:[#allocation2 + $0x7b8] sm:$0xff]  }
0x18f3   : > { %v8031_v52 = vmax.f32 %v8030_v11, 0.0  ;;  %v17142_v11 = vld [vmem:[#allocation2 + $0x778] sm:$0xff]  }
0x18f5   : > { %v8037_v45 = vadd.f32 1e-05, %v8031_v52  ;;  %v17143_v52 = vld [vmem:[#allocation2 + $0x7c0] sm:$0xff]  }
0x18f7   : > { %17271 = vrsqrt.f32 %v8037_v45 }
0x1901   : > { %v17272_v54 = vpop.eup %17271 }
0x1902   : > { %v8042_v6 = vrot.slane %v17272_v54, %v19995_v25  ;;  %v17145_v54 = vld [vmem:[#allocation2 + $0x7d0] sm:$0xff]  }
0x1904   : > { %v8043_v5 = vmul.f32 %v8042_v6, %v8036_v61  ;;  %v17146_v61 = vld [vmem:[#allocation2 + $0x7d8] sm:$0xff]   ;;  %v17147_v6 = vld [vmem:[#allocation2 + $0x7e0] sm:$0xff]  }
0x1906   : > { %v8044_v10 = vadd.f32 %v8043_v5, %v19037_v58  ;;  %v17124_v58 = vld [vmem:[#allocation2 + $0x6f0] sm:$0xff]   ;;  %v17148_v5 = vld [vmem:[#allocation2 + $0x7e8] sm:$0xff]  }
0x1908   : > { %v8045_v21 = vpack.c.bf16 %v8044_v10, %v8044_v10  ;;  %v17149_v10 = vld [vmem:[#allocation2 + $0x7f0] sm:$0xff]  }
0x190a   : > { %v8074_v59 = vsel %vm3978_vm6, %v8045_v21, 0  ;;  %v17150_v21 = vld [vmem:[#allocation2 + $0x7f8] sm:$0xff]  }
0x190b   : > { %14891 = vmatpush3.bf16.msra.mxu0 %v8074_v59  ;;  %v19996_v59 = vld [vmem:[#allocation42_spill] sm:$0xff] }
0x190c   : > { %12855 = vmatprep.subr.bf16.mxu0 %v17111_v24 }
0x190e   : > { %14893 = vmatmul.mubr.msk.bf16.vlgmr.msra.gmra.mrb[80].mxu0 %vm3971_vm5, %v17108_v16  ;;  %v19997_v16 = vld [vmem:[#allocation43_spill] sm:$0xff] }
0x190f   : > { %14896 = vmatprep.mubr.msk.bf16.mxu0 %vm17389_vm0, %v19950_v15  ;;  %12856 = vmatpush3.bf16.msra.mxu0 %v17112_v44  ;;  %v19998_v44 = vld [vmem:[#allocation44_spill] sm:$0xff] }
0x1910   : > { %12857 = vmatprep.subr.bf16.mxu0 %v17113_v37  ;;  %v19999_v37 = vld [vmem:[#allocation45_spill] sm:$0xff] }
0x1913   : > { %12858 = vmatpush3.bf16.msra.mxu0 %v17114_v12  ;;  %v20000_v12 = vld [vmem:[#allocation46_spill] sm:$0xff] }
0x1914   : > { %12859 = vmatprep.subr.bf16.mxu0 %v17115_v53  ;;  %v20001_v53 = vld [vmem:[#allocation47_spill] sm:$0xff] }
0x1916   : > { %14897 = vmatmul.mubr.msk.bf16.gmra.mrb[84].mxu0 %vm3971_vm5, %v17109_v55  ;;  %v20002_v55 = vld [vmem:[#allocation48_spill] sm:$0xff] }
0x1917   : > { %14900 = vmatprep.mubr.msk.bf16.mxu0 %vm17389_vm0, %v19950_v15  ;;  %12860 = vmatpush3.bf16.msra.mxu0 %v17116_v33  ;;  %v20003_v33 = vld [vmem:[#allocation49_spill] sm:$0xff] }
0x1918   : > { %12861 = vmatprep.subr.bf16.mxu0 %v17117_v56 }
0x191b   : > { %12862 = vmatpush3.bf16.msra.mxu0 %v17118_v39 }
0x191c   : > { %12863 = vmatprep.subr.bf16.mxu0 %v17119_v41 }
0x191e   : > { %14901 = vmatmul.mubr.msk.bf16.gmra.mrb[88].mxu0 %vm3971_vm5, %v17110_v60 }
0x191f   : > { %12864 = vmatpush3.bf16.msra.mxu0 %v17120_v36 }
0x1920   : > { %12865 = vmatprep.subr.bf16.mxu0 %v17121_v9 }
0x1923   : > { %12866 = vmatpush3.bf16.msra.mxu0 %v17122_v8 }
0x1924   : > { %12867 = vmatprep.subr.bf16.mxu0 %v17123_v48 }
0x1927   : > { %12868 = vmatpush3.bf16.msra.mxu0 %v17124_v58 }
0x1928   : > { %12869 = vmatprep.subr.bf16.mxu0 %v17125_v29 }
0x192b   : > { %12870 = vmatpush3.bf16.msra.mxu0 %v17126_v38 }
0x192c   : > { %12877 = vmatprep.subr.bf16.mxu0 %v17127_v34 }
0x19e1   : > { %v8110_v62 = vpop.f32.mrb[80].mxu0 }
0x19e2   : > { %v14894_v23 = vpop.f32.mrb[81].mxu0  ;;  %v8212_v51 = vpack.c.bf16 %v8110_v62, %v8110_v62 }
0x19e3   : > { %v8113_v19 = vpop.f32.mrb[82].mxu0 }
0x19e4   : > { %v8213_v50 = vpack.c.bf16 %v8113_v19, %v8113_v19  ;;  %v14895_v32 = vpop.f32.mrb[83].mxu0 }
0x19e6   : > { %8489 = vmatprep.mubr.bf16.mxu0 %v8213_v50 }
0x19e7   : > { %8490 = vmatmul.mubr.bf16.vlgmr.msra.gmra.mrb[92].mxu0 %v8212_v51 }
0x19e8   : > { %12878 = vmatpush3.bf16.msra.mxu0 %v17128_v4 }
0x19e9   : > { %12879 = vmatprep.subr.bf16.mxu0 %v17129_v47  ;;  %v8118_v2 = vpop.f32.mrb[84].mxu0 }
0x19ea   : > { %v14898_v42 = vpop.f32.mrb[85].mxu0  ;;  %v8214_v45 = vpack.c.bf16 %v8118_v2, %v8118_v2 }
0x19eb   : > { %v8121_v14 = vpop.f32.mrb[86].mxu0 }
0x19ec   : > { %12880 = vmatpush3.bf16.msra.mxu0 %v17130_v28  ;;  %v8215_v27 = vpack.c.bf16 %v8121_v14, %v8121_v14  ;;  %v14899_v40 = vpop.f32.mrb[87].mxu0 }
0x19ed   : > { %12881 = vmatprep.subr.bf16.mxu0 %v17131_v43 }
0x19ee   : > { %8529 = vmatprep.mubr.bf16.mxu0 %v8215_v27 }
0x19f0   : > { %12882 = vmatpush3.bf16.msra.mxu0 %v17132_v7 }
0x19f1   : > { %12883 = vmatprep.subr.bf16.mxu0 %v17133_v63  ;;  %v8126_v18 = vpop.f32.mrb[88].mxu0 }
0x19f2   : > { %v14902_v17 = vpop.f32.mrb[89].mxu0  ;;  %v8216_v24 = vpack.c.bf16 %v8126_v18, %v8126_v18 }
0x19f3   : > { %v8129_v46 = vpop.f32.mrb[90].mxu0 }
0x19f4   : > { %12884 = vmatpush3.bf16.msra.mxu0 %v17134_v3  ;;  %v14903_v1 = vpop.f32.mrb[91].mxu0 }
0x19f5   : > { %12885 = vmatprep.subr.bf16.mxu0 %v17135_v22  ;;  %v20004_v1 = vld [vmem:[#allocation50_spill] sm:$0xff] }
0x19f8   : > { %12886 = vmatpush3.bf16.msra.mxu0 %v17136_v0 }
0x19f9   : > { %12887 = vmatprep.subr.bf16.mxu0 %v17137_v20  ;;  %v20005_v20 = vld [vmem:[#allocation51_spill] sm:$0xff] }
0x19fc   : > { %12888 = vmatpush3.bf16.msra.mxu0 %v17138_v49  ;;  %v20006_v49 = vld [vmem:[#allocation52_spill] sm:$0xff] }
0x19fd   : > { %12889 = vmatprep.subr.bf16.mxu0 %v17139_v26  ;;  %v20007_v26 = vld [vmem:[#allocation53_spill] sm:$0xff] }
0x1a00   : > { %12890 = vmatpush3.bf16.msra.mxu0 %v17140_v30  ;;  %v20008_v30 = vld [vmem:[#allocation54_spill] sm:$0xff] }
0x1a01   : > { %12891 = vmatprep.subr.bf16.mxu0 %v17141_v35  ;;  %v20009_v35 = vld [vmem:[#allocation55_spill] sm:$0xff] }
0x1a04   : > { %12892 = vmatpush3.bf16.msra.mxu0 %v17142_v11  ;;  %v20010_v11 = vld [vmem:[#allocation56_spill] sm:$0xff] }
0x1a05   : > { %14904 = vmatprep.subr.bf16.mxu0 %v19950_v15 }
0x1a07   : > { %8530 = vmatmul.mubr.bf16.vlgmr.msra.gmra.mrb[96].mxu0 %v8214_v45  ;;  %v20012_v45 = vld [vmem:[#allocation58_spill] sm:$0xff] }
0x1a08   : > { %14905 = vmatpush3.bf16.msra.mxu0 %v17143_v52  ;;  %14920 = vmatprep.mubr.msk.bf16.mxu0 %vm17389_vm0, %v19950_v15  ;;  %v20011_v52 = vld [vmem:[#allocation57_spill] sm:$0xff] }
0x1a09   : > { %14906 = vmatprep.subr.bf16.mxu0 %v19950_v15 }
0x1a0c   : > { %14907 = vmatpush3.bf16.msra.mxu0 %v17144_v13  ;;  %v20013_v13 = vld [vmem:[#allocation59_spill] sm:$0xff] }
0x1a0d   : > { %14908 = vmatprep.subr.bf16.mxu0 %v19950_v15 }
0x1a10   : > { %14909 = vmatpush3.bf16.msra.mxu0 %v17145_v54  ;;  %v20014_v54 = vld [vmem:[#allocation60_spill] sm:$0xff] }
0x1a11   : > { %14910 = vmatprep.subr.bf16.mxu0 %v19950_v15 }
0x1a14   : > { %14911 = vmatpush3.bf16.msra.mxu0 %v17146_v61  ;;  %v20015_v61 = vld [vmem:[#allocation61_spill] sm:$0xff] }
0x1a15   : > { %14912 = vmatprep.subr.bf16.mxu0 %v19950_v15 }
0x1a18   : > { %14913 = vmatpush3.bf16.msra.mxu0 %v17147_v6  ;;  %v20016_v6 = vld [vmem:[#allocation62_spill] sm:$0xff] }
0x1a19   : > { %14914 = vmatprep.subr.bf16.mxu0 %v19950_v15 }
0x1a1c   : > { %14915 = vmatpush3.bf16.msra.mxu0 %v17148_v5  ;;  %v20017_v5 = vld [vmem:[#allocation63_spill] sm:$0xff] }
0x1a1d   : > { %14916 = vmatprep.subr.bf16.mxu0 %v19950_v15 }
0x1a20   : > { %14917 = vmatpush3.bf16.msra.mxu0 %v17149_v10  ;;  %v20018_v10 = vld [vmem:[#allocation64_spill] sm:$0xff] }
0x1a21   : > { %14918 = vmatprep.subr.bf16.mxu0 %v19950_v15 }
0x1a24   : > { %14919 = vmatpush3.bf16.msra.mxu0 %v17150_v21  ;;  %v20019_v21 = vld [vmem:[#allocation65_spill] sm:$0xff] }
0x1a25   : > { %16444 = vmatprep.subr.bf16.mxu0 %v19896_v31 }
0x1a27   : > { %14921 = vmatmul.mubr.bf16.vlgmr.msra.gmra.mrb[100].mxu0 %v8216_v24  ;;  %v20020_v24 = vld [vmem:[#allocation66_spill] sm:$0xff] }
0x1a28   : > { %16446 = vmatpush3.bf16.msra.mxu0 %v19996_v59  ;;  %14956 = vmatprep.mubr.msk.f32.mxu0 %vm17389_vm0, %v19950_v15 }
0x1a29   : > { %16447 = vmatprep.subr.bf16.mxu0 %v19896_v31 }
0x1a2c   : > { %16449 = vmatpush3.bf16.msra.mxu0 %v19997_v16 }
0x1a2d   : > { %16450 = vmatprep.subr.bf16.mxu0 %v19896_v31 }
0x1a30   : > { %16452 = vmatpush3.bf16.msra.mxu0 %v19998_v44 }
0x1a31   : > { %16453 = vmatprep.subr.bf16.mxu0 %v19896_v31 }
0x1a34   : > { %16455 = vmatpush3.bf16.msra.mxu0 %v19999_v37 }
0x1a35   : > { %16456 = vmatprep.subr.bf16.mxu0 %v19896_v31 }
0x1a38   : > { %16458 = vmatpush3.bf16.msra.mxu0 %v20000_v12 }
0x1a39   : > { %16459 = vmatprep.subr.bf16.mxu0 %v19896_v31 }
0x1a3c   : > { %16461 = vmatpush3.bf16.msra.mxu0 %v20001_v53 }
0x1a3d   : > { %16462 = vmatprep.subr.bf16.mxu0 %v19896_v31 }
0x1a40   : > { %16464 = vmatpush3.bf16.msra.mxu0 %v20002_v55 }
0x1a41   : > { %16465 = vmatprep.subr.bf16.mxu0 %v19896_v31 }
0x1a44   : > { %16467 = vmatpush3.bf16.msra.mxu0 %v20003_v33 }
0x1a45   : > { %16468 = vmatprep.subr.bf16.mxu0 %v19896_v31 }
0x1aba   : > { %v12871_v56 = vpop.f32.mrb[92].mxu0 }
0x1abb   : > { %v12872_v39 = vpop.f32.mrb[93].mxu0 }
0x1abc   : > { %v12873_v41 = vadd.f32 %v12872_v39, %v12871_v56  ;;  %v12874_v60 = vpop.f32.mrb[94].mxu0  ;;  %v20021_v56 = vld [vmem:[#allocation67_spill] sm:$0xff]  ;;  %v20022_v39 = vld [vmem:[#allocation68_spill] sm:$0xff] }
0x1abd   : > { %v12875_v36 = vpop.f32.mrb[95].mxu0  ;;  %v20024_v60 = vld [vmem:[#allocation70_spill] sm:$0xff] }
0x1abe   : > { %v20025_v36 = vld [vmem:[#allocation71_spill] sm:$0xff] }
0x1ada   : > { %v12893_v9 = vpop.f32.mrb[96].mxu0 }
0x1adb   : > { %v12894_v8 = vpop.f32.mrb[97].mxu0 }
0x1adc   : > { %v12895_v48 = vadd.f32 %v12894_v8, %v12893_v9  ;;  %v12896_v58 = vpop.f32.mrb[98].mxu0  ;;  %v20026_v9 = vld [vmem:[#allocation72_spill] sm:$0xff]  ;;  %v20027_v8 = vld [vmem:[#allocation73_spill] sm:$0xff] }
0x1add   : > { %v12897_v29 = vpop.f32.mrb[99].mxu0 }
0x1ade   : > { %v8532_v38 = vadd.f32 %v12895_v48, %v12873_v41  ;;  %v20023_v41 = vld [vmem:[#allocation69_spill] sm:$0xff] }
0x1afa   : > { %v8571_v34 = vpop.f32.mrb[100].mxu0 }
0x1afb   : > { %v19380_v62 = vadd.f32 %v8571_v34, %v8532_v38  ;;  %v14922_v23 = vpop.f32.mrb[101].mxu0 }
0x1afc   : > { %v8574_v19 = vpop.f32.mrb[102].mxu0 }
0x1afd   : > { %v8577_v50 = vrot.slane %v19380_v62, 4  ;;  %v8583_v32 = vmul.f32 %v19380_v62, %v19380_v62  ;;  %v14923_v4 = vpop.f32.mrb[103].mxu0 }
0x1afe   : > { %v17151_v4 = vld [vmem:[%s19715_s1 + $0x9c] sm:$0xff]  }
0x1aff   : > { %v8578_v51 = vadd.f32 %v8577_v50, %v19380_v62  ;;  %v8584_v47 = vrot.slane %v8583_v32, 4  ;;  %v17156_v50 = vld [vmem:[#allocation2 + $0x840] sm:$0xff]  }
0x1b01   : > { %v8579_v28 = vrot.slane %v8578_v51, 2  ;;  %v8585_v43 = vadd.f32 %v8584_v47, %v8583_v32  ;;  %v17158_v47 = vld [vmem:[#allocation2 + $0x848] sm:$0xff]  }
0x1b03   : > { %v8580_v2 = vadd.f32 %v8579_v28, %v8578_v51  ;;  %v8586_v42 = vrot.slane %v8585_v43, 2  ;;  %v17157_v51 = vld [vmem:[#allocation2 + $0x800] sm:$0xff]   ;;  %v17160_v28 = vld [vmem:[#allocation2 + $0x850] sm:$0xff]  }
0x1b05   : > { %v8581_v14 = vrot.slane %v8580_v2, 1  ;;  %v8587_v7 = vadd.f32 %v8586_v42, %v8585_v43  ;;  %v17152_v43 = vld [vmem:[%s19715_s1 + $0xa4] sm:$0xff]   ;;  %v17162_v42 = vld [vmem:[#allocation2 + $0x858] sm:$0xff]  }
0x1b07   : > { %v8588_v27 = vrot.slane %v8587_v7, 1  ;;  %v8582_v40 = vadd.f32 %v8581_v14, %v8580_v2  ;;  %v17161_v2 = vld [vmem:[#allocation2 + $0x810] sm:$0xff]   ;;  %v17163_v14 = vld [vmem:[#allocation2 + $0x818] sm:$0xff]  }
0x1b09   : > { %v8589_v63 = vadd.f32 %v8588_v27, %v8587_v7  ;;  %v17164_v7 = vld [vmem:[#allocation2 + $0x860] sm:$0xff]   ;;  %v17153_v27 = vld [vmem:[%s19715_s1 + $0xac] sm:$0xff]  }
0x1b0b   : > { %v8590_v3 = vsel %vm1082_vm2, %v8582_v40, %v8589_v63  ;;  %v17165_v40 = vld [vmem:[#allocation2 + $0x820] sm:$0xff]   ;;  %v17154_v63 = vld [vmem:[%s19715_s1 + $0xb4] sm:$0xff]  }
0x1b0c   : > { %v19387_v22 = vand.u32 4294901760, %v8590_v3 }
0x1b0e   : > { %v8673_v18 = vsub.f32 %v8590_v3, %v19387_v22  ;;  %v17155_v3 = vld [vmem:[%s19715_s1 + $0xbc] sm:$0xff]  }
0x1b10   : > { %v8674_v17 = vand.u32 4294901760, %v8673_v18 }
0x1b12   : > { %v8675_v46 = vsub.f32 %v8673_v18, %v8674_v17 }
0x1b14   : > { %v8676_v0 = vand.u32 4294901760, %v8675_v46  ;;  %v17169_v46 = vld [vmem:[#allocation2 + $0x830] sm:$0xff]  }
0x1b16   : > { %14957 = vmatmul.mubr.f32.vlgmr.msra.gmra.mrb[78].mxu0 %v8676_v0  ;;  %v17170_v0 = vld [vmem:[#allocation2 + $0x878] sm:$0xff]  }
0x1b17   : > { %16470 = vmatpush3.bf16.msra.mxu0 %v20004_v1  ;;  %14991 = vmatprep.mubr.msk.f32.mxu0 %vm17389_vm0, %v19950_v15  ;;  %v17171_v1 = vld [vmem:[#allocation2 + $0x838] sm:$0xff]  }
0x1b18   : > { %16471 = vmatprep.subr.bf16.mxu0 %v19896_v31 }
0x1b1b   : > { %16473 = vmatpush3.bf16.msra.mxu0 %v20005_v20  ;;  %v17172_v20 = vld [vmem:[#allocation2 + $0x8c0] sm:$0xff]  }
0x1b1c   : > { %16474 = vmatprep.subr.bf16.mxu0 %v19896_v31 }
0x1b1f   : > { %16476 = vmatpush3.bf16.msra.mxu0 %v20006_v49 }
0x1b20   : > { %16477 = vmatprep.subr.bf16.mxu0 %v19896_v31 }
0x1b23   : > { %16479 = vmatpush3.bf16.msra.mxu0 %v20007_v26 }
0x1b24   : > { %16480 = vmatprep.subr.bf16.mxu0 %v19896_v31 }
0x1b27   : > { %16482 = vmatpush3.bf16.msra.mxu0 %v20008_v30 }
0x1b28   : > { %16483 = vmatprep.subr.bf16.mxu0 %v19896_v31 }
0x1b2b   : > { %16485 = vmatpush3.bf16.msra.mxu0 %v20009_v35 }
0x1b2c   : > { %16486 = vmatprep.subr.bf16.mxu0 %v19896_v31 }
0x1b2f   : > { %16488 = vmatpush3.bf16.msra.mxu0 %v20010_v11 }
0x1b30   : > { %16489 = vmatprep.subr.bf16.mxu0 %v19896_v31 }
0x1b33   : > { %16491 = vmatpush3.bf16.msra.mxu0 %v20011_v52 }
0x1b34   : > { %16492 = vmatprep.subr.bf16.mxu0 %v19896_v31 }
0x1b36   : > { %14992 = vmatmul.mubr.f32.vlgmr.msra.gmra.mrb[78].mxu0 %v19387_v22 }
0x1b37   : > { %16494 = vmatpush3.bf16.msra.mxu0 %v20012_v45  ;;  %15026 = vmatprep.mubr.msk.f32.mxu0 %vm17389_vm0, %v19950_v15 }
0x1b38   : > { %16495 = vmatprep.subr.bf16.mxu0 %v19896_v31 }
0x1b3b   : > { %16497 = vmatpush3.bf16.msra.mxu0 %v20013_v13 }
0x1b3c   : > { %16498 = vmatprep.subr.bf16.mxu0 %v19896_v31 }
0x1b3f   : > { %16500 = vmatpush3.bf16.msra.mxu0 %v20014_v54 }
0x1b40   : > { %16501 = vmatprep.subr.bf16.mxu0 %v19896_v31 }
0x1b43   : > { %16503 = vmatpush3.bf16.msra.mxu0 %v20015_v61 }
0x1b44   : > { %16504 = vmatprep.subr.bf16.mxu0 %v19896_v31 }
0x1b47   : > { %16506 = vmatpush3.bf16.msra.mxu0 %v20016_v6  ;;  %v17173_v6 = vld [vmem:[#allocation2 + $0x880] sm:$0xff]  }
0x1b48   : > { %16507 = vmatprep.subr.bf16.mxu0 %v19896_v31 }
0x1b4b   : > { %16509 = vmatpush3.bf16.msra.mxu0 %v20017_v5  ;;  %v17174_v5 = vld [vmem:[#allocation2 + $0x8c8] sm:$0xff]  }
0x1b4c   : > { %16510 = vmatprep.subr.bf16.mxu0 %v19896_v31 }
0x1b4f   : > { %16512 = vmatpush3.bf16.msra.mxu0 %v20018_v10  ;;  %v17175_v10 = vld [vmem:[#allocation2 + $0x888] sm:$0xff]  }
0x1b50   : > { %16513 = vmatprep.subr.bf16.mxu0 %v19896_v31 }
0x1b53   : > { %16515 = vmatpush3.bf16.msra.mxu0 %v20019_v21  ;;  %v17176_v21 = vld [vmem:[#allocation2 + $0x8d0] sm:$0xff]  }
0x1b54   : > { %16516 = vmatprep.subr.bf16.mxu0 %v19896_v31 }
0x1b56   : > { %15027 = vmatmul.mubr.f32.vlgmr.msra.gmra.mrb[78].mxu0 %v8673_v18  ;;  %v17167_v18 = vld [vmem:[#allocation2 + $0x828] sm:$0xff]  }
0x1b57   : > { %16518 = vmatpush3.bf16.msra.mxu0 %v19996_v59  ;;  %15061 = vmatprep.mubr.msk.f32.mxu0 %vm17389_vm0, %v19950_v15 }
0x1b58   : > { %16519 = vmatprep.subr.bf16.mxu0 %v19896_v31 }
0x1b5b   : > { %16521 = vmatpush3.bf16.msra.mxu0 %v19997_v16 }
0x1b5c   : > { %16522 = vmatprep.subr.bf16.mxu0 %v19896_v31 }
0x1b5f   : > { %16524 = vmatpush3.bf16.msra.mxu0 %v19998_v44 }
0x1b60   : > { %16525 = vmatprep.subr.bf16.mxu0 %v19896_v31 }
0x1b63   : > { %16527 = vmatpush3.bf16.msra.mxu0 %v19999_v37 }
0x1b64   : > { %16528 = vmatprep.subr.bf16.mxu0 %v19896_v31 }
0x1b67   : > { %16530 = vmatpush3.bf16.msra.mxu0 %v20000_v12 }
0x1b68   : > { %16531 = vmatprep.subr.bf16.mxu0 %v19896_v31 }
0x1b6b   : > { %16533 = vmatpush3.bf16.msra.mxu0 %v20001_v53 }
0x1b6c   : > { %16534 = vmatprep.subr.bf16.mxu0 %v19896_v31 }
0x1b6f   : > { %16536 = vmatpush3.bf16.msra.mxu0 %v20002_v55 }
0x1b70   : > { %16537 = vmatprep.subr.bf16.mxu0 %v19896_v31 }
0x1b73   : > { %16539 = vmatpush3.bf16.msra.mxu0 %v20003_v33 }
0x1b74   : > { %16540 = vmatprep.subr.bf16.mxu0 %v19896_v31 }
0x1b76   : > { %15062 = vmatmul.mubr.f32.vlgmr.msra.gmra.mrb[78].mxu0 %v8674_v17  ;;  %v17168_v17 = vld [vmem:[#allocation2 + $0x870] sm:$0xff]  }
0x1b77   : > { %16542 = vmatpush3.bf16.msra.mxu0 %v20020_v24  ;;  %15096 = vmatprep.mubr.msk.f32.mxu0 %vm17389_vm0, %v19950_v15 }
0x1b78   : > { %16543 = vmatprep.subr.bf16.mxu0 %v19896_v31 }
0x1b7b   : > { %16545 = vmatpush3.bf16.msra.mxu0 %v20021_v56 }
0x1b7c   : > { %16546 = vmatprep.subr.bf16.mxu0 %v19896_v31 }
0x1b7f   : > { %16548 = vmatpush3.bf16.msra.mxu0 %v20022_v39 }
0x1b80   : > { %16549 = vmatprep.subr.bf16.mxu0 %v19896_v31 }
0x1b83   : > { %16551 = vmatpush3.bf16.msra.mxu0 %v20023_v41  ;;  %v17177_v41 = vld [vmem:[#allocation2 + $0x890] sm:$0xff]  }
0x1b84   : > { %16552 = vmatprep.subr.bf16.mxu0 %v19896_v31 }
0x1b87   : > { %16554 = vmatpush3.bf16.msra.mxu0 %v20024_v60 }
0x1b88   : > { %16555 = vmatprep.subr.bf16.mxu0 %v19896_v31 }
0x1b8b   : > { %16557 = vmatpush3.bf16.msra.mxu0 %v20025_v36 }
0x1b8c   : > { %16558 = vmatprep.subr.bf16.mxu0 %v19896_v31 }
0x1b8f   : > { %16560 = vmatpush3.bf16.msra.mxu0 %v20026_v9  ;;  %v17178_v9 = vld [vmem:[#allocation2 + $0x8d8] sm:$0xff]  }
0x1b90   : > { %16561 = vmatprep.subr.bf16.mxu0 %v19896_v31 }
0x1b93   : > { %16563 = vmatpush3.bf16.msra.mxu0 %v20027_v8  ;;  %v17179_v8 = vld [vmem:[#allocation2 + $0x898] sm:$0xff]  }
0x1b94   : > { %16564 = vmatprep.subr.bf16.mxu0 %v19896_v31 }
0x1b96   : > { %15097 = vmatmul.mubr.f32.vlgmr.msra.gmra.mrb[78].mxu0 %v19387_v22 }
0x1b97   : > { %16566 = vmatpush3.bf16.msra.mxu0 %v19996_v59  ;;  %15131 = vmatprep.mubr.msk.f32.mxu0 %vm17389_vm0, %v19950_v15 }
0x1b98   : > { %16567 = vmatprep.subr.bf16.mxu0 %v19896_v31 }
0x1b9b   : > { %16569 = vmatpush3.bf16.msra.mxu0 %v19997_v16 }
0x1b9c   : > { %16570 = vmatprep.subr.bf16.mxu0 %v19896_v31 }
0x1b9f   : > { %16572 = vmatpush3.bf16.msra.mxu0 %v19998_v44 }
0x1ba0   : > { %16573 = vmatprep.subr.bf16.mxu0 %v19896_v31 }
0x1ba3   : > { %16575 = vmatpush3.bf16.msra.mxu0 %v19999_v37 }
0x1ba4   : > { %16576 = vmatprep.subr.bf16.mxu0 %v19896_v31 }
0x1ba7   : > { %16578 = vmatpush3.bf16.msra.mxu0 %v20000_v12 }
0x1ba8   : > { %16579 = vmatprep.subr.bf16.mxu0 %v19896_v31 }
0x1bab   : > { %16581 = vmatpush3.bf16.msra.mxu0 %v20001_v53 }
0x1bac   : > { %16582 = vmatprep.subr.bf16.mxu0 %v19896_v31 }
0x1baf   : > { %16584 = vmatpush3.bf16.msra.mxu0 %v20002_v55 }
0x1bb0   : > { %16585 = vmatprep.subr.bf16.mxu0 %v19896_v31 }
0x1bb3   : > { %16587 = vmatpush3.bf16.msra.mxu0 %v20003_v33 }
0x1bb4   : > { %15386 = vmatprep.subr.bf16.mxu0 %v19950_v15 }
0x1bb6   : > { %15132 = vmatmul.mubr.f32.vlgmr.msra.gmra.mrb[78].mxu0 %v19387_v22  ;;  %v17166_v22 = vld [vmem:[#allocation2 + $0x868] sm:$0xff]  }
0x1bb7   : > { %15388 = vmatprep.mubr.msk.bf16.mxu0 %vm17389_vm0, %v19950_v15 }
0x1c89   : > { %v9228_v59 = vpop.f32.mrb[78].mxu0 }
0x1c8a   : > { %v9232_v16 = vmul.f32 0.015625, %v9228_v59  ;;  %v15133_v44 = vpop.f32.mrb[79].mxu0  ;;  %v17180_v59 = vld [vmem:[#allocation2 + $0x8e0] sm:$0xff]  }
0x1c8c   : > { %v9233_v37 = vmul.f32 %v9232_v16, %v9232_v16  ;;  %v9242_v55 = vrot.slane %v9232_v16, %v17971_v57 }
0x1c8e   : > { %v9235_v12 = vrot.slane %v9233_v37, 7  ;;  %v9243_v33 = vsub.f32 %v19380_v62, %v9242_v55  ;;  %v17159_v62 = vld [vmem:[#allocation2 + $0x808] sm:$0xff]  }
0x1c8f   : > { %v17183_v55 = vld [vmem:[#allocation2 + $0x8a8] sm:$0xff]  }
0x1c90   : > { %v9237_v53 = vsub.f32 %v9232_v16, %v9235_v12  ;;  %v17181_v12 = vld [vmem:[#allocation2 + $0x8a0] sm:$0xff]  }
0x1c92   : > { %v9238_v48 = vmax.f32 %v9237_v53, 0.0 }
0x1c94   : > { %v9244_v58 = vadd.f32 1e-05, %v9238_v48 }
0x1c96   : > { %17273 = vrsqrt.f32 %v9244_v58  ;;  %v17182_v58 = vld [vmem:[#allocation2 + $0x8e8] sm:$0xff]  }
0x1ca0   : > { %v17274_v29 = vpop.eup %17273 }
0x1ca1   : > { %v9249_v38 = vrot.slane %v17274_v29, %v19995_v25  ;;  %v17184_v29 = vld [vmem:[#allocation2 + $0x8f0] sm:$0xff]  }
0x1ca3   : > { %v9250_v34 = vmul.f32 %v9249_v38, %v9243_v33 }
0x1ca5   : > { %v9251_v23 = vmax.f32 %v9250_v34, 0.0 }
0x1ca7   : > { %v9252_v19 = vpack.c.bf16 %v9251_v23, %v9251_v23  ;;  %v17185_v23 = vld [vmem:[#allocation2 + $0x8b0] sm:$0xff]  }
0x1ca9   : > { %v9304_v32 = vsel %vm2872_vm4, %v9252_v19, 0 }
0x1caa   : > { %15135 = vmatpush3.bf16.msra.mxu1 %v9304_v32  ;;  %v17186_v32 = vld [vmem:[#allocation2 + $0x8f8] sm:$0xff]  }
0x1cab   : > { %13016 = vmatprep.subr.bf16.mxu1 %v17156_v50 }
0x1cad   : > { %15137 = vmatmul.mubr.msk.bf16.vlgmr.msra.gmra.mrb[52].mxu1 %vm2865_vm3, %v17151_v4  ;;  %v17187_v4 = vld [vmem:[#allocation2 + $0x8b8] sm:$0xff]  }
0x1cae   : > { %15140 = vmatprep.mubr.msk.bf16.mxu1 %vm17389_vm0, %v19950_v15  ;;  %13017 = vmatpush3.bf16.msra.mxu1 %v17157_v51  ;;  %v17188_v51 = vld [vmem:[#allocation2 + $0x900] sm:$0xff]  }
0x1caf   : > { %13018 = vmatprep.subr.bf16.mxu1 %v17158_v47  ;;  %v17189_v47 = vld [vmem:[#allocation2 + $0x908] sm:$0xff]  }
0x1cb2   : > { %13019 = vmatpush3.bf16.msra.mxu1 %v17159_v62  ;;  %v17190_v62 = vld [vmem:[#allocation2 + $0x910] sm:$0xff]  }
0x1cb3   : > { %13020 = vmatprep.subr.bf16.mxu1 %v17160_v28  ;;  %v17191_v28 = vld [vmem:[#allocation2 + $0x918] sm:$0xff]  }
0x1cb5   : > { %15141 = vmatmul.mubr.msk.bf16.gmra.mrb[56].mxu1 %vm2865_vm3, %v17152_v43  ;;  %v17192_v43 = vld [vmem:[#allocation2 + $0x920] sm:$0xff]  }
0x1cb6   : > { %15144 = vmatprep.mubr.msk.bf16.mxu1 %vm17389_vm0, %v19950_v15  ;;  %13021 = vmatpush3.bf16.msra.mxu1 %v17161_v2  ;;  %v17193_v2 = vld [vmem:[#allocation2 + $0x928] sm:$0xff]  }
0x1cb7   : > { %13022 = vmatprep.subr.bf16.mxu1 %v17162_v42  ;;  %v17194_v42 = vld [vmem:[#allocation2 + $0x930] sm:$0xff]  }
0x1cba   : > { %13023 = vmatpush3.bf16.msra.mxu1 %v17163_v14  ;;  %v17195_v14 = vld [vmem:[#allocation2 + $0x938] sm:$0xff]  }
0x1cbb   : > { %13024 = vmatprep.subr.bf16.mxu1 %v17164_v7  ;;  %v20028_v7 = vld [vmem:[#allocation9_spill] sm:$0xff] }
0x1cbd   : > { %15145 = vmatmul.mubr.msk.bf16.gmra.mrb[60].mxu1 %vm2865_vm3, %v17153_v27  ;;  %v20029_v27 = vld [vmem:[#allocation10_spill] sm:$0xff] }
0x1cbe   : > { %15148 = vmatprep.mubr.msk.bf16.mxu1 %vm17389_vm0, %v19950_v15  ;;  %13025 = vmatpush3.bf16.msra.mxu1 %v17165_v40  ;;  %v20030_v40 = vld [vmem:[#allocation11_spill] sm:$0xff] }
0x1cbf   : > { %13026 = vmatprep.subr.bf16.mxu1 %v17166_v22  ;;  %v20033_v22 = vld [vmem:[#allocation14_spill] sm:$0xff] }
0x1cc2   : > { %13027 = vmatpush3.bf16.msra.mxu1 %v17167_v18  ;;  %v20034_v18 = vld [vmem:[#allocation15_spill] sm:$0xff] }
0x1cc3   : > { %13028 = vmatprep.subr.bf16.mxu1 %v17168_v17  ;;  %v20035_v17 = vld [vmem:[#allocation16_spill] sm:$0xff] }
0x1cc5   : > { %15149 = vmatmul.mubr.msk.bf16.gmra.mrb[64].mxu1 %vm2865_vm3, %v17154_v63  ;;  %v20031_v63 = vld [vmem:[#allocation12_spill] sm:$0xff] }
0x1cc6   : > { %15152 = vmatprep.mubr.msk.bf16.mxu1 %vm17389_vm0, %v19950_v15  ;;  %13029 = vmatpush3.bf16.msra.mxu1 %v17169_v46 }
0x1cc7   : > { %13030 = vmatprep.subr.bf16.mxu1 %v17170_v0 }
0x1cca   : > { %13031 = vmatpush3.bf16.msra.mxu1 %v17171_v1 }
0x1ccb   : > { %13038 = vmatprep.subr.bf16.mxu1 %v17172_v20 }
0x1ccd   : > { %15153 = vmatmul.mubr.msk.bf16.gmra.mrb[68].mxu1 %vm2865_vm3, %v17155_v3  ;;  %v20032_v3 = vld [vmem:[#allocation13_spill] sm:$0xff] }
0x1d80   : > { %v9340_v49 = vpop.f32.mrb[52].mxu1 }
0x1d81   : > { %v15138_v26 = vpop.f32.mrb[53].mxu1 }
0x1d82   : > { %v9343_v30 = vpop.f32.mrb[54].mxu1 }
0x1d83   : > { %v9459_v35 = vpack.c.bf16 %v9343_v30, %v9340_v49  ;;  %v15139_v11 = vpop.f32.mrb[55].mxu1 }
0x1d88   : > { %v9348_v52 = vpop.f32.mrb[56].mxu1 }
0x1d89   : > { %v15142_v45 = vpop.f32.mrb[57].mxu1 }
0x1d8a   : > { %v9351_v13 = vpop.f32.mrb[58].mxu1 }
0x1d8b   : > { %v9460_v54 = vpack.c.bf16 %v9351_v13, %v9348_v52  ;;  %v15143_v61 = vpop.f32.mrb[59].mxu1 }
0x1d8d   : > { %9736 = vmatprep.mubr.bf16.mxu1 %v9460_v54 }
0x1d8e   : > { %9737 = vmatmul.mubr.bf16.vlgmr.msra.gmra.mrb[72].mxu1 %v9459_v35 }
0x1d8f   : > { %13039 = vmatpush3.bf16.msra.mxu1 %v17173_v6 }
0x1d90   : > { %13040 = vmatprep.subr.bf16.mxu1 %v17174_v5  ;;  %v9356_v24 = vpop.f32.mrb[60].mxu1 }
0x1d91   : > { %v15146_v56 = vpop.f32.mrb[61].mxu1 }
0x1d92   : > { %v9359_v39 = vpop.f32.mrb[62].mxu1 }
0x1d93   : > { %13041 = vmatpush3.bf16.msra.mxu1 %v17175_v10  ;;  %v9461_v60 = vpack.c.bf16 %v9359_v39, %v9356_v24  ;;  %v15147_v36 = vpop.f32.mrb[63].mxu1 }
0x1d94   : > { %13042 = vmatprep.subr.bf16.mxu1 %v17176_v21 }
0x1d97   : > { %13043 = vmatpush3.bf16.msra.mxu1 %v17177_v41 }
0x1d98   : > { %13044 = vmatprep.subr.bf16.mxu1 %v17178_v9  ;;  %v9364_v16 = vpop.f32.mrb[64].mxu1 }
0x1d99   : > { %v15150_v44 = vpop.f32.mrb[65].mxu1 }
0x1d9a   : > { %v9367_v37 = vpop.f32.mrb[66].mxu1 }
0x1d9b   : > { %13045 = vmatpush3.bf16.msra.mxu1 %v17179_v8  ;;  %v9462_v53 = vpack.c.bf16 %v9367_v37, %v9364_v16  ;;  %v15151_v48 = vpop.f32.mrb[67].mxu1 }
0x1d9c   : > { %13046 = vmatprep.subr.bf16.mxu1 %v17180_v59 }
0x1d9d   : > { %9777 = vmatprep.mubr.bf16.mxu1 %v9462_v53 }
0x1d9f   : > { %13047 = vmatpush3.bf16.msra.mxu1 %v17181_v12 }
0x1da0   : > { %13048 = vmatprep.subr.bf16.mxu1 %v17182_v58  ;;  %v9372_v33 = vpop.f32.mrb[68].mxu1 }
0x1da1   : > { %v15154_v38 = vpop.f32.mrb[69].mxu1 }
0x1da2   : > { %v9375_v34 = vpop.f32.mrb[70].mxu1 }
0x1da3   : > { %13049 = vmatpush3.bf16.msra.mxu1 %v17183_v55  ;;  %v9463_v19 = vpack.c.bf16 %v9375_v34, %v9372_v33  ;;  %v15155_v50 = vpop.f32.mrb[71].mxu1 }
0x1da4   : > { %13050 = vmatprep.subr.bf16.mxu1 %v17184_v29 }
0x1da7   : > { %13051 = vmatpush3.bf16.msra.mxu1 %v17185_v23 }
0x1da8   : > { %13052 = vmatprep.subr.bf16.mxu1 %v17186_v32  ;;  %v20036_v32 = vld [vmem:[#allocation17_spill] sm:$0xff] }
0x1dab   : > { %13053 = vmatpush3.bf16.msra.mxu1 %v17187_v4  ;;  %v20037_v4 = vld [vmem:[#allocation18_spill] sm:$0xff] }
0x1dac   : > { %15156 = vmatprep.subr.bf16.mxu1 %v19950_v15 }
0x1dae   : > { %9778 = vmatmul.mubr.bf16.vlgmr.msra.gmra.mrb[76].mxu1 %v9461_v60 }
0x1daf   : > { %15157 = vmatpush3.bf16.msra.mxu1 %v17188_v51  ;;  %15172 = vmatprep.mubr.msk.bf16.mxu1 %vm17389_vm0, %v19950_v15  ;;  %v20038_v51 = vld [vmem:[#allocation19_spill] sm:$0xff] }
0x1db0   : > { %15158 = vmatprep.subr.bf16.mxu1 %v19950_v15 }
0x1db3   : > { %15159 = vmatpush3.bf16.msra.mxu1 %v17189_v47  ;;  %v20039_v47 = vld [vmem:[#allocation20_spill] sm:$0xff] }
0x1db4   : > { %15160 = vmatprep.subr.bf16.mxu1 %v19950_v15 }
0x1db7   : > { %15161 = vmatpush3.bf16.msra.mxu1 %v17190_v62  ;;  %v20040_v62 = vld [vmem:[#allocation21_spill] sm:$0xff] }
0x1db8   : > { %15162 = vmatprep.subr.bf16.mxu1 %v19950_v15 }
0x1dbb   : > { %15163 = vmatpush3.bf16.msra.mxu1 %v17191_v28  ;;  %v20041_v28 = vld [vmem:[#allocation22_spill] sm:$0xff] }
0x1dbc   : > { %15164 = vmatprep.subr.bf16.mxu1 %v19950_v15 }
0x1dbf   : > { %15165 = vmatpush3.bf16.msra.mxu1 %v17192_v43  ;;  %v20042_v43 = vld [vmem:[#allocation23_spill] sm:$0xff] }
0x1dc0   : > { %15166 = vmatprep.subr.bf16.mxu1 %v19950_v15 }
0x1dc3   : > { %15167 = vmatpush3.bf16.msra.mxu1 %v17193_v2  ;;  %v20043_v2 = vld [vmem:[#allocation24_spill] sm:$0xff] }
0x1dc4   : > { %15168 = vmatprep.subr.bf16.mxu1 %v19950_v15 }
0x1dc7   : > { %15169 = vmatpush3.bf16.msra.mxu1 %v17194_v42  ;;  %v20044_v42 = vld [vmem:[#allocation25_spill] sm:$0xff] }
0x1dc8   : > { %15170 = vmatprep.subr.bf16.mxu1 %v19950_v15 }
0x1dcb   : > { %15171 = vmatpush3.bf16.msra.mxu1 %v17195_v14  ;;  %v20045_v14 = vld [vmem:[#allocation26_spill] sm:$0xff] }
0x1dcc   : > { %16588 = vmatprep.subr.bf16.mxu1 %v19896_v31 }
0x1dce   : > { %15173 = vmatmul.mubr.bf16.vlgmr.msra.gmra.mrb[80].mxu1 %v9463_v19 }
0x1dcf   : > { %16590 = vmatpush3.bf16.msra.mxu1 %v20028_v7  ;;  %15208 = vmatprep.mubr.msk.f32.mxu1 %vm17389_vm0, %v19950_v15 }
0x1dd0   : > { %16591 = vmatprep.subr.bf16.mxu1 %v19896_v31 }
0x1dd3   : > { %16593 = vmatpush3.bf16.msra.mxu1 %v20029_v27 }
0x1dd4   : > { %16594 = vmatprep.subr.bf16.mxu1 %v19896_v31 }
0x1dd7   : > { %16596 = vmatpush3.bf16.msra.mxu1 %v20030_v40 }
0x1dd8   : > { %16597 = vmatprep.subr.bf16.mxu1 %v19896_v31 }
0x1ddb   : > { %16599 = vmatpush3.bf16.msra.mxu1 %v20031_v63 }
0x1ddc   : > { %16600 = vmatprep.subr.bf16.mxu1 %v19896_v31 }
0x1ddf   : > { %16602 = vmatpush3.bf16.msra.mxu1 %v20032_v3 }
0x1de0   : > { %16603 = vmatprep.subr.bf16.mxu1 %v19896_v31 }
0x1de3   : > { %16605 = vmatpush3.bf16.msra.mxu1 %v20033_v22 }
0x1de4   : > { %16606 = vmatprep.subr.bf16.mxu1 %v19896_v31 }
0x1de7   : > { %16608 = vmatpush3.bf16.msra.mxu1 %v20034_v18 }
0x1de8   : > { %16609 = vmatprep.subr.bf16.mxu1 %v19896_v31 }
0x1deb   : > { %16611 = vmatpush3.bf16.msra.mxu1 %v20035_v17 }
0x1dec   : > { %16612 = vmatprep.subr.bf16.mxu1 %v19896_v31 }
0x1e61   : > { %v13032_v46 = vpop.f32.mrb[72].mxu1 }
0x1e62   : > { %v13033_v0 = vpop.f32.mrb[73].mxu1 }
0x1e63   : > { %v13034_v1 = vadd.f32 %v13033_v0, %v13032_v46  ;;  %v13035_v20 = vpop.f32.mrb[74].mxu1  ;;  %v20046_v46 = vld [vmem:[#allocation27_spill] sm:$0xff]  ;;  %v20047_v0 = vld [vmem:[#allocation28_spill] sm:$0xff] }
0x1e64   : > { %v13036_v49 = vpop.f32.mrb[75].mxu1 }
0x1e65   : > { %v13037_v26 = vadd.f32 %v13036_v49, %v13035_v20  ;;  %v20049_v20 = vld [vmem:[#allocation30_spill] sm:$0xff]  ;;  %v20050_v49 = vld [vmem:[#allocation31_spill] sm:$0xff] }
0x1e81   : > { %v13054_v30 = vpop.f32.mrb[76].mxu1 }
0x1e82   : > { %v13055_v35 = vpop.f32.mrb[77].mxu1 }
0x1e83   : > { %v13056_v11 = vadd.f32 %v13055_v35, %v13054_v30  ;;  %v13057_v52 = vpop.f32.mrb[78].mxu1  ;;  %v20052_v30 = vld [vmem:[#allocation33_spill] sm:$0xff]  ;;  %v20053_v35 = vld [vmem:[#allocation34_spill] sm:$0xff] }
0x1e84   : > { %v13058_v45 = vpop.f32.mrb[79].mxu1 }
0x1e85   : > { %v13059_v13 = vadd.f32 %v13058_v45, %v13057_v52  ;;  %v9780_v54 = vadd.f32 %v13056_v11, %v13034_v1  ;;  %v20048_v1 = vld [vmem:[#allocation29_spill] sm:$0xff]  ;;  %v20054_v11 = vld [vmem:[#allocation35_spill] sm:$0xff]  ;;  %v20055_v52 = vld [vmem:[#allocation36_spill] sm:$0xff] }
0x1e86   : > { %v20056_v45 = vld [vmem:[#allocation37_spill] sm:$0xff] }
0x1e87   : > { %v9783_v61 = vadd.f32 %v13059_v13, %v13037_v26  ;;  %v20051_v26 = vld [vmem:[#allocation32_spill] sm:$0xff]  ;;  %v20057_v13 = vld [vmem:[#allocation38_spill] sm:$0xff] }
0x1ea1   : > { %v9820_v6 = vpop.f32.mrb[80].mxu1 }
0x1ea2   : > { %v19546_v5 = vadd.f32 %v9820_v6, %v9780_v54  ;;  %v15174_v10 = vpop.f32.mrb[81].mxu1  ;;  %v20058_v54 = vld [vmem:[#allocation39_spill] sm:$0xff] }
0x1ea3   : > { %v9823_v21 = vpop.f32.mrb[82].mxu1 }
0x1ea4   : > { %v19548_v24 = vadd.f32 %v9823_v21, %v9783_v61  ;;  %v15175_v56 = vpop.f32.mrb[83].mxu1  ;;  %v9834_v39 = vmul.f32 %v19546_v5, %v19546_v5  ;;  %v20059_v61 = vld [vmem:[#allocation40_spill] sm:$0xff] }
0x1ea6   : > { %v9827_v41 = vadd.f32 %v19548_v24, %v19546_v5  ;;  %v9835_v60 = vmul.f32 %v19548_v24, %v19548_v24 }
0x1ea8   : > { %v9828_v36 = vrot.slane %v9827_v41, 4  ;;  %v9836_v9 = vadd.f32 %v9835_v60, %v9834_v39 }
0x1eaa   : > { %v9829_v8 = vadd.f32 %v9828_v36, %v9827_v41  ;;  %v9837_v59 = vrot.slane %v9836_v9, 4 }
0x1eac   : > { %v9830_v16 = vrot.slane %v9829_v8, 2  ;;  %v9838_v44 = vadd.f32 %v9837_v59, %v9836_v9  ;;  %v17203_v9 = vld [vmem:[#allocation2 + $0x980] sm:$0xff]  }
0x1ead   : > { %v17196_v59 = vld [vmem:[%s19715_s1 + $0xc4] sm:$0xff]  }
0x1eae   : > { %v9831_v37 = vadd.f32 %v9830_v16, %v9829_v8  ;;  %v9839_v12 = vrot.slane %v9838_v44, 2  ;;  %v17204_v16 = vld [vmem:[#allocation2 + $0x940] sm:$0xff]  }
0x1eb0   : > { %v9832_v53 = vrot.slane %v9831_v37, 1  ;;  %v9840_v48 = vadd.f32 %v9839_v12, %v9838_v44  ;;  %v17208_v44 = vld [vmem:[#allocation2 + $0x950] sm:$0xff]   ;;  %v17210_v12 = vld [vmem:[#allocation2 + $0x958] sm:$0xff]  }
0x1eb2   : > { %v9841_v58 = vrot.slane %v9840_v48, 1  ;;  %v9833_v55 = vadd.f32 %v9832_v53, %v9831_v37  ;;  %v17209_v37 = vld [vmem:[#allocation2 + $0x998] sm:$0xff]   ;;  %v17211_v53 = vld [vmem:[#allocation2 + $0x9a0] sm:$0xff]  }
0x1eb4   : > { %v9842_v29 = vadd.f32 %v9841_v58, %v9840_v48  ;;  %v17198_v48 = vld [vmem:[%s19715_s1 + $0xd4] sm:$0xff]   ;;  %v17212_v58 = vld [vmem:[#allocation2 + $0x960] sm:$0xff]  }
0x1eb6   : > { %v9843_v33 = vsel %vm1082_vm2, %v9833_v55, %v9842_v29  ;;  %v17213_v55 = vld [vmem:[#allocation2 + $0x9a8] sm:$0xff]  }
0x1eb7   : > { %v19557_v38 = vand.u32 4294901760, %v9843_v33  ;;  %v17214_v29 = vld [vmem:[#allocation2 + $0x968] sm:$0xff]  }
0x1eb9   : > { %v9926_v34 = vsub.f32 %v9843_v33, %v19557_v38  ;;  %v17199_v33 = vld [vmem:[%s19715_s1 + $0xdc] sm:$0xff]  }
0x1ebb   : > { %v9927_v23 = vand.u32 4294901760, %v9926_v34 }
0x1ebd   : > { %v9928_v19 = vsub.f32 %v9926_v34, %v9927_v23 }
0x1ebf   : > { %v9929_v50 = vand.u32 4294901760, %v9928_v19  ;;  %v17215_v19 = vld [vmem:[#allocation2 + $0x9b0] sm:$0xff]  }
0x1ec1   : > { %15209 = vmatmul.mubr.f32.vlgmr.msra.gmra.mrb[84].mxu1 %v9929_v50  ;;  %v17216_v50 = vld [vmem:[#allocation2 + $0x970] sm:$0xff]  }
0x1ec2   : > { %16614 = vmatpush3.bf16.msra.mxu1 %v20036_v32  ;;  %15243 = vmatprep.mubr.msk.f32.mxu1 %vm17389_vm0, %v19950_v15  ;;  %v17217_v32 = vld [vmem:[#allocation2 + $0x9b8] sm:$0xff]  }
0x1ec3   : > { %16615 = vmatprep.subr.bf16.mxu1 %v19896_v31 }
0x1ec6   : > { %16617 = vmatpush3.bf16.msra.mxu1 %v20037_v4  ;;  %v17218_v4 = vld [vmem:[#allocation2 + $0x978] sm:$0xff]  }
0x1ec7   : > { %16618 = vmatprep.subr.bf16.mxu1 %v19896_v31 }
0x1eca   : > { %16620 = vmatpush3.bf16.msra.mxu1 %v20038_v51  ;;  %v17219_v51 = vld [vmem:[#allocation2 + $0xa00] sm:$0xff]  }
0x1ecb   : > { %16621 = vmatprep.subr.bf16.mxu1 %v19896_v31 }
0x1ece   : > { %16623 = vmatpush3.bf16.msra.mxu1 %v20039_v47 }
0x1ecf   : > { %16624 = vmatprep.subr.bf16.mxu1 %v19896_v31 }
0x1ed2   : > { %16626 = vmatpush3.bf16.msra.mxu1 %v20040_v62 }
0x1ed3   : > { %16627 = vmatprep.subr.bf16.mxu1 %v19896_v31 }
0x1ed6   : > { %16629 = vmatpush3.bf16.msra.mxu1 %v20041_v28 }
0x1ed7   : > { %16630 = vmatprep.subr.bf16.mxu1 %v19896_v31 }
0x1eda   : > { %16632 = vmatpush3.bf16.msra.mxu1 %v20042_v43 }
0x1edb   : > { %16633 = vmatprep.subr.bf16.mxu1 %v19896_v31 }
0x1ede   : > { %16635 = vmatpush3.bf16.msra.mxu1 %v20043_v2 }
0x1edf   : > { %16636 = vmatprep.subr.bf16.mxu1 %v19896_v31 }
0x1ee1   : > { %15244 = vmatmul.mubr.f32.vlgmr.msra.gmra.mrb[84].mxu1 %v19557_v38 }
0x1ee2   : > { %16638 = vmatpush3.bf16.msra.mxu1 %v20044_v42  ;;  %15278 = vmatprep.mubr.msk.f32.mxu1 %vm17389_vm0, %v19950_v15 }
0x1ee3   : > { %16639 = vmatprep.subr.bf16.mxu1 %v19896_v31 }
0x1ee6   : > { %16641 = vmatpush3.bf16.msra.mxu1 %v20045_v14 }
0x1ee7   : > { %16642 = vmatprep.subr.bf16.mxu1 %v19896_v31 }
0x1eea   : > { %16644 = vmatpush3.bf16.msra.mxu1 %v20046_v46 }
0x1eeb   : > { %16645 = vmatprep.subr.bf16.mxu1 %v19896_v31 }
0x1eee   : > { %16647 = vmatpush3.bf16.msra.mxu1 %v20047_v0 }
0x1eef   : > { %16648 = vmatprep.subr.bf16.mxu1 %v19896_v31 }
0x1ef2   : > { %16650 = vmatpush3.bf16.msra.mxu1 %v20048_v1 }
0x1ef3   : > { %16651 = vmatprep.subr.bf16.mxu1 %v19896_v31 }
0x1ef6   : > { %16653 = vmatpush3.bf16.msra.mxu1 %v20049_v20  ;;  %v17220_v20 = vld [vmem:[#allocation2 + $0x9c0] sm:$0xff]  }
0x1ef7   : > { %16654 = vmatprep.subr.bf16.mxu1 %v19896_v31 }
0x1efa   : > { %16656 = vmatpush3.bf16.msra.mxu1 %v20050_v49  ;;  %v17221_v49 = vld [vmem:[#allocation2 + $0xa08] sm:$0xff]  }
0x1efb   : > { %16657 = vmatprep.subr.bf16.mxu1 %v19896_v31 }
0x1efe   : > { %16659 = vmatpush3.bf16.msra.mxu1 %v20051_v26  ;;  %v17222_v26 = vld [vmem:[#allocation2 + $0x9c8] sm:$0xff]  }
0x1eff   : > { %16660 = vmatprep.subr.bf16.mxu1 %v19896_v31 }
0x1f01   : > { %15279 = vmatmul.mubr.f32.vlgmr.msra.gmra.mrb[84].mxu1 %v9926_v34  ;;  %v17201_v34 = vld [vmem:[%s19715_s1 + $0xec] sm:$0xff]  }
0x1f02   : > { %16662 = vmatpush3.bf16.msra.mxu1 %v20028_v7  ;;  %15313 = vmatprep.mubr.msk.f32.mxu1 %vm17389_vm0, %v19950_v15 }
0x1f03   : > { %16663 = vmatprep.subr.bf16.mxu1 %v19896_v31 }
0x1f06   : > { %16665 = vmatpush3.bf16.msra.mxu1 %v20029_v27 }
0x1f07   : > { %16666 = vmatprep.subr.bf16.mxu1 %v19896_v31 }
0x1f0a   : > { %16668 = vmatpush3.bf16.msra.mxu1 %v20030_v40 }
0x1f0b   : > { %16669 = vmatprep.subr.bf16.mxu1 %v19896_v31 }
0x1f0e   : > { %16671 = vmatpush3.bf16.msra.mxu1 %v20031_v63 }
0x1f0f   : > { %16672 = vmatprep.subr.bf16.mxu1 %v19896_v31 }
0x1f12   : > { %16674 = vmatpush3.bf16.msra.mxu1 %v20032_v3 }
0x1f13   : > { %16675 = vmatprep.subr.bf16.mxu1 %v19896_v31 }
0x1f16   : > { %16677 = vmatpush3.bf16.msra.mxu1 %v20033_v22 }
0x1f17   : > { %16678 = vmatprep.subr.bf16.mxu1 %v19896_v31 }
0x1f1a   : > { %16680 = vmatpush3.bf16.msra.mxu1 %v20034_v18 }
0x1f1b   : > { %16681 = vmatprep.subr.bf16.mxu1 %v19896_v31 }
0x1f1e   : > { %16683 = vmatpush3.bf16.msra.mxu1 %v20035_v17 }
0x1f1f   : > { %16684 = vmatprep.subr.bf16.mxu1 %v19896_v31 }
0x1f21   : > { %15314 = vmatmul.mubr.f32.vlgmr.msra.gmra.mrb[84].mxu1 %v9927_v23  ;;  %v17202_v23 = vld [vmem:[%s19715_s1 + $0xf4] sm:$0xff]  }
0x1f22   : > { %16686 = vmatpush3.bf16.msra.mxu1 %v20052_v30  ;;  %15348 = vmatprep.mubr.msk.f32.mxu1 %vm17389_vm0, %v19950_v15  ;;  %v17223_v30 = vld [vmem:[#allocation2 + $0xa10] sm:$0xff]  }
0x1f23   : > { %16687 = vmatprep.subr.bf16.mxu1 %v19896_v31 }
0x1f26   : > { %16689 = vmatpush3.bf16.msra.mxu1 %v20053_v35 }
0x1f27   : > { %16690 = vmatprep.subr.bf16.mxu1 %v19896_v31 }
0x1f2a   : > { %16692 = vmatpush3.bf16.msra.mxu1 %v20054_v11 }
0x1f2b   : > { %16693 = vmatprep.subr.bf16.mxu1 %v19896_v31 }
0x1f2e   : > { %16695 = vmatpush3.bf16.msra.mxu1 %v20055_v52 }
0x1f2f   : > { %16696 = vmatprep.subr.bf16.mxu1 %v19896_v31 }
0x1f32   : > { %16698 = vmatpush3.bf16.msra.mxu1 %v20056_v45  ;;  %v17224_v45 = vld [vmem:[#allocation2 + $0x9d0] sm:$0xff]  }
0x1f33   : > { %16699 = vmatprep.subr.bf16.mxu1 %v19896_v31 }
0x1f36   : > { %16701 = vmatpush3.bf16.msra.mxu1 %v20057_v13 }
0x1f37   : > { %16702 = vmatprep.subr.bf16.mxu1 %v19896_v31 }
0x1f3a   : > { %16704 = vmatpush3.bf16.msra.mxu1 %v20058_v54 }
0x1f3b   : > { %16705 = vmatprep.subr.bf16.mxu1 %v19896_v31 }
0x1f3e   : > { %16707 = vmatpush3.bf16.msra.mxu1 %v20059_v61  ;;  %v17225_v61 = vld [vmem:[#allocation2 + $0xa18] sm:$0xff]  }
0x1f3f   : > { %16708 = vmatprep.subr.bf16.mxu1 %v19896_v31 }
0x1f41   : > { %15349 = vmatmul.mubr.f32.vlgmr.msra.gmra.mrb[84].mxu1 %v19557_v38 }
0x1f42   : > { %16710 = vmatpush3.bf16.msra.mxu1 %v20028_v7  ;;  %15383 = vmatprep.mubr.msk.f32.mxu1 %vm17389_vm0, %v19950_v15 }
0x1f43   : > { %16711 = vmatprep.subr.bf16.mxu1 %v19896_v31 }
0x1f46   : > { %16713 = vmatpush3.bf16.msra.mxu1 %v20029_v27 }
0x1f47   : > { %16714 = vmatprep.subr.bf16.mxu1 %v19896_v31 }
0x1f4a   : > { %16716 = vmatpush3.bf16.msra.mxu1 %v20030_v40 }
0x1f4b   : > { %16717 = vmatprep.subr.bf16.mxu1 %v19896_v31 }
0x1f4e   : > { %16719 = vmatpush3.bf16.msra.mxu1 %v20031_v63 }
0x1f4f   : > { %16720 = vmatprep.subr.bf16.mxu1 %v19896_v31 }
0x1f52   : > { %16722 = vmatpush3.bf16.msra.mxu1 %v20032_v3 }
0x1f53   : > { %16723 = vmatprep.subr.bf16.mxu1 %v19896_v31 }
0x1f56   : > { %16725 = vmatpush3.bf16.msra.mxu1 %v20033_v22 }
0x1f57   : > { %16726 = vmatprep.subr.bf16.mxu1 %v19896_v31 }
0x1f5a   : > { %16728 = vmatpush3.bf16.msra.mxu1 %v20034_v18 }
0x1f5b   : > { %16729 = vmatprep.subr.bf16.mxu1 %v19896_v31 }
0x1f5e   : > { %16731 = vmatpush3.bf16.msra.mxu1 %v20035_v17 }
0x1f61   : > { %15384 = vmatmul.mubr.f32.vlgmr.msra.gmra.mrb[84].mxu1 %v19557_v38  ;;  %v17200_v38 = vld [vmem:[%s19715_s1 + $0xe4] sm:$0xff]  }
0x2034   : > { %v10481_v7 = vpop.f32.mrb[84].mxu1 }
0x2035   : > { %v10485_v27 = vmul.f32 0.00390625, %v10481_v7  ;;  %v15385_v40 = vpop.f32.mrb[85].mxu1  ;;  %v17226_v7 = vld [vmem:[#allocation2 + $0x9d8] sm:$0xff]  }
0x2037   : > { %v10486_v63 = vmul.f32 %v10485_v27, %v10485_v27  ;;  %v10495_v22 = vrot.slane %v10485_v27, %v17971_v57  ;;  %v17205_v57 = vld [vmem:[#allocation2 + $0x988] sm:$0xff]  }
0x2039   : > { %v10488_v6 = vrot.slane %v10486_v63, 7  ;;  %v10496_v18 = vsub.f32 %v19546_v5, %v10495_v22  ;;  %v10497_v31 = vsub.f32 %v19548_v24, %v10495_v22  ;;  %v17207_v5 = vld [vmem:[#allocation2 + $0x990] sm:$0xff]   ;;  %v17229_v22 = vld [vmem:[#allocation2 + $0xa28] sm:$0xff]  }
0x203a   : > { %v17197_v24 = vld [vmem:[%s19715_s1 + $0xcc] sm:$0xff]  }
0x203b   : > { %v10490_v3 = vsub.f32 %v10485_v27, %v10488_v6  ;;  %v17227_v27 = vld [vmem:[#allocation2 + $0xa20] sm:$0xff]  }
0x203d   : > { %v10491_v10 = vmax.f32 %v10490_v3, 0.0  ;;  %v17228_v3 = vld [vmem:[#allocation2 + $0x9e0] sm:$0xff]  }
0x203f   : > { %v10498_v21 = vadd.f32 1e-05, %v10491_v10 }
0x2041   : > { %17275 = vrsqrt.f32 %v10498_v21 }
0x204b   : > { %v17276_v56 = vpop.eup %17275 }
0x204c   : > { %v10503_v17 = vrot.slane %v17276_v56, %v19995_v25  ;;  %v17206_v25 = vld [vmem:[#allocation2 + $0x948] sm:$0xff]  }
0x204d   : > { %v17230_v56 = vld [vmem:[#allocation2 + $0x9e8] sm:$0xff]  }
0x204e   : > { %v10504_v39 = vmul.f32 %v10503_v17, %v10496_v18  ;;  %v10505_v41 = vmul.f32 %v10503_v17, %v10497_v31  ;;  %v17231_v18 = vld [vmem:[#allocation2 + $0xa30] sm:$0xff]  }
0x2050   : > { %v10506_v60 = vmax.f32 %v10504_v39, 0.0  ;;  %v10507_v36 = vmax.f32 %v10505_v41, 0.0  ;;  %v17232_v41 = vld [vmem:[#allocation2 + $0x9f0] sm:$0xff]  }
0x2052   : > { %v10508_v8 = vpack.c.bf16 %v10507_v36, %v10506_v60 }
0x2054   : > { %15387 = vmatpush3.bf16.msra.mxu0 %v10508_v8  ;;  %v17234_v8 = vld [vmem:[#allocation2 + $0x9f8] sm:$0xff]  }
0x2055   : > { %13179 = vmatprep.subr.bf16.mxu0 %v17203_v9  ;;  %v17233_v9 = vld [vmem:[#allocation2 + $0xa38] sm:$0xff]  }
0x2057   : > { %15389 = vmatmul.mubr.msk.bf16.vlgmr.msra.gmra.mrb[104].mxu0 %vm320_vm1, %v17196_v59  ;;  %v17235_v59 = vld [vmem:[#allocation2 + $0xa80] sm:$0xff]  }
0x2058   : > { %15392 = vmatprep.mubr.msk.bf16.mxu0 %vm17389_vm0, %v19950_v15  ;;  %13180 = vmatpush3.bf16.msra.mxu0 %v17204_v16 }
0x2059   : > { %13181 = vmatprep.subr.bf16.mxu0 %v17205_v57 }
0x205c   : > { %13182 = vmatpush3.bf16.msra.mxu0 %v17206_v25 }
0x205d   : > { %13183 = vmatprep.subr.bf16.mxu0 %v17207_v5  ;;  %v17236_v5 = vld [vmem:[#allocation2 + $0xa40] sm:$0xff]  }
0x205f   : > { %15393 = vmatmul.mubr.msk.bf16.gmra.mrb[108].mxu0 %vm320_vm1, %v17197_v24 }
0x2060   : > { %15396 = vmatprep.mubr.msk.bf16.mxu0 %vm17389_vm0, %v19950_v15  ;;  %13184 = vmatpush3.bf16.msra.mxu0 %v17208_v44 }
0x2061   : > { %13185 = vmatprep.subr.bf16.mxu0 %v17209_v37  ;;  %v17237_v37 = vld [vmem:[#allocation2 + $0xa88] sm:$0xff]  }
0x2064   : > { %13186 = vmatpush3.bf16.msra.mxu0 %v17210_v12  ;;  %v17238_v12 = vld [vmem:[#allocation2 + $0xa48] sm:$0xff]  }
0x2065   : > { %13187 = vmatprep.subr.bf16.mxu0 %v17211_v53  ;;  %v17239_v53 = vld [vmem:[#allocation2 + $0xa90] sm:$0xff]  }
0x2067   : > { %15397 = vmatmul.mubr.msk.bf16.gmra.mrb[112].mxu0 %vm320_vm1, %v17198_v48 }
0x2068   : > { %15400 = vmatprep.mubr.msk.bf16.mxu0 %vm17389_vm0, %v19950_v15  ;;  %13188 = vmatpush3.bf16.msra.mxu0 %v17212_v58 }
0x2069   : > { %13189 = vmatprep.subr.bf16.mxu0 %v17213_v55 }
0x206c   : > { %13190 = vmatpush3.bf16.msra.mxu0 %v17214_v29  ;;  %v17240_v29 = vld [vmem:[#allocation2 + $0xa50] sm:$0xff]  }
0x206d   : > { %13191 = vmatprep.subr.bf16.mxu0 %v17215_v19  ;;  %v17243_v19 = vld [vmem:[#allocation2 + $0xaa0] sm:$0xff]  }
0x206f   : > { %15401 = vmatmul.mubr.msk.bf16.gmra.mrb[116].mxu0 %vm320_vm1, %v17199_v33 }
0x2070   : > { %15404 = vmatprep.mubr.msk.bf16.mxu0 %vm17389_vm0, %v19950_v15  ;;  %13192 = vmatpush3.bf16.msra.mxu0 %v17216_v50  ;;  %v17244_v50 = vld [vmem:[#allocation2 + $0xa60] sm:$0xff]  }
0x2071   : > { %13193 = vmatprep.subr.bf16.mxu0 %v17217_v32  ;;  %v17245_v32 = vld [vmem:[#allocation2 + $0xaa8] sm:$0xff]  }
0x2074   : > { %13194 = vmatpush3.bf16.msra.mxu0 %v17218_v4  ;;  %v17246_v4 = vld [vmem:[#allocation2 + $0xa68] sm:$0xff]  }
0x2075   : > { %13201 = vmatprep.subr.bf16.mxu0 %v17219_v51  ;;  %v17247_v51 = vld [vmem:[#allocation2 + $0xab0] sm:$0xff]  }
0x2077   : > { %15405 = vmatmul.mubr.msk.bf16.gmra.mrb[120].mxu0 %vm320_vm1, %v17200_v38 }
0x2078   : > { %15408 = vmatprep.mubr.msk.bf16.mxu0 %vm17389_vm0, %v19950_v15 }
0x207f   : > { %15409 = vmatmul.mubr.msk.bf16.gmra.mrb[124].mxu0 %vm320_vm1, %v17201_v34  ;;  %v17241_v34 = vld [vmem:[#allocation2 + $0xa98] sm:$0xff]  }
0x2080   : > { %15412 = vmatprep.mubr.msk.bf16.mxu0 %vm17389_vm0, %v19950_v15 }
0x2087   : > { %15413 = vmatmul.mubr.msk.bf16.gmra.mrb[128].mxu0 %vm320_vm1, %v17202_v23  ;;  %v17242_v23 = vld [vmem:[#allocation2 + $0xa58] sm:$0xff]  }
0x212a   : > { %v10613_v47 = vpop.f32.mrb[104].mxu0 }
0x212b   : > { %v15390_v62 = vpop.f32.mrb[105].mxu0 }
0x212c   : > { %v10616_v28 = vpop.f32.mrb[106].mxu0  ;;  %v17249_v62 = vld [vmem:[#allocation2 + $0xab8] sm:$0xff]  }
0x212d   : > { %v10780_v43 = vpack.c.bf16 %v10616_v28, %v10613_v47  ;;  %v15391_v2 = vpop.f32.mrb[107].mxu0  ;;  %v17248_v47 = vld [vmem:[#allocation2 + $0xa70] sm:$0xff]   ;;  %v17250_v28 = vld [vmem:[#allocation2 + $0xa78] sm:$0xff]  }
0x212e   : > { %v17252_v2 = vld [vmem:[#allocation2 + $0xac8] sm:$0xff]  }
0x2132   : > { %v10621_v42 = vpop.f32.mrb[108].mxu0 }
0x2133   : > { %v15394_v14 = vpop.f32.mrb[109].mxu0 }
0x2134   : > { %v10624_v46 = vpop.f32.mrb[110].mxu0  ;;  %v17254_v14 = vld [vmem:[#allocation2 + $0xad8] sm:$0xff]  }
0x2135   : > { %v10781_v0 = vpack.c.bf16 %v10624_v46, %v10621_v42  ;;  %v15395_v1 = vpop.f32.mrb[111].mxu0  ;;  %v17253_v42 = vld [vmem:[#allocation2 + $0xad0] sm:$0xff]   ;;  %v17255_v46 = vld [vmem:[#allocation2 + $0xae0] sm:$0xff]  }
0x2136   : > { %v17257_v1 = vld [vmem:[#allocation2 + $0xaf0] sm:$0xff]  }
0x2137   : > { %11162 = vmatprep.mubr.bf16.mxu0 %v10781_v0  ;;  %v17256_v0 = vld [vmem:[#allocation2 + $0xae8] sm:$0xff]  }
0x2138   : > { %11163 = vmatmul.mubr.bf16.vlgmr.msra.gmra.mrb[132].mxu0 %v10780_v43  ;;  %v17251_v43 = vld [vmem:[#allocation2 + $0xac0] sm:$0xff]  }
0x2139   : > { %13202 = vmatpush3.bf16.msra.mxu0 %v17220_v20  ;;  %v17258_v20 = vld [vmem:[#allocation2 + $0xaf8] sm:$0xff]  }
0x213a   : > { %13203 = vmatprep.subr.bf16.mxu0 %v17221_v49  ;;  %v10629_v35 = vpop.f32.mrb[112].mxu0 }
0x213b   : > { %v15398_v11 = vpop.f32.mrb[113].mxu0 }
0x213c   : > { %v10632_v52 = vpop.f32.mrb[114].mxu0 }
0x213d   : > { %13204 = vmatpush3.bf16.msra.mxu0 %v17222_v26  ;;  %v10782_v13 = vpack.c.bf16 %v10632_v52, %v10629_v35  ;;  %v15399_v54 = vpop.f32.mrb[115].mxu0 }
0x213e   : > { %13205 = vmatprep.subr.bf16.mxu0 %v17223_v30 }
0x2141   : > { %13206 = vmatpush3.bf16.msra.mxu0 %v17224_v45  ;;  %v11763_v45 = vld [vmem:[#allocation6] ss:$0 sm:$0xff] }
0x2142   : > { %13207 = vmatprep.subr.bf16.mxu0 %v17225_v61  ;;  %v10637_v40 = vpop.f32.mrb[116].mxu0 }
0x2143   : > { %v15402_v63 = vpop.f32.mrb[117].mxu0 }
0x2144   : > { %v10640_v6 = vpop.f32.mrb[118].mxu0 }
0x2145   : > { %13208 = vmatpush3.bf16.msra.mxu0 %v17226_v7  ;;  %v10783_v10 = vpack.c.bf16 %v10640_v6, %v10637_v40  ;;  %v15403_v21 = vpop.f32.mrb[119].mxu0 }
0x2146   : > { %13209 = vmatprep.subr.bf16.mxu0 %v17227_v27 }
0x2147   : > { %11203 = vmatprep.mubr.bf16.mxu0 %v10783_v10 }
0x2149   : > { %13210 = vmatpush3.bf16.msra.mxu0 %v17228_v3 }
0x214a   : > { %13211 = vmatprep.subr.bf16.mxu0 %v17229_v22  ;;  %v10645_v31 = vpop.f32.mrb[120].mxu0 }
0x214b   : > { %v15406_v17 = vpop.f32.mrb[121].mxu0 }
0x214c   : > { %v10648_v39 = vpop.f32.mrb[122].mxu0 }
0x214d   : > { %13212 = vmatpush3.bf16.msra.mxu0 %v17230_v56  ;;  %v10784_v60 = vpack.c.bf16 %v10648_v39, %v10645_v31  ;;  %v15407_v36 = vpop.f32.mrb[123].mxu0 }
0x214e   : > { %13213 = vmatprep.subr.bf16.mxu0 %v17231_v18 }
0x2151   : > { %13214 = vmatpush3.bf16.msra.mxu0 %v17232_v41 }
0x2152   : > { %13215 = vmatprep.subr.bf16.mxu0 %v17233_v9  ;;  %v10653_v16 = vpop.f32.mrb[124].mxu0 }
0x2153   : > { %v15410_v57 = vpop.f32.mrb[125].mxu0 }
0x2154   : > { %v10656_v25 = vpop.f32.mrb[126].mxu0 }
0x2155   : > { %13216 = vmatpush3.bf16.msra.mxu0 %v17234_v8  ;;  %v10785_v24 = vpack.c.bf16 %v10656_v25, %v10653_v16  ;;  %v15411_v44 = vpop.f32.mrb[127].mxu0 }
0x2156   : > { %13223 = vmatprep.subr.bf16.mxu0 %v17235_v59 }
0x2158   : > { %11204 = vmatmul.mubr.bf16.vlgmr.msra.gmra.mrb[136].mxu0 %v10782_v13 }
0x2159   : > { %13224 = vmatpush3.bf16.msra.mxu0 %v17236_v5  ;;  %11244 = vmatprep.mubr.bf16.mxu0 %v10785_v24 }
0x215a   : > { %13225 = vmatprep.subr.bf16.mxu0 %v17237_v37  ;;  %v10661_v48 = vpop.f32.mrb[128].mxu0 }
0x215b   : > { %v15414_v58 = vpop.f32.mrb[129].mxu0 }
0x215c   : > { %v10664_v55 = vpop.f32.mrb[130].mxu0 }
0x215d   : > { %13226 = vmatpush3.bf16.msra.mxu0 %v17238_v12  ;;  %v10786_v33 = vpack.c.bf16 %v10664_v55, %v10661_v48  ;;  %v15415_v38 = vpop.f32.mrb[131].mxu0 }
0x215e   : > { %13227 = vmatprep.subr.bf16.mxu0 %v17239_v53 }
0x2161   : > { %13228 = vmatpush3.bf16.msra.mxu0 %v17240_v29 }
0x2162   : > { %13229 = vmatprep.subr.bf16.mxu0 %v17241_v34 }
0x2165   : > { %13230 = vmatpush3.bf16.msra.mxu0 %v17242_v23 }
0x2166   : > { %13231 = vmatprep.subr.bf16.mxu0 %v17243_v19 }
0x2169   : > { %13232 = vmatpush3.bf16.msra.mxu0 %v17244_v50 }
0x216a   : > { %13233 = vmatprep.subr.bf16.mxu0 %v17245_v32 }
0x216d   : > { %13234 = vmatpush3.bf16.msra.mxu0 %v17246_v4 }
0x216e   : > { %13235 = vmatprep.subr.bf16.mxu0 %v17247_v51 }
0x2171   : > { %13236 = vmatpush3.bf16.msra.mxu0 %v17248_v47 }
0x2172   : > { %13237 = vmatprep.subr.bf16.mxu0 %v17249_v62 }
0x2175   : > { %13238 = vmatpush3.bf16.msra.mxu0 %v17250_v28 }
0x2176   : > { %15416 = vmatprep.subr.bf16.mxu0 %v19950_v15 }
0x2178   : > { %11245 = vmatmul.mubr.bf16.vlgmr.msra.gmra.mrb[140].mxu0 %v10784_v60 }
0x2179   : > { %15417 = vmatpush3.bf16.msra.mxu0 %v17251_v43  ;;  %15432 = vmatprep.mubr.msk.bf16.mxu0 %vm17389_vm0, %v19950_v15 }
0x217a   : > { %15418 = vmatprep.subr.bf16.mxu0 %v19950_v15 }
0x217d   : > { %15419 = vmatpush3.bf16.msra.mxu0 %v17252_v2 }
0x217e   : > { %15420 = vmatprep.subr.bf16.mxu0 %v19950_v15 }
0x2181   : > { %15421 = vmatpush3.bf16.msra.mxu0 %v17253_v42 }
0x2182   : > { %15422 = vmatprep.subr.bf16.mxu0 %v19950_v15 }
0x2185   : > { %15423 = vmatpush3.bf16.msra.mxu0 %v17254_v14 }
0x2186   : > { %15424 = vmatprep.subr.bf16.mxu0 %v19950_v15 }
0x2189   : > { %15425 = vmatpush3.bf16.msra.mxu0 %v17255_v46 }
0x218a   : > { %15426 = vmatprep.subr.bf16.mxu0 %v19950_v15 }
0x218d   : > { %15427 = vmatpush3.bf16.msra.mxu0 %v17256_v0 }
0x218e   : > { %15428 = vmatprep.subr.bf16.mxu0 %v19950_v15 }
0x2191   : > { %15429 = vmatpush3.bf16.msra.mxu0 %v17257_v1 }
0x2192   : > { %15430 = vmatprep.subr.bf16.mxu0 %v19950_v15 }
0x2195   : > { %15431 = vmatpush3.bf16.msra.mxu0 %v17258_v20 }
0x2198   : > { %15433 = vmatmul.mubr.bf16.vlgmr.msra.gmra.mrb[144].mxu0 %v10786_v33 }
0x220b   : > { %v13195_v49 = vpop.f32.mrb[132].mxu0 }
0x220c   : > { %v13196_v26 = vpop.f32.mrb[133].mxu0 }
0x220d   : > { %v13197_v30 = vadd.f32 %v13196_v26, %v13195_v49  ;;  %v13198_v35 = vpop.f32.mrb[134].mxu0 }
0x220e   : > { %v13199_v11 = vpop.f32.mrb[135].mxu0 }
0x220f   : > { %v13200_v52 = vadd.f32 %v13199_v11, %v13198_v35  ;;  %v11165_v61 = vadd.f32 %v13197_v30, %v11763_v45 }
0x2211   : > { %v11168_v63 = vadd.f32 %v13200_v52, %v11763_v45 }
0x222b   : > { %v13217_v13 = vpop.f32.mrb[136].mxu0 }
0x222c   : > { %v13218_v54 = vpop.f32.mrb[137].mxu0 }
0x222d   : > { %v13219_v7 = vadd.f32 %v13218_v54, %v13217_v13  ;;  %v13220_v27 = vpop.f32.mrb[138].mxu0 }
0x222e   : > { %v13221_v40 = vpop.f32.mrb[139].mxu0 }
0x222f   : > { %v11206_v6 = vadd.f32 %v13219_v7, %v11165_v61  ;;  %v13222_v3 = vadd.f32 %v13221_v40, %v13220_v27 }
0x2231   : > { %v11209_v10 = vadd.f32 %v13222_v3, %v11168_v63 }
0x224b   : > { %v13239_v15 = vpop.f32.mrb[140].mxu0 }
0x224c   : > { %v13240_v21 = vpop.f32.mrb[141].mxu0 }
0x224d   : > { %v13241_v22 = vadd.f32 %v13240_v21, %v13239_v15  ;;  %v13242_v56 = vpop.f32.mrb[142].mxu0 }
0x224e   : > { %v13243_v18 = vpop.f32.mrb[143].mxu0 }
0x224f   : > { %v13244_v31 = vadd.f32 %v13243_v18, %v13242_v56  ;;  %v11247_v17 = vadd.f32 %v13241_v22, %v11206_v6 }
0x2251   : > { %v11250_v39 = vadd.f32 %v13244_v31, %v11209_v10 }
0x226b   : > { %v11287_v41 = vpop.f32.mrb[144].mxu0 }
0x226c   : > { %v11288_v60 = vadd.f32 %v11287_v41, %v11247_v17  ;;  %v15434_v36 = vpop.f32.mrb[145].mxu0 }
0x226d   : > { %v11290_v9 = vpop.f32.mrb[146].mxu0 }
0x226e   : > { %17277 = vtanh.f32 %v11288_v60  ;;  %v11291_v8 = vadd.f32 %v11290_v9, %v11250_v39  ;;  %v15435_v59 = vpop.f32.mrb[147].mxu0 }
0x2270   : > { %17279 = vtanh.f32 %v11291_v8 }
0x2278   : > { %v17278_v16 = vpop.eup %17277 }
0x2279   : > { %11296 = vst [vmem:[%s266_s30] sm:$0xff] %v17278_v16 }
0x227a   : > { %v17280_v57 = vpop.eup %17279 }
0x227b   : > { %11297 = vst [vmem:[%s266_s30 + $0x8] sm:$0xff] %v17280_v57 }
0x227c PF: > { %s17_s18 = sadd.s32 1, %s17379_s18  }
0x227d   : > { %p14_p5 = scmp.ge.s32.totalorder %s17_s18, 4  }
0x227f   :  { %16 = sbr.rel (!%p14_p5) target bundleno = 2 (0x2), region = 85 }
0x2286   :  { %11319 = vsyncpa [#allocation3], 1 }
0x2287   :  { %11321 = vsyncpa [#allocation3 + $0x1], 1 }
0x2288   :  { %11322 = vsyncpa [#allocation5], 1 }

</bundles_post_ra>
